<compile_context>
chip_gen: v5e
topology: v5e:2x2
jax: 0.10.0
libtpu: 0.0.40
codegen_flags: <defaults>
</compile_context>

<pallas_src>
import functools

import jax
import jax.numpy as jnp
from jax import lax
from jax.experimental import pallas as pl
from jax.experimental.pallas import tpu as pltpu

LANES = 128          # TPU lane width; the SDF grid is flattened to (rows, 128)
_LANE_SHIFT = 7      # log2(LANES)


def _voxel_collision_kernel(off_ref, rad_ref, grid_ref, pos_ref, rot_ref,
                            out_ref, *, n_links, n_spheres, grid_dim,
                            bounds_lo, grid_res, distance_threshold, weight):
    L = n_links
    ns = n_spheres
    G = grid_dim
    TN = pos_ref.shape[-1]            # lane tile over batch*horizon
    R = grid_ref.shape[0]             # ceil(G^3 / 128) rows of the flat SDF
    f32 = jnp.float32

    grid2d = grid_ref[...]            # (R, 128) bf16; sdf.flat[row*128 + lane]

    # Hoisted, small iotas (broadcast inside the == below).
    row_iota = lax.broadcasted_iota(jnp.int32, (1, 1, R), 2)
    lane_iota = lax.broadcasted_iota(jnp.int32, (1, 1, LANES), 2)

    inv_res = 1.0 / grid_res

    def link_body(l, cost):
        rot_l = rot_ref[l]            # (9, TN)   element [3*d + k] = R[d, k]
        pos_l = pos_ref[l]            # (3, TN)
        off_l = off_ref[l]            # (3, ns, 1) sphere centers, link frame
        rad_l = rad_ref[l]            # (ns, 1)    sphere radii

        # world-frame centers -> flat voxel index (i0*G + i1)*G + i2
        flat = None
        for d in range(3):
            wd = (rot_l[3 * d + 0:3 * d + 1, :] * off_l[0]
                  + rot_l[3 * d + 1:3 * d + 2, :] * off_l[1]
                  + rot_l[3 * d + 2:3 * d + 3, :] * off_l[2]
                  + pos_l[d:d + 1, :])                         # (ns, TN)
            cid = jnp.floor((wd - bounds_lo[d]) * inv_res)
            # TODO(synk): out-of-grid centers are clamped to the boundary voxel;
            # the original module may treat them as free space instead.
            cid = jnp.clip(cid, 0.0, float(G - 1)).astype(jnp.int32)
            flat = cid if flat is None else flat * G + cid     # (ns, TN)

        row = jnp.right_shift(flat, _LANE_SHIFT)               # flat // 128
        lane = jnp.bitwise_and(flat, LANES - 1)                # flat %  128

        # stage 1: bf16 one-hot @ flat grid on the MXU -> full 128-lane row
        onehot = (row_iota == row[:, :, None]).astype(jnp.bfloat16)   # (ns,TN,R)
        rows = jnp.dot(onehot.reshape(ns * TN, R), grid2d,
                       preferred_element_type=f32)             # (ns*TN, 128)
        rows = rows.reshape(ns, TN, LANES)

        # stage 2: pick the lane (VPU select + XLU lane reduce)
        sel = (lane_iota == lane[:, :, None]).astype(f32)      # (ns, TN, 128)
        sdf = jnp.sum(rows * sel, axis=-1)                     # (ns, TN)

        # per-sphere penetration, worst sphere per link
        dist = rad_l - sdf                                     # (ns, TN)
        link_res = jnp.max(dist, axis=0, keepdims=True)        # (1, TN)

        # res += threshold; clamp [0, 0.5]  (the /0.25 is folded into `weight`)
        return cost + jnp.clip(link_res + distance_threshold, 0.0, 0.5)

    cost = lax.fori_loop(0, L, link_body, jnp.zeros((1, TN), f32))

    # GaussianProjection(gaussian_params={}) is the identity map.
    out_ref[...] = (4.0 * weight) * cost                       # (1, TN)


def _pick_tiling(n, tile_n):
    """Lane-dense tile; force >= 2 grid steps so v7x megacore gets both TCs."""
    tile_n = max(LANES, (int(tile_n) // LANES) * LANES)
    half = (n + 1) // 2
    half_up = ((half + LANES - 1) // LANES) * LANES
    tile_n = min(tile_n, max(LANES, half_up))
    n_tiles = max(2, (n + tile_n - 1) // tile_n)
    return tile_n, n_tiles


def voxel_collision_cost(link_pos_seq, link_rot_seq, sphere_offsets,
                         sphere_radii, sdf_grid, *, bounds_lo, grid_res,
                         distance_threshold, weight, tile_n=512):
    B, H, L, _ = link_pos_seq.shape
    ns = sphere_offsets.shape[1]
    N = B * H
    G = sdf_grid.shape[0]
    f32 = jnp.float32

    tile_n, n_tiles = _pick_tiling(N, tile_n)
    n_pad = n_tiles * tile_n

    # ---- compact kernel inputs (no sphere / pose broadcasting in HBM) ----
    pos = jnp.transpose(link_pos_seq.reshape(N, L, 3), (1, 2, 0)).astype(f32)  # (L,3,N)
    rot = jnp.transpose(link_rot_seq.reshape(N, L, 9), (1, 2, 0)).astype(f32)  # (L,9,N)
    if n_pad != N:
        pos = jnp.pad(pos, ((0, 0), (0, 0), (0, n_pad - N)))
        rot = jnp.pad(rot, ((0, 0), (0, 0), (0, n_pad - N)))

    off = jnp.transpose(sphere_offsets, (0, 2, 1)).astype(f32)[..., None]      # (L,3,ns,1)
    rad = sphere_radii.astype(f32)[..., None]                                  # (L,ns,1)

    # SDF grid flattened to (rows, 128) in bf16; flat index = (i0*G+i1)*G+i2.
    n_cells = G * G * G
    n_rows = pl.cdiv(n_cells, LANES)
    grid_flat = sdf_grid.reshape(-1).astype(f32)
    grid_flat = jnp.pad(grid_flat, (0, n_rows * LANES - n_cells))
    grid2d = grid_flat.reshape(n_rows, LANES).astype(jnp.bfloat16)             # (R,128)

    kernel = functools.partial(
        _voxel_collision_kernel,
        n_links=L, n_spheres=ns, grid_dim=G,
        bounds_lo=tuple(float(v) for v in bounds_lo), grid_res=float(grid_res),
        distance_threshold=float(distance_threshold), weight=float(weight))

    cost = pl.pallas_call(
        kernel,
        out_shape=jax.ShapeDtypeStruct((1, n_pad), f32),
        grid_spec=pltpu.PrefetchScalarGridSpec(
            num_scalar_prefetch=0,
            grid=(n_tiles,),
            in_specs=[
                pl.BlockSpec((L, 3, ns, 1), lambda i: (0, 0, 0, 0)),     # off (resident)
                pl.BlockSpec((L, ns, 1), lambda i: (0, 0, 0)),           # rad (resident)
                pl.BlockSpec((n_rows, LANES), lambda i: (0, 0)),         # sdf grid (resident)
                pl.BlockSpec((L, 3, tile_n), lambda i: (0, 0, i)),       # pos tile
                pl.BlockSpec((L, 9, tile_n), lambda i: (0, 0, i)),       # rot tile
            ],
            out_specs=pl.BlockSpec((1, tile_n), lambda i: (0, i)),
        ),
        compiler_params=pltpu.CompilerParams(
            dimension_semantics=("parallel",),
            # 32 MiB is ample after the one-hot shrink and fits v7x's 64 MiB
            # physical VMEM with headroom (don't copy a larger v5e/v6e value).
            vmem_limit_bytes=32 * 1024 * 1024),
    )(off, rad, grid2d, pos, rot)

    return cost[0, :N].reshape(B, H)


def voxel_collision_cost_ref(link_pos_seq, link_rot_seq, sphere_offsets,
                             sphere_radii, sdf_grid, *, bounds_lo, grid_res,
                             distance_threshold, weight):
    """Pure-JAX f32 reference with the same arithmetic structure as the kernel."""
    B, H, L, _ = link_pos_seq.shape
    N = B * H
    G = sdf_grid.shape[0]
    f32 = jnp.float32
    pos = link_pos_seq.reshape(N, L, 3).astype(f32)
    rot = link_rot_seq.reshape(N, L, 3, 3).astype(f32)
    off = sphere_offsets.astype(f32)                 # (L, ns, 3)
    rad = sphere_radii.astype(f32)                   # (L, ns)
    lo = jnp.asarray(bounds_lo, f32)
    inv_res = 1.0 / grid_res

    # same left-to-right association as the kernel
    w = (rot[:, :, None, :, 0] * off[None, :, :, None, 0]
         + rot[:, :, None, :, 1] * off[None, :, :, None, 1]
         + rot[:, :, None, :, 2] * off[None, :, :, None, 2]
         + pos[:, :, None, :])                       # (N, L, ns, 3)
    idx = jnp.clip(jnp.floor((w - lo) * inv_res), 0.0, float(G - 1)).astype(jnp.int32)
    flat = (idx[..., 0] * G + idx[..., 1]) * G + idx[..., 2]
    sdf = sdf_grid.reshape(-1).astype(f32)[flat]     # (N, L, ns)
    res = jnp.max(rad[None] - sdf, axis=-1)          # (N, L)
    res = jnp.clip(res + distance_threshold, 0.0, 0.5) / 0.25
    return (weight * jnp.sum(res, axis=-1)).reshape(B, H)


if __name__ == "__main__":
    key = jax.random.PRNGKey(0)
    B, H, L, n_spheres = 2, 8, 4, 8           # batch, horizon, n_links, spheres/link
    G = 16                                    # voxel grid dim
    grid_res = 0.05
    bounds_lo = (-0.4, -0.4, -0.4)
    distance_threshold = -0.01
    weight = 1000.0

    k1, k2, k3, k4 = jax.random.split(key, 4)

    # module inputs: link_pos_seq (B,H,L,3), link_rot_seq (B,H,L,3,3)
    link_pos_seq = 0.3 * jax.random.uniform(k1, (B, H, L, 3),
                                            minval=-1.0, maxval=1.0)
    raw = jax.random.normal(k2, (B, H, L, 3, 3))
    link_rot_seq, _ = jnp.linalg.qr(raw)      # valid-ish rotations

    # deterministic synthetic robot collision model
    sphere_offsets = 0.05 * jax.random.normal(k3, (L, n_spheres, 3))
    sphere_radii = jax.random.uniform(k4, (L, n_spheres), minval=0.03, maxval=0.08)

    # synthetic world voxel SDF: sphere obstacle of radius 0.15 at the origin
    centers = bounds_lo[0] + (jnp.arange(G, dtype=jnp.float32) + 0.5) * grid_res
    cx, cy, cz = jnp.meshgrid(centers, centers, centers, indexing="ij")
    sdf_grid = jnp.sqrt(cx ** 2 + cy ** 2 + cz ** 2) - 0.15

    args = (link_pos_seq.astype(jnp.float32), link_rot_seq.astype(jnp.float32),
            sphere_offsets.astype(jnp.float32), sphere_radii.astype(jnp.float32),
            sdf_grid.astype(jnp.float32))
    kwargs = dict(bounds_lo=bounds_lo, grid_res=grid_res,
                  distance_threshold=distance_threshold, weight=weight)

    cost = voxel_collision_cost(*args, **kwargs)
    jax.block_until_ready(cost)
    assert cost.shape == (B, H) and cost.dtype == jnp.float32

    # bf16 SDF rounding is the only approximation: |err| <= 0.5*ulp_bf16(~0.5)
    # ~= 2e-3 per sphere, x L links x (4*weight) ~= 32 on the cost scale.
    ref = voxel_collision_cost_ref(*args, **kwargs)
    max_err = float(jnp.max(jnp.abs(cost - ref)))
    assert max_err < 50.0, f"kernel/reference mismatch: max_err={max_err}"

    print("KERNEL_OK")
</pallas_src>

<mosaic_0001>
module attributes {stable_mosaic.version = 11 : i64} {
  func.func @_voxel_collision_kernel(%arg0: i32, %arg1: memref<4x3x8x1xf32, #tpu.memory_space<vmem>>, %arg2: memref<4x8x1xf32, #tpu.memory_space<vmem>>, %arg3: memref<32x128xbf16, #tpu.memory_space<vmem>>, %arg4: memref<4x3x128xf32, #tpu.memory_space<vmem>>, %arg5: memref<4x9x128xf32, #tpu.memory_space<vmem>>, %arg6: memref<1x128xf32, #tpu.memory_space<vmem>>) attributes {dimension_semantics = [#tpu.dimension_semantics<parallel>], iteration_bounds = array<i64: 2>, scalar_prefetch = 0 : i64, scratch_operands = 0 : i64, tpu.core_type = #tpu.core_type<tc>, window_params = [{pipeline_mode = #tpu.pipeline_mode<synchronous>, transform_indices = @transform_0, window_bounds = array<i64: 4, 3, 8, 1>}, {pipeline_mode = #tpu.pipeline_mode<synchronous>, transform_indices = @transform_1, window_bounds = array<i64: 4, 8, 1>}, {pipeline_mode = #tpu.pipeline_mode<synchronous>, transform_indices = @transform_2, window_bounds = array<i64: 32, 128>}, {transform_indices = @transform_3, window_bounds = array<i64: 4, 3, 128>}, {transform_indices = @transform_4, window_bounds = array<i64: 4, 9, 128>}, {transform_indices = @transform_5, window_bounds = array<i64: 1, 128>}]} {
    %c0 = arith.constant 0 : index
    %c0_0 = arith.constant 0 : index
    %0 = vector.load %arg3[%c0, %c0_0] : memref<32x128xbf16, #tpu.memory_space<vmem>>, vector<32x128xbf16>
    %1 = tpu.iota {dimensions = array<i32: 2>} : vector<1x1x32xi32>
    %2 = tpu.iota {dimensions = array<i32: 2>} : vector<1x1x128xi32>
    %cst = arith.constant 0.000000e+00 : f32
    %3 = vector.broadcast %cst : f32 to vector<1x128xf32>
    %c0_i32 = arith.constant 0 : i32
    %c4_i32 = arith.constant 4 : i32
    %4 = arith.addi %c0_i32, %c4_i32 : i32
    %c1_i32 = arith.constant 1 : i32
    %5 = scf.for %arg7 = %c0_i32 to %4 step %c1_i32 iter_args(%arg8 = %3) -> (vector<1x128xf32>)  : i32 {
      %9 = arith.index_cast %arg7 : i32 to index
      %c0_5 = arith.constant 0 : index
      %c0_6 = arith.constant 0 : index
      %10 = vector.load %arg5[%9, %c0_5, %c0_6] : memref<4x9x128xf32, #tpu.memory_space<vmem>>, vector<1x9x128xf32>
      %11 = vector.shape_cast %10 : vector<1x9x128xf32> to vector<9x128xf32>
      %12 = arith.index_cast %arg7 : i32 to index
      %c0_7 = arith.constant 0 : index
      %c0_8 = arith.constant 0 : index
      %13 = vector.load %arg4[%12, %c0_7, %c0_8] : memref<4x3x128xf32, #tpu.memory_space<vmem>>, vector<1x3x128xf32>
      %14 = vector.shape_cast %13 : vector<1x3x128xf32> to vector<3x128xf32>
      %15 = arith.index_cast %arg7 : i32 to index
      %c0_9 = arith.constant 0 : index
      %c0_10 = arith.constant 0 : index
      %c0_11 = arith.constant 0 : index
      %16 = vector.load %arg1[%15, %c0_9, %c0_10, %c0_11] : memref<4x3x8x1xf32, #tpu.memory_space<vmem>>, vector<1x3x8x1xf32>
      %17 = vector.shape_cast %16 : vector<1x3x8x1xf32> to vector<3x8x1xf32>
      %18 = arith.index_cast %arg7 : i32 to index
      %c0_12 = arith.constant 0 : index
      %c0_13 = arith.constant 0 : index
      %19 = vector.load %arg2[%18, %c0_12, %c0_13] : memref<4x8x1xf32, #tpu.memory_space<vmem>>, vector<1x8x1xf32>
      %20 = vector.shape_cast %19 : vector<1x8x1xf32> to vector<8x1xf32>
      %21 = vector.extract_strided_slice %11 {offsets = [0, 0], sizes = [1, 128], strides = [1, 1]} : vector<9x128xf32> to vector<1x128xf32>
      %22 = vector.extract_strided_slice %17 {offsets = [0, 0, 0], sizes = [1, 8, 1], strides = [1, 1, 1]} : vector<3x8x1xf32> to vector<1x8x1xf32>
      %23 = vector.shape_cast %22 : vector<1x8x1xf32> to vector<8x1xf32>
      %24 = vector.broadcast %21 : vector<1x128xf32> to vector<8x128xf32>
      %25 = vector.broadcast %23 : vector<8x1xf32> to vector<8x128xf32>
      %26 = arith.mulf %24, %25 : vector<8x128xf32>
      %27 = vector.extract_strided_slice %11 {offsets = [1, 0], sizes = [1, 128], strides = [1, 1]} : vector<9x128xf32> to vector<1x128xf32>
      %28 = vector.extract_strided_slice %17 {offsets = [1, 0, 0], sizes = [1, 8, 1], strides = [1, 1, 1]} : vector<3x8x1xf32> to vector<1x8x1xf32>
      %29 = vector.shape_cast %28 : vector<1x8x1xf32> to vector<8x1xf32>
      %30 = vector.broadcast %27 : vector<1x128xf32> to vector<8x128xf32>
      %31 = vector.broadcast %29 : vector<8x1xf32> to vector<8x128xf32>
      %32 = arith.mulf %30, %31 : vector<8x128xf32>
      %33 = arith.addf %26, %32 : vector<8x128xf32>
      %34 = vector.extract_strided_slice %11 {offsets = [2, 0], sizes = [1, 128], strides = [1, 1]} : vector<9x128xf32> to vector<1x128xf32>
      %35 = vector.extract_strided_slice %17 {offsets = [2, 0, 0], sizes = [1, 8, 1], strides = [1, 1, 1]} : vector<3x8x1xf32> to vector<1x8x1xf32>
      %36 = vector.shape_cast %35 : vector<1x8x1xf32> to vector<8x1xf32>
      %37 = vector.broadcast %34 : vector<1x128xf32> to vector<8x128xf32>
      %38 = vector.broadcast %36 : vector<8x1xf32> to vector<8x128xf32>
      %39 = arith.mulf %37, %38 : vector<8x128xf32>
      %40 = arith.addf %33, %39 : vector<8x128xf32>
      %41 = vector.extract_strided_slice %14 {offsets = [0, 0], sizes = [1, 128], strides = [1, 1]} : vector<3x128xf32> to vector<1x128xf32>
      %42 = vector.broadcast %41 : vector<1x128xf32> to vector<8x128xf32>
      %43 = arith.addf %40, %42 : vector<8x128xf32>
      %cst_14 = arith.constant -4.000000e-01 : f32
      %44 = vector.broadcast %cst_14 : f32 to vector<8x128xf32>
      %45 = arith.subf %43, %44 : vector<8x128xf32>
      %cst_15 = arith.constant 2.000000e+01 : f32
      %46 = vector.broadcast %cst_15 : f32 to vector<8x128xf32>
      %47 = arith.mulf %45, %46 : vector<8x128xf32>
      %48 = math.floor %47 : vector<8x128xf32>
      %cst_16 = arith.constant 0.000000e+00 : f32
      %cst_17 = arith.constant 1.500000e+01 : f32
      %49 = vector.broadcast %cst_16 : f32 to vector<8x128xf32>
      %50 = arith.maximumf %49, %48 : vector<8x128xf32>
      %51 = vector.broadcast %cst_17 : f32 to vector<8x128xf32>
      %52 = arith.minimumf %51, %50 : vector<8x128xf32>
      %53 = arith.fptosi %52 : vector<8x128xf32> to vector<8x128xi32>
      %54 = vector.extract_strided_slice %11 {offsets = [3, 0], sizes = [1, 128], strides = [1, 1]} : vector<9x128xf32> to vector<1x128xf32>
      %55 = vector.extract_strided_slice %17 {offsets = [0, 0, 0], sizes = [1, 8, 1], strides = [1, 1, 1]} : vector<3x8x1xf32> to vector<1x8x1xf32>
      %56 = vector.shape_cast %55 : vector<1x8x1xf32> to vector<8x1xf32>
      %57 = vector.broadcast %54 : vector<1x128xf32> to vector<8x128xf32>
      %58 = vector.broadcast %56 : vector<8x1xf32> to vector<8x128xf32>
      %59 = arith.mulf %57, %58 : vector<8x128xf32>
      %60 = vector.extract_strided_slice %11 {offsets = [4, 0], sizes = [1, 128], strides = [1, 1]} : vector<9x128xf32> to vector<1x128xf32>
      %61 = vector.extract_strided_slice %17 {offsets = [1, 0, 0], sizes = [1, 8, 1], strides = [1, 1, 1]} : vector<3x8x1xf32> to vector<1x8x1xf32>
      %62 = vector.shape_cast %61 : vector<1x8x1xf32> to vector<8x1xf32>
      %63 = vector.broadcast %60 : vector<1x128xf32> to vector<8x128xf32>
      %64 = vector.broadcast %62 : vector<8x1xf32> to vector<8x128xf32>
      %65 = arith.mulf %63, %64 : vector<8x128xf32>
      %66 = arith.addf %59, %65 : vector<8x128xf32>
      %67 = vector.extract_strided_slice %11 {offsets = [5, 0], sizes = [1, 128], strides = [1, 1]} : vector<9x128xf32> to vector<1x128xf32>
      %68 = vector.extract_strided_slice %17 {offsets = [2, 0, 0], sizes = [1, 8, 1], strides = [1, 1, 1]} : vector<3x8x1xf32> to vector<1x8x1xf32>
      %69 = vector.shape_cast %68 : vector<1x8x1xf32> to vector<8x1xf32>
      %70 = vector.broadcast %67 : vector<1x128xf32> to vector<8x128xf32>
      %71 = vector.broadcast %69 : vector<8x1xf32> to vector<8x128xf32>
      %72 = arith.mulf %70, %71 : vector<8x128xf32>
      %73 = arith.addf %66, %72 : vector<8x128xf32>
      %74 = vector.extract_strided_slice %14 {offsets = [1, 0], sizes = [1, 128], strides = [1, 1]} : vector<3x128xf32> to vector<1x128xf32>
      %75 = vector.broadcast %74 : vector<1x128xf32> to vector<8x128xf32>
      %76 = arith.addf %73, %75 : vector<8x128xf32>
      %cst_18 = arith.constant -4.000000e-01 : f32
      %77 = vector.broadcast %cst_18 : f32 to vector<8x128xf32>
      %78 = arith.subf %76, %77 : vector<8x128xf32>
      %cst_19 = arith.constant 2.000000e+01 : f32
      %79 = vector.broadcast %cst_19 : f32 to vector<8x128xf32>
      %80 = arith.mulf %78, %79 : vector<8x128xf32>
      %81 = math.floor %80 : vector<8x128xf32>
      %cst_20 = arith.constant 0.000000e+00 : f32
      %cst_21 = arith.constant 1.500000e+01 : f32
      %82 = vector.broadcast %cst_20 : f32 to vector<8x128xf32>
      %83 = arith.maximumf %82, %81 : vector<8x128xf32>
      %84 = vector.broadcast %cst_21 : f32 to vector<8x128xf32>
      %85 = arith.minimumf %84, %83 : vector<8x128xf32>
      %86 = arith.fptosi %85 : vector<8x128xf32> to vector<8x128xi32>
      %c16_i32 = arith.constant 16 : i32
      %87 = vector.broadcast %c16_i32 : i32 to vector<8x128xi32>
      %88 = arith.muli %53, %87 : vector<8x128xi32>
      %89 = arith.addi %88, %86 : vector<8x128xi32>
      %90 = vector.extract_strided_slice %11 {offsets = [6, 0], sizes = [1, 128], strides = [1, 1]} : vector<9x128xf32> to vector<1x128xf32>
      %91 = vector.extract_strided_slice %17 {offsets = [0, 0, 0], sizes = [1, 8, 1], strides = [1, 1, 1]} : vector<3x8x1xf32> to vector<1x8x1xf32>
      %92 = vector.shape_cast %91 : vector<1x8x1xf32> to vector<8x1xf32>
      %93 = vector.broadcast %90 : vector<1x128xf32> to vector<8x128xf32>
      %94 = vector.broadcast %92 : vector<8x1xf32> to vector<8x128xf32>
      %95 = arith.mulf %93, %94 : vector<8x128xf32>
      %96 = vector.extract_strided_slice %11 {offsets = [7, 0], sizes = [1, 128], strides = [1, 1]} : vector<9x128xf32> to vector<1x128xf32>
      %97 = vector.extract_strided_slice %17 {offsets = [1, 0, 0], sizes = [1, 8, 1], strides = [1, 1, 1]} : vector<3x8x1xf32> to vector<1x8x1xf32>
      %98 = vector.shape_cast %97 : vector<1x8x1xf32> to vector<8x1xf32>
      %99 = vector.broadcast %96 : vector<1x128xf32> to vector<8x128xf32>
      %100 = vector.broadcast %98 : vector<8x1xf32> to vector<8x128xf32>
      %101 = arith.mulf %99, %100 : vector<8x128xf32>
      %102 = arith.addf %95, %101 : vector<8x128xf32>
      %103 = vector.extract_strided_slice %11 {offsets = [8, 0], sizes = [1, 128], strides = [1, 1]} : vector<9x128xf32> to vector<1x128xf32>
      %104 = vector.extract_strided_slice %17 {offsets = [2, 0, 0], sizes = [1, 8, 1], strides = [1, 1, 1]} : vector<3x8x1xf32> to vector<1x8x1xf32>
      %105 = vector.shape_cast %104 : vector<1x8x1xf32> to vector<8x1xf32>
      %106 = vector.broadcast %103 : vector<1x128xf32> to vector<8x128xf32>
      %107 = vector.broadcast %105 : vector<8x1xf32> to vector<8x128xf32>
      %108 = arith.mulf %106, %107 : vector<8x128xf32>
      %109 = arith.addf %102, %108 : vector<8x128xf32>
      %110 = vector.extract_strided_slice %14 {offsets = [2, 0], sizes = [1, 128], strides = [1, 1]} : vector<3x128xf32> to vector<1x128xf32>
      %111 = vector.broadcast %110 : vector<1x128xf32> to vector<8x128xf32>
      %112 = arith.addf %109, %111 : vector<8x128xf32>
      %cst_22 = arith.constant -4.000000e-01 : f32
      %113 = vector.broadcast %cst_22 : f32 to vector<8x128xf32>
      %114 = arith.subf %112, %113 : vector<8x128xf32>
      %cst_23 = arith.constant 2.000000e+01 : f32
      %115 = vector.broadcast %cst_23 : f32 to vector<8x128xf32>
      %116 = arith.mulf %114, %115 : vector<8x128xf32>
      %117 = math.floor %116 : vector<8x128xf32>
      %cst_24 = arith.constant 0.000000e+00 : f32
      %cst_25 = arith.constant 1.500000e+01 : f32
      %118 = vector.broadcast %cst_24 : f32 to vector<8x128xf32>
      %119 = arith.maximumf %118, %117 : vector<8x128xf32>
      %120 = vector.broadcast %cst_25 : f32 to vector<8x128xf32>
      %121 = arith.minimumf %120, %119 : vector<8x128xf32>
      %122 = arith.fptosi %121 : vector<8x128xf32> to vector<8x128xi32>
      %c16_i32_26 = arith.constant 16 : i32
      %123 = vector.broadcast %c16_i32_26 : i32 to vector<8x128xi32>
      %124 = arith.muli %89, %123 : vector<8x128xi32>
      %125 = arith.addi %124, %122 : vector<8x128xi32>
      %c7_i32 = arith.constant 7 : i32
      %126 = vector.broadcast %c7_i32 : i32 to vector<8x128xi32>
      %127 = arith.shrsi %125, %126 : vector<8x128xi32>
      %c127_i32 = arith.constant 127 : i32
      %128 = vector.broadcast %c127_i32 : i32 to vector<8x128xi32>
      %129 = arith.andi %125, %128 : vector<8x128xi32>
      %130 = vector.shape_cast %127 : vector<8x128xi32> to vector<8x128x1xi32>
      %131 = vector.broadcast %1 : vector<1x1x32xi32> to vector<8x128x32xi32>
      %132 = vector.broadcast %130 : vector<8x128x1xi32> to vector<8x128x32xi32>
      %133 = arith.cmpi eq, %131, %132 : vector<8x128x32xi32>
      %134 = arith.extui %133 : vector<8x128x32xi1> to vector<8x128x32xi32>
      %135 = arith.sitofp %134 : vector<8x128x32xi32> to vector<8x128x32xf32>
      %136 = arith.truncf %135 : vector<8x128x32xf32> to vector<8x128x32xbf16>
      %137 = vector.shape_cast %136 : vector<8x128x32xbf16> to vector<1024x32xbf16>
      %cst_27 = arith.constant dense<0.000000e+00> : vector<1024x128xf32>
      %138 = tpu.matmul %137, %0, %cst_27 {dimension_numbers = #tpu.dot_dimension_numbers<[1], [0], [0], [1], [0, 0, 1, 1], [], []>} : vector<1024x32xbf16>, vector<32x128xbf16>, vector<1024x128xf32> -> vector<1024x128xf32>
      %139 = vector.shape_cast %138 : vector<1024x128xf32> to vector<8x128x128xf32>
      %140 = vector.shape_cast %129 : vector<8x128xi32> to vector<8x128x1xi32>
      %141 = vector.broadcast %2 : vector<1x1x128xi32> to vector<8x128x128xi32>
      %142 = vector.broadcast %140 : vector<8x128x1xi32> to vector<8x128x128xi32>
      %143 = arith.cmpi eq, %141, %142 : vector<8x128x128xi32>
      %144 = arith.extui %143 : vector<8x128x128xi1> to vector<8x128x128xi32>
      %145 = arith.sitofp %144 : vector<8x128x128xi32> to vector<8x128x128xf32>
      %146 = arith.mulf %139, %145 : vector<8x128x128xf32>
      %cst_28 = arith.constant dense<0.000000e+00> : vector<8x128xf32>
      %147 = vector.multi_reduction <add>, %146, %cst_28 [2] : vector<8x128x128xf32> to vector<8x128xf32>
      %148 = vector.broadcast %20 : vector<8x1xf32> to vector<8x128xf32>
      %149 = arith.subf %148, %147 : vector<8x128xf32>
      %cst_29 = arith.constant dense<0xFF800000> : vector<128xf32>
      %150 = vector.multi_reduction <maximumf>, %149, %cst_29 [0] : vector<8x128xf32> to vector<128xf32>
      %151 = vector.shape_cast %150 : vector<128xf32> to vector<1x128xf32>
      %cst_30 = arith.constant -0.00999999977 : f32
      %152 = vector.broadcast %cst_30 : f32 to vector<1x128xf32>
      %153 = arith.addf %151, %152 : vector<1x128xf32>
      %cst_31 = arith.constant 0.000000e+00 : f32
      %cst_32 = arith.constant 5.000000e-01 : f32
      %154 = vector.broadcast %cst_31 : f32 to vector<1x128xf32>
      %155 = arith.maximumf %154, %153 : vector<1x128xf32>
      %156 = vector.broadcast %cst_32 : f32 to vector<1x128xf32>
      %157 = arith.minimumf %156, %155 : vector<1x128xf32>
      %158 = arith.addf %arg8, %157 : vector<1x128xf32>
      scf.yield %158 : vector<1x128xf32>
    }
    %c4_i32_1 = arith.constant 4 : i32
    %cst_2 = arith.constant 4.000000e+03 : f32
    %6 = vector.broadcast %cst_2 : f32 to vector<1x128xf32>
    %7 = arith.mulf %6, %5 : vector<1x128xf32>
    %c0_3 = arith.constant 0 : index
    %c0_4 = arith.constant 0 : index
    %8 = vector.load %arg6[%c0_3, %c0_4] : memref<1x128xf32, #tpu.memory_space<vmem>>, vector<1x128xf32>
    tpu.vector_store %arg6[%c0_3, %c0_4], %7 {strides = array<i32>} : memref<1x128xf32, #tpu.memory_space<vmem>>, vector<1x128xf32>,
    return
  }
  func.func @transform_0(%arg0: i32) -> (i32, i32, i32, i32) {
    %c0_i32 = arith.constant 0 : i32
    %c0_i32_0 = arith.constant 0 : i32
    %c0_i32_1 = arith.constant 0 : i32
    %c0_i32_2 = arith.constant 0 : i32
    %c0_i32_3 = arith.constant 0 : i32
    return %c0_i32, %c0_i32_0, %c0_i32_1, %c0_i32_2 : i32, i32, i32, i32
  }
  func.func @transform_1(%arg0: i32) -> (i32, i32, i32) {
    %c0_i32 = arith.constant 0 : i32
    %c0_i32_0 = arith.constant 0 : i32
    %c0_i32_1 = arith.constant 0 : i32
    %c0_i32_2 = arith.constant 0 : i32
    return %c0_i32, %c0_i32_0, %c0_i32_1 : i32, i32, i32
  }
  func.func @transform_2(%arg0: i32) -> (i32, i32) {
    %c0_i32 = arith.constant 0 : i32
    %c0_i32_0 = arith.constant 0 : i32
    %c0_i32_1 = arith.constant 0 : i32
    return %c0_i32, %c0_i32_0 : i32, i32
  }
  func.func @transform_3(%arg0: i32) -> (i32, i32, i32) {
    %c0_i32 = arith.constant 0 : i32
    %c0_i32_0 = arith.constant 0 : i32
    %c0_i32_1 = arith.constant 0 : i32
    return %c0_i32, %c0_i32_0, %arg0 : i32, i32, i32
  }
  func.func @transform_4(%arg0: i32) -> (i32, i32, i32) {
    %c0_i32 = arith.constant 0 : i32
    %c0_i32_0 = arith.constant 0 : i32
    %c0_i32_1 = arith.constant 0 : i32
    return %c0_i32, %c0_i32_0, %arg0 : i32, i32, i32
  }
  func.func @transform_5(%arg0: i32) -> (i32, i32) {
    %c0_i32 = arith.constant 0 : i32
    %c0_i32_0 = arith.constant 0 : i32
    return %c0_i32, %arg0 : i32, i32
  }
}

</mosaic_0001>

<bundles_post_ra>
// kernel: tpu_custom_call.1
= control target key start
LH: loop header
LB: loop body
LE: loop exit
PB: predicated region body
PF: predicated region fallthrough
CT: control target
= control target key end

     0   :  { %10 = vsyncpa [#allocation5], 0  ;;  %s7875_s0 = inlined_call_operand.vmem [shape: f32[4,3,8,1], index: 0, kind: input, shape index: {}]   ;;  %s7876_s1 = inlined_call_operand.vmem [shape: f32[4,8,1], index: 1, kind: input, shape index: {}]   ;;  %s7877_s2 = inlined_call_operand.vmem [shape: bf16[32,128], index: 2, kind: input, shape index: {}]   ;;  %s7878_s3 = inlined_call_operand.vmem [shape: f32[4,3,256], index: 3, kind: input, shape index: {}]   ;;  %s7879_s4 = inlined_call_operand.vmem [shape: f32[4,9,256], index: 4, kind: input, shape index: {}]   ;;  %s7880_s5 = inlined_call_operand.hbm [shape: f32[1,256], index: 5, kind: output, shape index: {}]  }
   0x1   :  { %12 = vsyncpa [#allocation5 + $0x1], 0  ;;  %s5452_s18 = smov 0   ;;  %s5454_s19 = smov 0  }
   0x2   :  { %s5456_s20 = smov 0   ;;  %s5458_s21 = smov 0  }
   0x3 LB: > { %s4690_s22 = sadd.s32 4294967295, %s5410_s21   ;;  %s4691_s23 = sadd.s32 4294967294, %s5410_s21   ;;  %s5410_s21 = sphi %s5458_s21, %s8239_s21   ;;  %s5406_s20 = sphi %s5456_s20, %s8238_s20   ;;  %s5402_s19 = sphi %s5454_s19, %s8237_s19   ;;  %s5398_s18 = sphi %s5452_s18, %s8236_s18  }
   0x4   : > { %s5475_s24 = sadd.s32 1, %s5410_s21   ;;  %s88_s25 = sadd.s32 1, %s5406_s20 }
   0x5   : > { %s85_s26 = ssub.s32 %s5410_s21, %s5475_s24  ;;  %p95_p0 = scmp.ne.s32.totalorder %s5406_s20, %s5402_s19 }
   0x6   : > { %p86_p1 = scmp.eq.s32.totalorder %s85_s26, 0  ;;  %p96_p2 = scmp.eq.s32.totalorder %s5410_s21, 0 }
   0x7   : > { %p151_p3 = scmp.eq.s32.totalorder %s4690_s22, 1  ;;  %p156_p4 = scmp.ne.s32.totalorder %s5402_s19, %s5398_s18 }
   0x8   : > { %s5488_s27 = scalar_select %p86_p1, %s5406_s20, %s88_s25  }
   0x9   : > { %p5490_p5 = por %p96_p2, %p95_p0  ;;  %p5494_p6 = por %p151_p3, %p95_p0 }
   0xa   : > { %p157_p7 = scmp.eq.s32.totalorder %s4691_s23, 1  ;;  %p4693_p9 = scmp.ge.s32.totalorder %s5410_s21, 2 }
   0xc   : > { %p5498_p8 = por %p157_p7, %p156_p4  ;;  %182 = sbr.rel (%p4693_p9) target bundleno = 37 (0x25), region = 28 }
  0x11   : > { %185 = sbr.rel (!%p5490_p5) target bundleno = 25 (0x19), region = 32  ;;  %s187_s6 = sand.u32 (%p5490_p5), 1, %s5406_s20  }
  0x12   : > { %s4695_s7 = sshll.u32 (%p5490_p5), %s5410_s21, 2  ;;  %s4694_s8 = sshll.u32 (%p5490_p5), %s187_s6, 4 }
  0x13   : > { %s191_s11 = scalar_lea.vmem (%p5490_p5), %s7878_s3, %s4695_s7  ;;  %s189_s12 = scalar_lea.vmem (%p5490_p5), [#allocation2], %s4694_s8 }
  0x14   : > { %v208_v0 = vld [vmem:[%s191_s11] sm:$0xf] (%p5490_p5)  ;;  %v210_v1 = vld [vmem:[%s191_s11 + $0x8] sm:$0xf] (%p5490_p5)  ;;  %v212_v2 = vld [vmem:[%s191_s11 + $0x10] sm:$0xf] (%p5490_p5) }
  0x15   : > { %209 = vst [vmem:[%s189_s12] sm:$0xf] (%p5490_p5), %v208_v0  ;;  %v214_v3 = vld [vmem:[%s191_s11 + $0x18] sm:$0xf] (%p5490_p5) }
  0x16   : > { %211 = vst [vmem:[%s189_s12 + $0x4] sm:$0xf] %v210_v1 }
  0x17   : > { %213 = vst [vmem:[%s189_s12 + $0x8] sm:$0xf] %v212_v2 }
  0x18   : > { %215 = vst [vmem:[%s189_s12 + $0xc] sm:$0xf] %v214_v3 }
  0x19 PF: > { %247 = sbr.rel (!%p5490_p5) target bundleno = 37 (0x25), region = 73  ;;  %s249_s13 = sand.u32 (%p5490_p5), 1, %s5406_s20  }
  0x1a   : > { %s4697_s14 = sshll.u32 (%p5490_p5), %s5410_s21, 3  ;;  %s4696_s15 = sshll.u32 (%p5490_p5), %s249_s13, 6 }
  0x1b   : > { %s253_s23 = scalar_lea.vmem (%p5490_p5), %s7879_s4, %s4697_s14  ;;  %s251_s25 = scalar_lea.vmem (%p5490_p5), [#allocation3], %s4696_s15 }
  0x1c   : > { %v296_v4 = vld [vmem:[%s253_s23] sm:$0xff] (%p5490_p5)  ;;  %v298_v5 = vld [vmem:[%s253_s23 + $0x10] sm:$0xff] (%p5490_p5) }
  0x1d   : > { %v300_v6 = vld [vmem:[%s253_s23 + $0x20] sm:$0xff] (%p5490_p5)  ;;  %297 = vst [vmem:[%s251_s25] sm:$0xff] (%p5490_p5), %v296_v4  ;;  %v302_v7 = vld [vmem:[%s253_s23 + $0x30] sm:$0xff] (%p5490_p5) }
  0x1e   : > { %299 = vst [vmem:[%s251_s25 + $0x8] sm:$0xff] %v298_v5  ;;  %v304_v8 = vld [vmem:[%s253_s23 + $0x40] sm:$0xff]  ;;  %v306_v9 = vld [vmem:[%s253_s23 + $0x50] sm:$0xff] }
  0x1f   : > { %301 = vst [vmem:[%s251_s25 + $0x10] sm:$0xff] %v300_v6  ;;  %v308_v10 = vld [vmem:[%s253_s23 + $0x60] sm:$0xff]  ;;  %v310_v11 = vld [vmem:[%s253_s23 + $0x70] sm:$0xff] }
  0x20   : > { %303 = vst [vmem:[%s251_s25 + $0x18] sm:$0xff] %v302_v7 }
  0x21   : > { %305 = vst [vmem:[%s251_s25 + $0x20] sm:$0xff] %v304_v8 }
  0x22   : > { %307 = vst [vmem:[%s251_s25 + $0x28] sm:$0xff] %v306_v9 }
  0x23   : > { %309 = vst [vmem:[%s251_s25 + $0x30] sm:$0xff] %v308_v10 }
  0x24   : > { %311 = vst [vmem:[%s251_s25 + $0x38] sm:$0xff] %v310_v11 }
  0x25 PF: > { %p4698_p10 = scmp.ge.s32.totalorder %s5410_s21, 1  ;;  %p316_p11 = scmp.lt.s32.totalorder %s5410_s21, 3 }
  0x27   : > { %p317_p12 = pnand %p4698_p10, %p316_p11 }
  0x29   : > { %320 = sbr.rel (%p317_p12) target bundleno = 2370 (0x942), region = 111 }
  0x2e   : > { %s5522_s26 = sand.u32 1, %s5402_s19   ;;  %v5527_v12 = vld [vmem:[%s7877_s2] sm:$0xf]  ;;  %v5532_v13 = vld [vmem:[%s7877_s2] sm:$0xf0]  ;;  %v7881_v14 = vlaneseq  ;;  %v5554_v18 = vmov 0.0  }
  0x2f   : > { %7905 = vst [vmem:[#allocation7_spill] sm:$0xff] %v5527_v12  ;;  %s4699_s9 = sshll.u32 %s5522_s26, 4  ;;  %s4700_s10 = sshll.u32 %s5522_s26, 6  ;;  %v5539_v15 = vld [vmem:[%s7877_s2 + $0x8] sm:$0xf] }
  0x30   : > { %7906 = vst [vmem:[#allocation8_spill] sm:$0xff] %v5532_v13  ;;  %v5544_v16 = vld [vmem:[%s7877_s2 + $0x8] sm:$0xf0]  ;;  %v5547_v17 = vand.u32 127, %v7881_v14  ;;  %s5549_s15 = scalar_lea.vmem [#allocation2], %s4699_s9  ;;  %s5551_s16 = scalar_lea.vmem [#allocation3], %s4700_s10 }
  0x31   : > { %7907 = vst [vmem:[#allocation9_spill] sm:$0xff] %v5539_v15  ;;  %s359_s17 = scalar_lea.vmem [#allocation4], %s5522_s26  ;;  %s5556_s23 = smov 0  }
  0x32   : > { %7908 = vst [vmem:[#allocation10_spill] sm:$0xff] %v5544_v16 }
  0x33 LB: >> { %7909 = vst [vmem:[#allocation11_spill] sm:$0xff] %v5414_v18  ;;  %v7882_v19 = vmov 0   ;;  %s381_s25 = smul.u32 24, %s5418_s23  ;;  %s4701_s28 = sshll.u32 %s5418_s23, 4  ;;  %v7910_v14 = vlaneseq  ;;  %vm2078_vm2 = vcmask 261120   ;;  %s5418_s23 = sphi %s5556_s23, %s372_s23   ;;  %v5414_v18 = vphi %v5554_v18, %v8235_v18  }
  0x34   : >> { %5108 = vset.pattern.permute.xlu0 %v7882_v19  ;;  %5109 = vset.pattern.permute.xlu1 %v7882_v19  ;;  %s375_s6 = scalar_lea.vmem %s5551_s16, %s4701_s28 [#allocation3]  ;;  %s4702_s10 = sshll.u32 %s5418_s23, 2 }
  0x35   : >> { %s382_s9 = scalar_lea.vmem %s7875_s0, %s381_s25  ;;  %v376_v23 = vld [vmem:[%s375_s6] sm:$0xff]  ;;  %v5573_v25 = vshrl.u32 %v7910_v14, 7  ;;  %s379_s11 = scalar_lea.vmem %s5549_s15, %s4702_s10 [#allocation2]  ;;  %v5339_v37 = vld [vmem:[%s375_s6 + $0x8] ss:$0 sm:$0xff] }
  0x36   : >> { %v383_v20 = vld [vmem:[%s382_s9] sm:$0xff]  ;;  %v385_v21 = vld [vmem:[%s382_s9 + $0x10] sm:$0xff]  ;;  %v384_v22 = vld [vmem:[%s382_s9 + $0x8] sm:$0xff]  ;;  %v389_v27 = vperm.slane %v376_v23, 0  ;;  %v420_v29 = vperm.slane %v376_v23, 3  ;;  %v438_v30 = vperm.slane %v376_v23, 6 }
  0x37   : >> { %392 = vperm.xlu0 %5108, %v383_v20   ;;  %407 = vperm.xlu1 %5109, %v385_v21   ;;  %v5577_v26 = vadd.s32 8, %v5573_v25  ;;  %v5581_v28 = vadd.s32 16, %v5573_v25  ;;  %v404_v31 = vperm.slane %v376_v23, 2  ;;  %v425_v32 = vperm.slane %v376_v23, 5  ;;  %v380_v38 = vld [vmem:[%s379_s11] sm:$0x7] }
  0x38   : >> { %v396_v33 = vperm.slane %v376_v23, 1  ;;  %v422_v34 = vperm.slane %v376_v23, 4  ;;  %v440_v35 = vperm.slane %v376_v23, 7  ;;  %v412_v49 = vperm.slane %v380_v38, 0  ;;  %v7911_v15 = vld [vmem:[#allocation9_spill] sm:$0xff]  ;;  %v7913_v12 = vld [vmem:[#allocation7_spill] sm:$0xff] }
  0x39   : >> { %5111 = vset.pattern.permute.xlu2 %v5577_v26  ;;  %v428_v50 = vperm.slane %v380_v38, 1  ;;  %v446_v54 = vperm.slane %v380_v38, 2  ;;  %v5625_v38 = vadd.s32 72, %v5573_v25  ;;  %v7912_v16 = vld [vmem:[#allocation10_spill] sm:$0xff]  ;;  %v7914_v13 = vld [vmem:[#allocation8_spill] sm:$0xff]  ;;  %s4703_s12 = sshll.u32 %s5418_s23, 3 }
  0x3a   : >> { %s387_s25 = scalar_lea.vmem %s7876_s1, %s4703_s12  ;;  %s372_s23 = sadd.s32 1, %s5418_s23  }
  0x3b   : >> { %p369_p13 = scmp.ge.s32.totalorder %s372_s23, 4  }
  0x3c   : > { %s4592_s7 = scalar_lea.hbm (%p369_p13), %s7880_s5, %s4690_s22  ;;  %s4594_s8 = sshll.u32 (%p369_p13), %s359_s17, 4  ;;  %s4595_s8 = int_to_ptr.vmem [resolvable:$true] %s4594_s8 }
  0x3d   : > { %s4596_s9 = sshll.u32 (%p369_p13), %s4592_s7, 4  ;;  %s4584_s23 = scalar_lea.sflag (%p369_p13), [#allocation5], %s5522_s26  ;;  %s4597_s9 = int_to_ptr.hbm [resolvable:$true] %s4596_s9 }
  0x3e   : > { %s5354_s10 = sshra.s32 (%p369_p13), %s4597_s9, 4  ;;  %s5360_s12 = scalar_lea.hbm (%p369_p13), %s7880_s5, 2  ;;  %s5355_s10 = int_to_ptr.hbm [resolvable:$true] %s5354_s10 }
  0x3f   : >> { %399 = vperm.xlu0 %5108, %v384_v22   ;;  %5110 = vset.pattern.permute.xlu1 %v5573_v25  ;;  %s5356_s15 = scalar_lea.hbm (%p369_p13), %s5355_s10, 1  ;;  %p5361_p3 = scmp.lt.s32.totalorder (%p369_p13), %s5355_s10, %s7880_s5 }
  0x40   : > { %p5357_p0 = scmp.ne.s32.totalorder (%p369_p13), %s5355_s10, %s5356_s15  ;;  %p5362_p4 = scmp.lt.s32.totalorder (%p369_p13), %s5360_s12, %s5356_s15 }
  0x42   : > { %p5358_p1 = pnand (%p369_p13), %p5357_p0, %p5494_p6  ;;  %p5363_p5 = por (%p369_p13), %p5362_p4, %p5361_p3 }
  0x44   : > { %p5359_p2 = pneg (%p369_p13), %p5358_p1 }
  0x46   : > { %p5364_p7 = pnand (%p369_p13), %p5363_p5, %p5359_p2 }
  0x47   : >> { %5125 = vset.pattern.permute.xlu0 %v5581_v28 }
  0xa9   : >> { %v393_v24 = vpop.permute.xlu0 %392  ;;  %v408_v36 = vpop.permute.xlu1 %407 }
  0xaa   : >> { %v395_v39 = vmul.f32 %v393_v24, %v389_v27  ;;  %v421_v40 = vmul.f32 %v420_v29, %v393_v24  ;;  %v439_v41 = vmul.f32 %v438_v30, %v393_v24  ;;  %v410_v43 = vmul.f32 %v408_v36, %v404_v31 }
  0xab   : >> { %v426_v44 = vmul.f32 %v425_v32, %v408_v36  ;;  %v444_v48 = vmul.f32 %v5339_v37, %v408_v36  ;;  %v5613_v36 = vadd.s32 40, %v5573_v25  ;;  %v5616_v37 = vadd.s32 48, %v5573_v25 }
  0xb1   : >> { %v400_v42 = vpop.permute.xlu0 %399 }
  0xb2   : >> { %v402_v45 = vmul.f32 %v400_v42, %v396_v33  ;;  %v423_v46 = vmul.f32 %v422_v34, %v400_v42  ;;  %v441_v47 = vmul.f32 %v440_v35, %v400_v42  ;;  %v5598_v33 = vadd.s32 56, %v5573_v25 }
  0xb3   : >> { %v5601_v34 = vadd.s32 32, %v5573_v25  ;;  %v5610_v35 = vadd.s32 96, %v5573_v25  ;;  %v5649_v42 = vadd.s32 112, %v5573_v25 }
  0xb4   : >> { %v403_v51 = vadd.f32 %v402_v45, %v395_v39  ;;  %v424_v52 = vadd.f32 %v423_v46, %v421_v40  ;;  %v442_v53 = vadd.f32 %v441_v47, %v439_v41  ;;  %v5637_v40 = vadd.s32 80, %v5573_v25 }
  0xb5   : >> { %v5640_v41 = vadd.s32 88, %v5573_v25  ;;  %v4838_v45 = vor.u32 %v7914_v13, %v7913_v12  ;;  %v7929_v12 = vmov 0.0  }
  0xb6   : >> { %v411_v55 = vadd.f32 %v410_v43, %v403_v51  ;;  %v427_v56 = vadd.f32 %v426_v44, %v424_v52  ;;  %v445_v57 = vadd.f32 %v444_v48, %v442_v53  ;;  %v5658_v43 = vadd.s32 120, %v5573_v25 }
  0xb7   : >> { %v4842_v44 = vor.u32 %v7912_v16, %v7911_v15  ;;  %v5676_v48 = vadd.s32 24, %v5573_v25 }
  0xb8   : >> { %v413_v58 = vadd.f32 %v412_v49, %v411_v55  ;;  %v429_v59 = vadd.f32 %v428_v50, %v427_v56  ;;  %v447_v60 = vadd.f32 %v446_v54, %v445_v57  ;;  %v7884_v50 = vmov 0.0  }
  0xb9   : >> { %2277 = vmatpush.bf16.msra.mxu0 %v4842_v44  ;;  %5039 = vmatpush.bf16.msra.mxu1 %v4842_v44 }
  0xba   : >> { %v4704_v61 = vadd.f32 0.4, %v413_v58  ;;  %v4705_v62 = vadd.f32 0.4, %v429_v59  ;;  %v4706_v63 = vadd.f32 0.4, %v447_v60  ;;  %5040 = vmatpush.bf16.msra.mxu2 %v4842_v44  ;;  %5041 = vmatpush.bf16.msra.mxu3 %v4842_v44 }
  0xbb   : >> { %v5696_v59 = vadd.s32 64, %v5573_v25 }
  0xbc   : >> { %v415_v0 = vmul.f32 20.0, %v4704_v61  ;;  %v431_v1 = vmul.f32 20.0, %v4705_v62  ;;  %v449_v2 = vmul.f32 20.0, %v4706_v63  ;;  %v5720_v63 = vadd.s32 104, %v5573_v25 }
  0xbd   : >> { %2278 = vmatpush.bf16.msra.mxu0 %v4838_v45  ;;  %5042 = vmatpush.bf16.msra.mxu1 %v4838_v45 }
  0xbe   : >> { %v416_v3 = vfloor.f32 %v415_v0  ;;  %v432_v4 = vfloor.f32 %v431_v1  ;;  %v450_v5 = vfloor.f32 %v449_v2  ;;  %5043 = vmatpush.bf16.msra.mxu2 %v4838_v45  ;;  %5044 = vmatpush.bf16.msra.mxu3 %v4838_v45 }
  0xc0   : >> { %v417_v6 = vmax.f32 %v416_v3, 0.0  ;;  %v433_v7 = vmax.f32 %v432_v4, 0.0  ;;  %v451_v10 = vmax.f32 %v450_v5, 0.0 }
  0xc2   : >> { %v418_v8 = vmin.f32 %v417_v6, 15.0  ;;  %v434_v9 = vmin.f32 %v433_v7, 15.0  ;;  %v452_v22 = vmin.f32 %v451_v10, 15.0 }
  0xc4   : >> { %v5046_v11 = vcvt.f32.s32 %v418_v8  ;;  %v5048_v20 = vcvt.f32.s32 %v434_v9  ;;  %v5050_v24 = vcvt.f32.s32 %v452_v22 }
  0xc6   : >> { %v436_v21 = vmul.u32 16, %v5046_v11 }
  0xc8   : >> { %v437_v23 = vadd.s32 %v5048_v20, %v436_v21 }
  0xca   : >> { %v454_v27 = vmul.u32 16, %v437_v23 }
  0xcc   : >> { %v455_v29 = vadd.s32 %v5050_v24, %v454_v27 }
  0xce   : >> { %v5586_v30 = vshra.s32 %v455_v29, 7  ;;  %v5667_v46 = vand.u32 127, %v455_v29 }
  0xd0   : >> { %v5589_v31 = vperm.slane %v5586_v30, 0  ;;  %v5592_v32 = vperm.slane %v5586_v30, 1  ;;  %v5631_v39 = vperm.slane %v5586_v30, 6  ;;  %v5670_v47 = vperm.slane %v5667_v46, 3 }
  0xd1   : >> { %v5702_v60 = vperm.slane %v5586_v30, 2  ;;  %v5708_v61 = vperm.slane %v5586_v30, 7  ;;  %v5714_v62 = vperm.slane %v5667_v46, 4  ;;  %v5770_v10 = vperm.slane %v5586_v30, 3 }
  0xd2   : >> { %572 = vperm.xlu0 %5125, %v5592_v32   ;;  %469 = vperm.xlu2 %5111, %v5589_v31   ;;  %7915 = vst [vmem:[#allocation12_spill] sm:$0xff] %v5670_v47  ;;  %v5782_v22 = vperm.slane %v5667_v46, 0  ;;  %v5794_v29 = vperm.slane %v5667_v46, 5 }
  0xd3   : >> { %463 = vperm.xlu1 %5110, %v5589_v31   ;;  %7916 = vst [vmem:[#allocation13_spill] sm:$0xff] %v5714_v62 }
  0xd4   : >> { %7918 = vst [vmem:[#allocation15_spill] sm:$0xff] %v5782_v22 }
  0xd5   : >> { %7920 = vst [vmem:[#allocation17_spill] sm:$0xff] %v5794_v29 }
  0xda   : >> { %5130 = vset.pattern.permute.xlu0 %v5598_v33  ;;  %5112 = vset.pattern.permute.xlu2 %v5581_v28 }
  0xdb   : >> { %5113 = vset.pattern.permute.xlu1 %v5601_v34 }
  0xe2   : >> { %602 = vperm.xlu0 %5130, %v5592_v32   ;;  %475 = vperm.xlu2 %5112, %v5589_v31  }
  0xe3   : >> { %487 = vperm.xlu1 %5113, %v5589_v31  }
  0xea   : >> { %5135 = vset.pattern.permute.xlu0 %v5610_v35  ;;  %5114 = vset.pattern.permute.xlu2 %v5613_v36 }
  0xeb   : >> { %5115 = vset.pattern.permute.xlu1 %v5616_v37 }
  0xf2   : >> { %632 = vperm.xlu0 %5135, %v5592_v32   ;;  %493 = vperm.xlu2 %5114, %v5589_v31  }
  0xf3   : >> { %499 = vperm.xlu1 %5115, %v5589_v31  }
  0xfa   : >> { %5192 = vset.pattern.permute.xlu0 %v5581_v28  ;;  %5116 = vset.pattern.permute.xlu2 %v5598_v33 }
  0xfb   : >> { %5117 = vset.pattern.permute.xlu1 %v5625_v38 }
 0x102   : >> { %1057 = vperm.xlu0 %5192, %v5631_v39   ;;  %505 = vperm.xlu2 %5116, %v5589_v31  }
 0x103   : >> { %517 = vperm.xlu1 %5117, %v5589_v31  }
 0x10a   : >> { %5197 = vset.pattern.permute.xlu0 %v5598_v33  ;;  %5118 = vset.pattern.permute.xlu2 %v5637_v40 }
 0x10b   : >> { %5119 = vset.pattern.permute.xlu1 %v5640_v41 }
 0x112   : >> { %1087 = vperm.xlu0 %5197, %v5631_v39   ;;  %523 = vperm.xlu2 %5118, %v5589_v31  }
 0x113   : >> { %529 = vperm.xlu1 %5119, %v5589_v31  }
 0x11a   : >> { %5202 = vset.pattern.permute.xlu0 %v5610_v35  ;;  %5120 = vset.pattern.permute.xlu2 %v5610_v35 }
 0x11b   : >> { %5121 = vset.pattern.permute.xlu1 %v5649_v42 }
 0x122   : >> { %1117 = vperm.xlu0 %5202, %v5631_v39   ;;  %535 = vperm.xlu2 %5120, %v5589_v31  }
 0x123   : >> { %547 = vperm.xlu1 %5121, %v5589_v31  }
 0x12a   : >> { %5259 = vset.pattern.permute.xlu0 %v5581_v28  ;;  %5122 = vset.pattern.permute.xlu2 %v5658_v43 }
 0x12b   : >> { %5123 = vset.pattern.permute.xlu1 %v5573_v25 }
 0x12c   : >> { %v470_v49 = vpop.permute.xlu2 %469 }
 0x12d   : >> { %vm1235_vm0 = vcmp.eq.s32.totalorder %v5547_v17, %v470_v49 }
 0x12e   : >> { %v4708_v51 = vsel %vm1235_vm0, 1.0, %v7884_v50 }
 0x12f   : >> { %v1619_v53 = vpack.c.bf16 %v4708_v51, %v4708_v51 }
 0x131   : >> { %v1875_v56 = vunpack.c.l.b16 %v1619_v53 }
 0x132   : >> { %2908 = vperm.xlu0 %5259, %v5670_v47   ;;  %553 = vperm.xlu2 %5122, %v5589_v31  }
 0x133   : >> { %560 = vperm.xlu1 %5123, %v5592_v32  }
 0x13a   : >> { %5264 = vset.pattern.permute.xlu0 %v5598_v33  ;;  %5124 = vset.pattern.permute.xlu2 %v5577_v26 }
 0x13b   : >> { %5126 = vset.pattern.permute.xlu1 %v5676_v48 }
 0x13c   : >> { %v5737_v0 = vpop.permute.xlu2 %475 }
 0x142   : >> { %2938 = vperm.xlu0 %5264, %v5670_v47   ;;  %566 = vperm.xlu2 %5124, %v5592_v32  }
 0x143   : >> { %578 = vperm.xlu1 %5126, %v5592_v32  }
 0x144   : >> { %v5747_v2 = vpop.permute.xlu0 %572 }
 0x145   : >> { %v464_v52 = vpop.permute.xlu1 %463 }
 0x146   : >> { %vm1234_vm1 = vcmp.eq.s32.totalorder %v5547_v17, %v464_v52 }
 0x147   : >> { %v4707_v54 = vsel %vm1234_vm1, 1.0, %v7884_v50 }
 0x148   : >> { %v1618_v55 = vpack.c.bf16 %v4707_v54, %v4707_v54 }
 0x14a   : >> { %v1874_v57 = vunpack.c.l.b16 %v1618_v55  ;;  %5269 = vset.pattern.permute.xlu0 %v5610_v35  ;;  %5127 = vset.pattern.permute.xlu2 %v5601_v34 }
 0x14b   : >> { %5128 = vset.pattern.permute.xlu1 %v5613_v36 }
 0x14c   : >> { %v2002_v58 = vpack.c.b16 %v1875_v56, %v1874_v57  ;;  %v5742_v1 = vpop.permute.xlu2 %493 }
 0x14e   : >> { %4843 = vmatmul.msk.bf16.vlgmr.msra.gmra.mxu0 %vm2078_vm2, %v2002_v58 }
 0x152   : >> { %2968 = vperm.xlu0 %5269, %v5670_v47   ;;  %584 = vperm.xlu2 %5127, %v5592_v32  }
 0x153   : >> { %590 = vperm.xlu1 %5128, %v5592_v32  }
 0x154   : >> { %v5754_v4 = vpop.permute.xlu0 %602 }
 0x155   : >> { %v5758_v6 = vpop.permute.xlu1 %487 }
 0x15a   : >> { %5270 = vset.pattern.permute.xlu0 %v5577_v26  ;;  %5129 = vset.pattern.permute.xlu2 %v5616_v37 }
 0x15b   : >> { %5131 = vset.pattern.permute.xlu1 %v5696_v59 }
 0x15c   : >> { %v5749_v3 = vpop.permute.xlu2 %505 }
 0x162   : >> { %663 = vperm.xlu0 %5270, %v5702_v60   ;;  %596 = vperm.xlu2 %5129, %v5592_v32  }
 0x163   : >> { %608 = vperm.xlu1 %5131, %v5592_v32  }
 0x164   : >> { %v5763_v7 = vpop.permute.xlu0 %632 }
 0x165   : >> { %7917 = vst [vmem:[#allocation14_spill] sm:$0xff] %v5763_v7  ;;  %v5767_v9 = vpop.permute.xlu1 %499 }
 0x16a   : >> { %1148 = vperm.xlu0 %5270, %v5708_v61   ;;  %5132 = vset.pattern.permute.xlu2 %v5625_v38 }
 0x16b   : >> { %5133 = vset.pattern.permute.xlu1 %v5637_v40 }
 0x16c   : >> { %v5756_v5 = vpop.permute.xlu2 %523 }
 0x172   : >> { %2999 = vperm.xlu0 %5270, %v5714_v62   ;;  %614 = vperm.xlu2 %5132, %v5592_v32  }
 0x173   : >> { %620 = vperm.xlu1 %5133, %v5592_v32  }
 0x174   : >> { %v5775_v11 = vpop.permute.xlu0 %1057 }
 0x175   : >> { %v5779_v21 = vpop.permute.xlu1 %517 }
 0x17a   : >> { %5275 = vset.pattern.permute.xlu0 %v5616_v37  ;;  %5134 = vset.pattern.permute.xlu2 %v5640_v41 }
 0x17b   : >> { %5136 = vset.pattern.permute.xlu1 %v5720_v63 }
 0x17c   : >> { %v5765_v8 = vpop.permute.xlu2 %535 }
 0x182   : >> { %693 = vperm.xlu0 %5275, %v5702_v60   ;;  %626 = vperm.xlu2 %5134, %v5592_v32  }
 0x183   : >> { %638 = vperm.xlu1 %5136, %v5592_v32  }
 0x184   : >> { %v5787_v23 = vpop.permute.xlu0 %1087 }
 0x185   : >> { %7919 = vst [vmem:[#allocation16_spill] sm:$0xff] %v5787_v23  ;;  %v5791_v27 = vpop.permute.xlu1 %529 }
 0x18a   : >> { %1178 = vperm.xlu0 %5275, %v5708_v61   ;;  %5137 = vset.pattern.permute.xlu2 %v5649_v42 }
 0x18b   : >> { %5138 = vset.pattern.permute.xlu1 %v5658_v43 }
 0x18c   : >> { %v5777_v20 = vpop.permute.xlu2 %553 }
 0x192   : >> { %3029 = vperm.xlu0 %5275, %v5714_v62   ;;  %644 = vperm.xlu2 %5137, %v5592_v32  }
 0x193   : >> { %650 = vperm.xlu1 %5138, %v5592_v32  }
 0x194   : >> { %v5799_v32 = vpop.permute.xlu0 %1117 }
 0x195   : >> { %7921 = vst [vmem:[#allocation18_spill] sm:$0xff] %v5799_v32  ;;  %v5803_v45 = vpop.permute.xlu1 %547 }
 0x19a   : >> { %5280 = vset.pattern.permute.xlu0 %v5640_v41  ;;  %5139 = vset.pattern.permute.xlu2 %v5573_v25 }
 0x19b   : >> { %5140 = vset.pattern.permute.xlu1 %v5581_v28 }
 0x19c   : >> { %v5789_v24 = vpop.permute.xlu2 %566 }
 0x1a2   : >> { %723 = vperm.xlu0 %5280, %v5702_v60   ;;  %657 = vperm.xlu2 %5139, %v5702_v60  }
 0x1a3   : >> { %669 = vperm.xlu1 %5140, %v5702_v60  }
 0x1a4   : >> { %v5808_v49 = vpop.permute.xlu0 %2908 }
 0x1a5   : >> { %7922 = vst [vmem:[#allocation19_spill] sm:$0xff] %v5808_v49  ;;  %v5812_v52 = vpop.permute.xlu1 %560 }
 0x1aa   : >> { %1208 = vperm.xlu0 %5280, %v5708_v61   ;;  %5141 = vset.pattern.permute.xlu2 %v5676_v48 }
 0x1ab   : >> { %5142 = vset.pattern.permute.xlu1 %v5601_v34 }
 0x1ac   : >> { %v5801_v44 = vpop.permute.xlu2 %584 }
 0x1b2   : >> { %3059 = vperm.xlu0 %5280, %v5714_v62   ;;  %675 = vperm.xlu2 %5141, %v5702_v60  }
 0x1b3   : >> { %681 = vperm.xlu1 %5142, %v5702_v60  }
 0x1b4   : >> { %v5817_v53 = vpop.permute.xlu0 %2938 }
 0x1b5   : >> { %7923 = vst [vmem:[#allocation20_spill] sm:$0xff] %v5817_v53  ;;  %v5821_v55 = vpop.permute.xlu1 %578 }
 0x1ba   : >> { %5285 = vset.pattern.permute.xlu0 %v5573_v25  ;;  %5143 = vset.pattern.permute.xlu2 %v5613_v36 }
 0x1bb   : >> { %5144 = vset.pattern.permute.xlu1 %v5598_v33 }
 0x1bc   : >> { %v5810_v51 = vpop.permute.xlu2 %596 }
 0x1c2   : >> { %754 = vperm.xlu0 %5285, %v5770_v10   ;;  %687 = vperm.xlu2 %5143, %v5702_v60  }
 0x1c3   : >> { %699 = vperm.xlu1 %5144, %v5702_v60  }
 0x1c4   : >> { %v5826_v56 = vpop.permute.xlu0 %2968 }
 0x1c5   : >> { %7925 = vst [vmem:[#allocation22_spill] sm:$0xff] %v5826_v56  ;;  %v5830_v58 = vpop.permute.xlu1 %590 }
 0x1ca   : >> { %2605 = vperm.xlu0 %5285, %v5782_v22   ;;  %5145 = vset.pattern.permute.xlu2 %v5696_v59 }
 0x1cb   : >> { %5146 = vset.pattern.permute.xlu1 %v5625_v38 }
 0x1cc   : >> { %v5819_v54 = vpop.permute.xlu2 %614 }
 0x1cd   : >> { %7924 = vst [vmem:[#allocation21_spill] sm:$0xff] %v5819_v54 }
 0x1d2   : >> { %3090 = vperm.xlu0 %5285, %v5794_v29   ;;  %705 = vperm.xlu2 %5145, %v5702_v60  }
 0x1d3   : >> { %711 = vperm.xlu1 %5146, %v5702_v60  }
 0x1d4   : >> { %v664_v14 = vpop.permute.xlu0 %663 }
 0x1d5   : >> { %v5837_v50 = vpop.permute.xlu1 %608  ;;  %vm1267_vm3 = vcmp.eq.s32.totalorder %v5547_v17, %v664_v14 }
 0x1d6   : >> { %7928 = vst [vmem:[#allocation25_spill] sm:$0xff] %v5837_v50  ;;  %v4740_v13 = vsel %vm1267_vm3, 1.0, %v7929_v12 }
 0x1d7   : >> { %v1651_v16 = vpack.c.bf16 %v4740_v13, %v4740_v13 }
 0x1d9   : >> { %v1907_v56 = vunpack.c.l.b16 %v1651_v16 }
 0x1da   : >> { %5290 = vset.pattern.permute.xlu0 %v5613_v36  ;;  %5147 = vset.pattern.permute.xlu2 %v5637_v40 }
 0x1db   : >> { %5148 = vset.pattern.permute.xlu1 %v5610_v35 }
 0x1dc   : >> { %v5828_v57 = vpop.permute.xlu2 %626  ;;  %v5854_v13 = vpop.permute.xlu0 %1148 }
 0x1dd   : >> { %7926 = vst [vmem:[#allocation23_spill] sm:$0xff] %v5828_v57 }
 0x1de   : >> { %7932 = vst [vmem:[#allocation28_spill] sm:$0xff] %v5854_v13 }
 0x1e2   : >> { %784 = vperm.xlu0 %5290, %v5770_v10   ;;  %717 = vperm.xlu2 %5147, %v5702_v60  }
 0x1e3   : >> { %729 = vperm.xlu1 %5148, %v5702_v60  }
 0x1e5   : >> { %v5844_v18 = vpop.permute.xlu1 %620 }
 0x1e6   : >> { %7930 = vst [vmem:[#allocation26_spill] sm:$0xff] %v5844_v18 }
 0x1ea   : >> { %2635 = vperm.xlu0 %5290, %v5782_v22   ;;  %5149 = vset.pattern.permute.xlu2 %v5720_v63 }
 0x1eb   : >> { %5150 = vset.pattern.permute.xlu1 %v5649_v42 }
 0x1ec   : >> { %v5835_v19 = vpop.permute.xlu2 %644 }
 0x1ed   : >> { %7927 = vst [vmem:[#allocation24_spill] sm:$0xff] %v5835_v19 }
 0x1f2   : >> { %3120 = vperm.xlu0 %5290, %v5794_v29   ;;  %735 = vperm.xlu2 %5149, %v5702_v60  }
 0x1f3   : >> { %741 = vperm.xlu1 %5150, %v5702_v60  }
 0x1f5   : >> { %v5851_v47 = vpop.permute.xlu1 %638 }
 0x1f6   : >> { %7931 = vst [vmem:[#allocation27_spill] sm:$0xff] %v5851_v47 }
 0x1fa   : >> { %5295 = vset.pattern.permute.xlu0 %v5637_v40  ;;  %5151 = vset.pattern.permute.xlu2 %v5658_v43 }
 0x1fb   : >> { %5152 = vset.pattern.permute.xlu1 %v5577_v26 }
 0x1fc   : >> { %v658_v15 = vpop.permute.xlu2 %657 }
 0x1fd   : >> { %vm1266_vm4 = vcmp.eq.s32.totalorder %v5547_v17, %v658_v15 }
 0x1fe   : >> { %v4739_v49 = vsel %vm1266_vm4, 1.0, %v7929_v12 }
 0x1ff   : >> { %v1650_v53 = vpack.c.bf16 %v4739_v49, %v4739_v49  ;;  %v5861_v49 = vpop.permute.xlu0 %2999 }
 0x200   : >> { %7934 = vst [vmem:[#allocation30_spill] sm:$0xff] %v5861_v49 }
 0x201   : >> { %v1906_v62 = vunpack.c.l.b16 %v1650_v53 }
 0x202   : >> { %814 = vperm.xlu0 %5295, %v5770_v10   ;;  %747 = vperm.xlu2 %5151, %v5702_v60  }
 0x203   : >> { %760 = vperm.xlu1 %5152, %v5770_v10   ;;  %v2018_v14 = vpack.c.b16 %v1907_v56, %v1906_v62 }
 0x205   : >> { %4859 = vmatmul.msk.bf16.vlgmr.msra.gmra.mxu1 %vm2078_vm2, %v2018_v14  ;;  %v5859_v15 = vpop.permute.xlu1 %650 }
 0x206   : >> { %7933 = vst [vmem:[#allocation29_spill] sm:$0xff] %v5859_v15 }
 0x207   : >> { %v694_v14 = vpop.permute.xlu0 %693 }
 0x208   : >> { %vm1272_vm9 = vcmp.eq.s32.totalorder %v5547_v17, %v694_v14 }
 0x20a   : >> { %2665 = vperm.xlu0 %5295, %v5782_v22   ;;  %5153 = vset.pattern.permute.xlu2 %v5581_v28 }
 0x20b   : >> { %5154 = vset.pattern.permute.xlu1 %v5676_v48 }
 0x20c   : >> { %v676_v16 = vpop.permute.xlu2 %675 }
 0x20d   : >> { %vm1269_vm5 = vcmp.eq.s32.totalorder %v5547_v17, %v676_v16 }
 0x20e   : >> { %v4742_v60 = vsel %vm1269_vm5, 1.0, %v7929_v12 }
 0x20f   : >> { %v1653_v53 = vpack.c.bf16 %v4742_v60, %v4742_v60  ;;  %v5875_v60 = vpop.permute.xlu0 %1178 }
 0x210   : >> { %7935 = vst [vmem:[#allocation31_spill] sm:$0xff] %v5875_v60 }
 0x211   : >> { %v1909_v32 = vunpack.c.l.b16 %v1653_v53 }
 0x212   : >> { %3150 = vperm.xlu0 %5295, %v5794_v29   ;;  %766 = vperm.xlu2 %5153, %v5770_v10  }
 0x213   : >> { %772 = vperm.xlu1 %5154, %v5770_v10  }
 0x215   : >> { %v670_v62 = vpop.permute.xlu1 %669 }
 0x216   : >> { %vm1268_vm6 = vcmp.eq.s32.totalorder %v5547_v17, %v670_v62 }
 0x217   : >> { %v4741_v56 = vsel %vm1268_vm6, 1.0, %v7929_v12 }
 0x218   : >> { %v1652_v13 = vpack.c.bf16 %v4741_v56, %v4741_v56 }
 0x21a   : >> { %v1908_v49 = vunpack.c.l.b16 %v1652_v13  ;;  %5300 = vset.pattern.permute.xlu0 %v5658_v43  ;;  %5155 = vset.pattern.permute.xlu2 %v5601_v34 }
 0x21b   : >> { %5156 = vset.pattern.permute.xlu1 %v5616_v37 }
 0x21c   : >> { %v2019_v16 = vpack.c.b16 %v1909_v32, %v1908_v49  ;;  %v688_v19 = vpop.permute.xlu2 %687 }
 0x21d   : >> { %vm1271_vm7 = vcmp.eq.s32.totalorder %v5547_v17, %v688_v19  ;;  %v5886_v19 = vpop.permute.xlu0 %3029 }
 0x21e   : >> { %4860 = vmatmul.msk.bf16.gmra.mxu1 %vm2078_vm2, %v2019_v16  ;;  %v4744_v13 = vsel %vm1271_vm7, 1.0, %v7929_v12  ;;  %7936 = vst [vmem:[#allocation32_spill] sm:$0xff] %v5886_v19 }
 0x21f   : >> { %v1655_v53 = vpack.c.bf16 %v4744_v13, %v4744_v13  ;;  %v4745_v13 = vsel %vm1272_vm9, 1.0, %v7929_v12 }
 0x221   : >> { %v1911_v56 = vunpack.c.l.b16 %v1655_v53 }
 0x222   : >> { %844 = vperm.xlu0 %5300, %v5770_v10   ;;  %778 = vperm.xlu2 %5155, %v5770_v10  }
 0x223   : >> { %790 = vperm.xlu1 %5156, %v5770_v10  }
 0x225   : >> { %v682_v62 = vpop.permute.xlu1 %681 }
 0x226   : >> { %vm1270_vm8 = vcmp.eq.s32.totalorder %v5547_v17, %v682_v62  ;;  %v724_v62 = vpop.permute.xlu0 %723 }
 0x227   : >> { %v4743_v32 = vsel %vm1270_vm8, 1.0, %v7929_v12  ;;  %vm1277_vm14 = vcmp.eq.s32.totalorder %v5547_v17, %v724_v62 }
 0x228   : >> { %v1654_v49 = vpack.c.bf16 %v4743_v32, %v4743_v32  ;;  %v1656_v32 = vpack.c.bf16 %v4745_v13, %v4745_v13  ;;  %v5903_v13 = vperm.slane %v5586_v30, 4 }
 0x22a   : >> { %v1910_v16 = vunpack.c.l.b16 %v1654_v49  ;;  %2695 = vperm.xlu0 %5300, %v5782_v22   ;;  %5157 = vset.pattern.permute.xlu2 %v5598_v33 }
 0x22b   : >> { %5158 = vset.pattern.permute.xlu1 %v5696_v59 }
 0x22c   : >> { %v2020_v60 = vpack.c.b16 %v1911_v56, %v1910_v16  ;;  %v1912_v16 = vunpack.c.l.b16 %v1656_v32  ;;  %v706_v19 = vpop.permute.xlu2 %705 }
 0x22d   : >> { %vm1274_vm11 = vcmp.eq.s32.totalorder %v5547_v17, %v706_v19 }
 0x22e   : >> { %4861 = vmatmul.msk.bf16.gmra.mxu1 %vm2078_vm2, %v2020_v60 }
 0x232   : >> { %3180 = vperm.xlu0 %5300, %v5794_v29   ;;  %796 = vperm.xlu2 %5157, %v5770_v10   ;;  %v5899_v29 = vpop.permute.xlu0 %1208 }
 0x233   : >> { %802 = vperm.xlu1 %5158, %v5770_v10   ;;  %7937 = vst [vmem:[#allocation33_spill] sm:$0xff] %v5899_v29 }
 0x235   : >> { %v700_v53 = vpop.permute.xlu1 %699 }
 0x236   : >> { %vm1273_vm10 = vcmp.eq.s32.totalorder %v5547_v17, %v700_v53  ;;  %v4747_v53 = vsel %vm1274_vm11, 1.0, %v7929_v12 }
 0x237   : >> { %v4746_v49 = vsel %vm1273_vm10, 1.0, %v7929_v12 }
 0x238   : >> { %v1657_v56 = vpack.c.bf16 %v4746_v49, %v4746_v49  ;;  %v1658_v49 = vpack.c.bf16 %v4747_v53, %v4747_v53 }
 0x23a   : >> { %v1913_v60 = vunpack.c.l.b16 %v1657_v56  ;;  %5305 = vset.pattern.permute.xlu0 %v5601_v34  ;;  %5159 = vset.pattern.permute.xlu2 %v5625_v38 }
 0x23b   : >> { %5160 = vset.pattern.permute.xlu1 %v5640_v41 }
 0x23c   : >> { %v2021_v14 = vpack.c.b16 %v1913_v60, %v1912_v16  ;;  %v5913_v16 = vperm.slane %v5667_v46, 1  ;;  %v5915_v60 = vpop.permute.xlu0 %3059  ;;  %v718_v22 = vpop.permute.xlu2 %717 }
 0x23d   : >> { %7939 = vst [vmem:[#allocation35_spill] sm:$0xff] %v5915_v60  ;;  %vm1276_vm13 = vcmp.eq.s32.totalorder %v5547_v17, %v718_v22 }
 0x23e   : >> { %4862 = vmatmul.msk.bf16.gmra.mxu1 %vm2078_vm2, %v2021_v14  ;;  %7938 = vst [vmem:[#allocation34_spill] sm:$0xff] %v5913_v16  ;;  %v1914_v14 = vunpack.c.l.b16 %v1658_v49  ;;  %v4749_v49 = vsel %vm1276_vm13, 1.0, %v7929_v12 }
 0x23f   : >> { %v1660_v22 = vpack.c.bf16 %v4749_v49, %v4749_v49 }
 0x242   : >> { %875 = vperm.xlu0 %5305, %v5903_v13   ;;  %808 = vperm.xlu2 %5159, %v5770_v10  }
 0x243   : >> { %820 = vperm.xlu1 %5160, %v5770_v10  }
 0x245   : >> { %v712_v32 = vpop.permute.xlu1 %711 }
 0x246   : >> { %vm1275_vm12 = vcmp.eq.s32.totalorder %v5547_v17, %v712_v32  ;;  %v5923_v32 = vperm.slane %v5667_v46, 6 }
 0x247   : >> { %v4748_v56 = vsel %vm1275_vm12, 1.0, %v7929_v12 }
 0x248   : >> { %v1659_v19 = vpack.c.bf16 %v4748_v56, %v4748_v56  ;;  %7940 = vst [vmem:[#allocation36_spill] sm:$0xff] %v5923_v32  ;;  %v5926_v56 = vpop.permute.xlu0 %754 }
 0x249   : >> { %vm1282_vm5 = vcmp.eq.s32.totalorder %v5547_v17, %v5926_v56 }
 0x24a   : >> { %v1915_v29 = vunpack.c.l.b16 %v1659_v19  ;;  %2726 = vperm.xlu0 %5305, %v5913_v16   ;;  %5161 = vset.pattern.permute.xlu2 %v5610_v35  ;;  %v4750_v19 = vsel %vm1277_vm14, 1.0, %v7929_v12 }
 0x24b   : >> { %5162 = vset.pattern.permute.xlu1 %v5720_v63 }
 0x24c   : >> { %v2022_v53 = vpack.c.b16 %v1915_v29, %v1914_v14  ;;  %v1661_v29 = vpack.c.bf16 %v4750_v19, %v4750_v19  ;;  %v1916_v14 = vunpack.c.l.b16 %v1660_v22  ;;  %v736_v7 = vpop.permute.xlu2 %735 }
 0x24d   : >> { %vm1279_vm0 = vcmp.eq.s32.totalorder %v5547_v17, %v736_v7 }
 0x24e   : >> { %4863 = vmatmul.msk.bf16.gmra.mxu1 %vm2078_vm2, %v2022_v53  ;;  %v1917_v53 = vunpack.c.l.b16 %v1661_v29  ;;  %v4752_v19 = vsel %vm1279_vm0, 1.0, %v7929_v12 }
 0x250   : >> { %v5933_v60 = vpop.permute.xlu0 %2605  ;;  %v2023_v15 = vpack.c.b16 %v1917_v53, %v1916_v14  ;;  %v1663_v14 = vpack.c.bf16 %v4752_v19, %v4752_v19 }
 0x251   : >> { %7941 = vst [vmem:[#allocation37_spill] sm:$0xff] %v5933_v60 }
 0x252   : >> { %3211 = vperm.xlu0 %5305, %v5923_v32   ;;  %826 = vperm.xlu2 %5161, %v5770_v10  }
 0x253   : >> { %832 = vperm.xlu1 %5162, %v5770_v10  }
 0x255   : >> { %v730_v62 = vpop.permute.xlu1 %729 }
 0x256   : >> { %vm1278_vm15 = vcmp.eq.s32.totalorder %v5547_v17, %v730_v62  ;;  %v1919_v62 = vunpack.c.l.b16 %v1663_v14 }
 0x257   : >> { %v4751_v49 = vsel %vm1278_vm15, 1.0, %v7929_v12 }
 0x258   : >> { %v5946_v22 = vpop.permute.xlu0 %3090  ;;  %v1662_v29 = vpack.c.bf16 %v4751_v49, %v4751_v49 }
 0x259   : >> { %7942 = vst [vmem:[#allocation38_spill] sm:$0xff] %v5946_v22 }
 0x25a   : >> { %5310 = vset.pattern.permute.xlu0 %v5625_v38  ;;  %5163 = vset.pattern.permute.xlu2 %v5649_v42  ;;  %v1918_v53 = vunpack.c.l.b16 %v1662_v29 }
 0x25b   : >> { %5164 = vset.pattern.permute.xlu1 %v5573_v25 }
 0x25c   : >> { %v748_v60 = vpop.permute.xlu2 %747 }
 0x25d   : >> { %vm1281_vm3 = vcmp.eq.s32.totalorder %v5547_v17, %v748_v60 }
 0x25e   : >> { %4864 = vmatmul.msk.bf16.gmra.mxu1 %vm2078_vm2, %v2023_v15  ;;  %v4754_v19 = vsel %vm1281_vm3, 1.0, %v7929_v12 }
 0x260   : >> { %v5951_v15 = vpop.permute.xlu0 %784 }
 0x261   : >> { %vm1287_vm9 = vcmp.eq.s32.totalorder %v5547_v17, %v5951_v15 }
 0x262   : >> { %905 = vperm.xlu0 %5310, %v5903_v13   ;;  %838 = vperm.xlu2 %5163, %v5770_v10   ;;  %v2024_v10 = vpack.c.b16 %v1919_v62, %v1918_v53  ;;  %v1665_v53 = vpack.c.bf16 %v4754_v19, %v4754_v19 }
 0x263   : >> { %851 = vperm.xlu1 %5164, %v5903_v13  }
 0x265   : >> { %v742_v7 = vpop.permute.xlu1 %741 }
 0x266   : >> { %vm1280_vm1 = vcmp.eq.s32.totalorder %v5547_v17, %v742_v7  ;;  %v1921_v7 = vunpack.c.l.b16 %v1665_v53 }
 0x267   : >> { %v4753_v49 = vsel %vm1280_vm1, 1.0, %v7929_v12 }
 0x268   : >> { %v1664_v29 = vpack.c.bf16 %v4753_v49, %v4753_v49  ;;  %v5961_v14 = vpop.permute.xlu0 %2635 }
 0x269   : >> { %7943 = vst [vmem:[#allocation39_spill] sm:$0xff] %v5961_v14 }
 0x26a   : >> { %2756 = vperm.xlu0 %5310, %v5913_v16   ;;  %5165 = vset.pattern.permute.xlu2 %v5577_v26  ;;  %v1920_v62 = vunpack.c.l.b16 %v1664_v29  ;;  %v4755_v29 = vsel %vm1282_vm5, 1.0, %v7929_v12 }
 0x26b   : >> { %5166 = vset.pattern.permute.xlu1 %v5581_v28 }
 0x26e   : >> { %4865 = vmatmul.msk.bf16.gmra.mxu1 %vm2078_vm2, %v2024_v10  ;;  %v2025_v10 = vpack.c.b16 %v1921_v7, %v1920_v62  ;;  %v1666_v62 = vpack.c.bf16 %v4755_v29, %v4755_v29 }
 0x270   : >> { %v5970_v49 = vpop.permute.xlu0 %3120 }
 0x271   : >> { %7944 = vst [vmem:[#allocation40_spill] sm:$0xff] %v5970_v49  ;;  %v767_v49 = vpop.permute.xlu2 %766 }
 0x272   : >> { %3241 = vperm.xlu0 %5310, %v5923_v32   ;;  %857 = vperm.xlu2 %5165, %v5903_v13   ;;  %vm1284_vm7 = vcmp.eq.s32.totalorder %v5547_v17, %v767_v49 }
 0x273   : >> { %863 = vperm.xlu1 %5166, %v5903_v13  }
 0x275   : >> { %v761_v60 = vpop.permute.xlu1 %760 }
 0x276   : >> { %vm1283_vm4 = vcmp.eq.s32.totalorder %v5547_v17, %v761_v60 }
 0x277   : >> { %v4756_v19 = vsel %vm1283_vm4, 1.0, %v7929_v12 }
 0x278   : >> { %v1667_v53 = vpack.c.bf16 %v4756_v19, %v4756_v19  ;;  %v5977_v7 = vpop.permute.xlu0 %814 }
 0x279   : >> { %vm1292_vm15 = vcmp.eq.s32.totalorder %v5547_v17, %v5977_v7 }
 0x27a   : >> { %5315 = vset.pattern.permute.xlu0 %v5649_v42  ;;  %5167 = vset.pattern.permute.xlu2 %v5676_v48  ;;  %v1923_v60 = vunpack.c.l.b16 %v1667_v53  ;;  %v4757_v53 = vsel %vm1284_vm7, 1.0, %v7929_v12 }
 0x27b   : >> { %5168 = vset.pattern.permute.xlu1 %v5613_v36 }
 0x27e   : >> { %4866 = vmatmul.msk.bf16.gmra.mxu1 %vm2078_vm2, %v2025_v10  ;;  %v1922_v10 = vunpack.c.l.b16 %v1666_v62 }
 0x280   : >> { %v2026_v22 = vpack.c.b16 %v1923_v60, %v1922_v10  ;;  %v5986_v29 = vpop.permute.xlu0 %2665  ;;  %v1668_v60 = vpack.c.bf16 %v4757_v53, %v4757_v53  ;;  %v4760_v53 = vsel %vm1287_vm9, 1.0, %v7929_v12 }
 0x281   : >> { %7945 = vst [vmem:[#allocation41_spill] sm:$0xff] %v5986_v29 }
 0x282   : >> { %935 = vperm.xlu0 %5315, %v5903_v13   ;;  %869 = vperm.xlu2 %5167, %v5903_v13  }
 0x283   : >> { %881 = vperm.xlu1 %5168, %v5903_v13  }
 0x285   : >> { %v773_v56 = vpop.permute.xlu1 %772 }
 0x286   : >> { %vm1285_vm6 = vcmp.eq.s32.totalorder %v5547_v17, %v773_v56  ;;  %v1924_v56 = vunpack.c.l.b16 %v1668_v60 }
 0x287   : >> { %v4758_v19 = vsel %vm1285_vm6, 1.0, %v7929_v12 }
 0x288   : >> { %v1669_v62 = vpack.c.bf16 %v4758_v19, %v4758_v19  ;;  %v5995_v49 = vpop.permute.xlu0 %3150 }
 0x289   : >> { %7946 = vst [vmem:[#allocation42_spill] sm:$0xff] %v5995_v49 }
 0x28a   : >> { %2786 = vperm.xlu0 %5315, %v5913_v16   ;;  %5169 = vset.pattern.permute.xlu2 %v5616_v37  ;;  %v1925_v10 = vunpack.c.l.b16 %v1669_v62 }
 0x28b   : >> { %5170 = vset.pattern.permute.xlu1 %v5598_v33 }
 0x28c   : >> { %v2027_v14 = vpack.c.b16 %v1925_v10, %v1924_v56  ;;  %v1671_v10 = vpack.c.bf16 %v4760_v53, %v4760_v53  ;;  %v6009_v56 = vperm.slane %v5586_v30, 5  ;;  %v6019_v30 = vperm.slane %v5667_v46, 2 }
 0x28e   : >> { %4867 = vmatmul.msk.bf16.gmra.mxu1 %vm2078_vm2, %v2026_v22  ;;  %v779_v22 = vpop.permute.xlu2 %778 }
 0x28f   : >> { %vm1286_vm8 = vcmp.eq.s32.totalorder %v5547_v17, %v779_v22  ;;  %v1927_v22 = vunpack.c.l.b16 %v1671_v10 }
 0x290   : >> { %v4759_v19 = vsel %vm1286_vm8, 1.0, %v7929_v12 }
 0x291   : >> { %v1670_v62 = vpack.c.bf16 %v4759_v19, %v4759_v19 }
 0x292   : >> { %3271 = vperm.xlu0 %5315, %v5923_v32   ;;  %887 = vperm.xlu2 %5169, %v5903_v13  }
 0x293   : >> { %893 = vperm.xlu1 %5170, %v5903_v13  }
 0x294   : >> { %v6006_v60 = vpop.permute.xlu0 %844 }
 0x295   : >> { %v791_v15 = vpop.permute.xlu1 %790  ;;  %vm1297_vm8 = vcmp.eq.s32.totalorder %v5547_v17, %v6006_v60 }
 0x296   : >> { %v797_v49 = vpop.permute.xlu2 %796  ;;  %vm1288_vm10 = vcmp.eq.s32.totalorder %v5547_v17, %v791_v15 }
 0x297   : >> { %vm1289_vm11 = vcmp.eq.s32.totalorder %v5547_v17, %v797_v49  ;;  %v4761_v53 = vsel %vm1288_vm10, 1.0, %v7929_v12  ;;  %v6032_v49 = vpop.f32.mrf.mxu1 }
 0x298   : >> { %v1672_v10 = vpack.c.bf16 %v4761_v53, %v4761_v53  ;;  %7949 = vst [vmem:[#allocation45_spill] sm:$0xff] %v6032_v49 }
 0x29a   : >> { %5320 = vset.pattern.permute.xlu0 %v5676_v48  ;;  %5171 = vset.pattern.permute.xlu2 %v5696_v59  ;;  %v1928_v15 = vunpack.c.l.b16 %v1672_v10 }
 0x29b   : >> { %5172 = vset.pattern.permute.xlu1 %v5637_v40 }
 0x29c   : >> { %v6015_v19 = vpop.permute.xlu0 %2695 }
 0x29d   : >> { %7947 = vst [vmem:[#allocation43_spill] sm:$0xff] %v6015_v19 }
 0x29e   : >> { %4868 = vmatmul.msk.bf16.gmra.mxu1 %vm2078_vm2, %v2027_v14  ;;  %v1926_v14 = vunpack.c.l.b16 %v1670_v62  ;;  %v4762_v62 = vsel %vm1289_vm11, 1.0, %v7929_v12 }
 0x2a0   : >> { %v2028_v29 = vpack.c.b16 %v1927_v22, %v1926_v14  ;;  %v809_v14 = vpop.permute.xlu2 %808  ;;  %v1673_v22 = vpack.c.bf16 %v4762_v62, %v4762_v62 }
 0x2a1   : >> { %vm1291_vm13 = vcmp.eq.s32.totalorder %v5547_v17, %v809_v14 }
 0x2a2   : >> { %481 = vperm.xlu0 %5320, %v5589_v31   ;;  %899 = vperm.xlu2 %5171, %v5903_v13   ;;  %v1929_v19 = vunpack.c.l.b16 %v1673_v22  ;;  %v4764_v10 = vsel %vm1291_vm13, 1.0, %v7929_v12 }
 0x2a3   : >> { %911 = vperm.xlu1 %5172, %v5903_v13  }
 0x2a4   : >> { %v6030_v32 = vpop.permute.xlu0 %3180  ;;  %v2029_v47 = vpack.c.b16 %v1929_v19, %v1928_v15  ;;  %v6049_v19 = vpop.f32.mrf.mxu1 }
 0x2a5   : >> { %7948 = vst [vmem:[#allocation44_spill] sm:$0xff] %v6030_v32  ;;  %v803_v16 = vpop.permute.xlu1 %802 }
 0x2a6   : >> { %vm1290_vm12 = vcmp.eq.s32.totalorder %v5547_v17, %v803_v16  ;;  %7950 = vst [vmem:[#allocation46_spill] sm:$0xff] %v6049_v19 }
 0x2a7   : >> { %v4763_v62 = vsel %vm1290_vm12, 1.0, %v7929_v12 }
 0x2a8   : >> { %v1674_v22 = vpack.c.bf16 %v4763_v62, %v4763_v62 }
 0x2aa   : >> { %966 = vperm.xlu0 %5320, %v6009_v56   ;;  %5173 = vset.pattern.permute.xlu2 %v5640_v41  ;;  %v1930_v14 = vunpack.c.l.b16 %v1674_v22 }
 0x2ab   : >> { %5174 = vset.pattern.permute.xlu1 %v5610_v35 }
 0x2ac   : >> { %v6037_v53 = vpop.permute.xlu2 %826  ;;  %v6058_v23 = vpop.f32.mrf.mxu1 }
 0x2ad   : >> { %7952 = vst [vmem:[#allocation48_spill] sm:$0xff] %v6058_v23  ;;  %vm1294_vm4 = vcmp.eq.s32.totalorder %v5547_v17, %v6037_v53 }
 0x2ae   : >> { %4869 = vmatmul.msk.bf16.gmra.mxu1 %vm2078_vm2, %v2028_v29  ;;  %v6028_v29 = vperm.slane %v5667_v46, 7 }
 0x2b2   : >> { %2817 = vperm.xlu0 %5320, %v6019_v30   ;;  %917 = vperm.xlu2 %5173, %v5903_v13  }
 0x2b3   : >> { %923 = vperm.xlu1 %5174, %v5903_v13  }
 0x2b4   : >> { %v6042_v46 = vpop.permute.xlu0 %875  ;;  %v6073_v7 = vpop.f32.mrf.mxu1 }
 0x2b5   : >> { %v821_v16 = vpop.permute.xlu1 %820  ;;  %7954 = vst [vmem:[#allocation50_spill] sm:$0xff] %v6073_v7  ;;  %vm1302_vm9 = vcmp.eq.s32.totalorder %v5547_v17, %v6042_v46 }
 0x2b6   : >> { %vm1293_vm14 = vcmp.eq.s32.totalorder %v5547_v17, %v821_v16 }
 0x2b7   : >> { %v4766_v62 = vsel %vm1293_vm14, 1.0, %v7929_v12  ;;  %vm1236_vm14 = vcmp.eq.s32.totalorder %v5547_v17, %v5737_v0 }
 0x2b8   : >> { %v1677_v22 = vpack.c.bf16 %v4766_v62, %v4766_v62 }
 0x2ba   : >> { %3302 = vperm.xlu0 %5320, %v6028_v29   ;;  %5175 = vset.pattern.permute.xlu2 %v5720_v63  ;;  %v1933_v23 = vunpack.c.l.b16 %v1677_v22 }
 0x2bb   : >> { %5176 = vset.pattern.permute.xlu1 %v5658_v43 }
 0x2bc   : >> { %v6051_v15 = vpop.permute.xlu2 %838  ;;  %v6053_v49 = vpop.permute.xlu0 %2726 }
 0x2bd   : >> { %7951 = vst [vmem:[#allocation47_spill] sm:$0xff] %v6053_v49  ;;  %v6085_v22 = vpop.f32.mrf.mxu1  ;;  %vm1296_vm7 = vcmp.eq.s32.totalorder %v5547_v17, %v6051_v15  ;;  %v4770_v15 = vsel %vm1297_vm8, 1.0, %v7929_v12  ;;  %vm1241_vm8 = vcmp.eq.s32.totalorder %v5547_v17, %v5749_v3 }
 0x2be   : >> { %4870 = vmatmul.msk.bf16.gmra.mxu1 %vm2078_vm2, %v2029_v47  ;;  %v1675_v47 = vpack.c.bf16 %v4764_v10, %v4764_v10  ;;  %v4765_v10 = vsel %vm1292_vm15, 1.0, %v7929_v12 }
 0x2c0   : >> { %v1931_v32 = vunpack.c.l.b16 %v1675_v47 }
 0x2c2   : >> { %5325 = vset.pattern.permute.xlu0 %v5696_v59  ;;  %929 = vperm.xlu2 %5175, %v5903_v13  }
 0x2c3   : >> { %941 = vperm.xlu1 %5176, %v5903_v13   ;;  %v2030_v13 = vpack.c.b16 %v1931_v32, %v1930_v14  ;;  %v1676_v14 = vpack.c.bf16 %v4765_v10, %v4765_v10 }
 0x2c4   : >> { %v6071_v16 = vpop.permute.xlu0 %3211 }
 0x2c5   : >> { %v833_v57 = vpop.permute.xlu1 %832  ;;  %7953 = vst [vmem:[#allocation49_spill] sm:$0xff] %v6071_v16  ;;  %v1932_v18 = vunpack.c.l.b16 %v1676_v14 }
 0x2c6   : >> { %vm1295_vm3 = vcmp.eq.s32.totalorder %v5547_v17, %v833_v57 }
 0x2c7   : >> { %v2031_v62 = vpack.c.b16 %v1933_v23, %v1932_v18  ;;  %v4767_v18 = vsel %vm1294_vm4, 1.0, %v7929_v12  ;;  %vm1239_vm4 = vcmp.eq.s32.totalorder %v5547_v17, %v5742_v1 }
 0x2c8   : >> { %v1678_v57 = vpack.c.bf16 %v4767_v18, %v4767_v18 }
 0x2ca   : >> { %511 = vperm.xlu0 %5325, %v5589_v31   ;;  %5177 = vset.pattern.permute.xlu2 %v5573_v25 }
 0x2cb   : >> { %5178 = vset.pattern.permute.xlu1 %v5577_v26 }
 0x2cc   : >> { %v858_v19 = vpop.permute.xlu2 %857 }
 0x2cd   : >> { %vm1299_vm0 = vcmp.eq.s32.totalorder %v5547_v17, %v858_v19 }
 0x2ce   : >> { %4871 = vmatmul.msk.bf16.gmra.mxu1 %vm2078_vm2, %v2030_v13  ;;  %v4772_v32 = vsel %vm1299_vm0, 1.0, %v7929_v12 }
 0x2cf   : >> { %v1683_v19 = vpack.c.bf16 %v4772_v32, %v4772_v32 }
 0x2d1   : >> { %v1939_v54 = vunpack.c.l.b16 %v1683_v19 }
 0x2d2   : >> { %996 = vperm.xlu0 %5325, %v6009_v56   ;;  %948 = vperm.xlu2 %5177, %v6009_v56  }
 0x2d3   : >> { %954 = vperm.xlu1 %5178, %v6009_v56  }
 0x2d4   : >> { %v6080_v10 = vpop.permute.xlu0 %905 }
 0x2d5   : >> { %v852_v47 = vpop.permute.xlu1 %851  ;;  %vm1307_vm15 = vcmp.eq.s32.totalorder %v5547_v17, %v6080_v10 }
 0x2d6   : >> { %vm1298_vm1 = vcmp.eq.s32.totalorder %v5547_v17, %v852_v47 }
 0x2d7   : >> { %v4771_v13 = vsel %vm1298_vm1, 1.0, %v7929_v12  ;;  %vm1238_vm1 = vcmp.eq.s32.totalorder %v5547_v17, %v5758_v6  ;;  %v4712_v6 = vsel %vm1239_vm4, 1.0, %v7929_v12  ;;  %vm1246_vm4 = vcmp.eq.s32.totalorder %v5547_v17, %v5765_v8 }
 0x2d8   : >> { %v1682_v49 = vpack.c.bf16 %v4771_v13, %v4771_v13  ;;  %v1934_v13 = vunpack.c.l.b16 %v1678_v57 }
 0x2da   : >> { %v1938_v50 = vunpack.c.l.b16 %v1682_v49  ;;  %2847 = vperm.xlu0 %5325, %v6019_v30   ;;  %5179 = vset.pattern.permute.xlu2 %v5581_v28  ;;  %v4768_v49 = vsel %vm1295_vm3, 1.0, %v7929_v12 }
 0x2db   : >> { %5180 = vset.pattern.permute.xlu1 %v5601_v34  ;;  %v1679_v23 = vpack.c.bf16 %v4768_v49, %v4768_v49 }
 0x2dc   : >> { %v2034_v16 = vpack.c.b16 %v1939_v54, %v1938_v50  ;;  %v870_v32 = vpop.permute.xlu2 %869 }
 0x2dd   : >> { %vm1301_vm5 = vcmp.eq.s32.totalorder %v5547_v17, %v870_v32  ;;  %v1935_v14 = vunpack.c.l.b16 %v1679_v23  ;;  %v4769_v23 = vsel %vm1296_vm7, 1.0, %v7929_v12 }
 0x2de   : >> { %4872 = vmatmul.msk.bf16.gmra.mxu1 %vm2078_vm2, %v2031_v62  ;;  %4875 = vmatmul.msk.bf16.vlgmr.msra.gmra.mxu2 %vm2078_vm2, %v2034_v16  ;;  %v4774_v50 = vsel %vm1301_vm5, 1.0, %v7929_v12  ;;  %v6096_v16 = vpop.permute.xlu0 %2756  ;;  %v6100_v62 = vpop.f32.mrf.mxu1  ;;  %v1680_v60 = vpack.c.bf16 %v4769_v23, %v4769_v23 }
 0x2df   : >> { %7955 = vst [vmem:[#allocation51_spill] sm:$0xff] %v6096_v16  ;;  %v1685_v53 = vpack.c.bf16 %v4774_v50, %v4774_v50  ;;  %v2032_v49 = vpack.c.b16 %v1935_v14, %v1934_v13 }
 0x2e0   : >> { %7956 = vst [vmem:[#allocation52_spill] sm:$0xff] %v6100_v62  ;;  %v1936_v14 = vunpack.c.l.b16 %v1680_v60 }
 0x2e1   : >> { %v1941_v32 = vunpack.c.l.b16 %v1685_v53  ;;  %v1681_v53 = vpack.c.bf16 %v4770_v15, %v4770_v15 }
 0x2e2   : >> { %3332 = vperm.xlu0 %5325, %v6028_v29   ;;  %960 = vperm.xlu2 %5179, %v6009_v56  }
 0x2e3   : >> { %972 = vperm.xlu1 %5180, %v6009_v56   ;;  %v1937_v13 = vunpack.c.l.b16 %v1681_v53 }
 0x2e5   : >> { %v864_v54 = vpop.permute.xlu1 %863 }
 0x2e6   : >> { %vm1300_vm6 = vcmp.eq.s32.totalorder %v5547_v17, %v864_v54  ;;  %v6113_v50 = vpop.permute.xlu0 %3241  ;;  %v6121_v54 = vpop.f32.mrf.mxu1 }
 0x2e7   : >> { %v4773_v47 = vsel %vm1300_vm6, 1.0, %v7929_v12  ;;  %7957 = vst [vmem:[#allocation53_spill] sm:$0xff] %v6121_v54  ;;  %vm1240_vm6 = vcmp.eq.s32.totalorder %v5547_v17, %v5767_v9 }
 0x2e8   : >> { %v1684_v19 = vpack.c.bf16 %v4773_v47, %v4773_v47 }
 0x2ea   : >> { %v1940_v7 = vunpack.c.l.b16 %v1684_v19  ;;  %5330 = vset.pattern.permute.xlu0 %v5720_v63  ;;  %5181 = vset.pattern.permute.xlu2 %v5613_v36 }
 0x2eb   : >> { %5182 = vset.pattern.permute.xlu1 %v5616_v37 }
 0x2ec   : >> { %v2035_v18 = vpack.c.b16 %v1941_v32, %v1940_v7  ;;  %v4775_v7 = vsel %vm1302_vm9, 1.0, %v7929_v12  ;;  %v888_v15 = vpop.permute.xlu2 %887 }
 0x2ed   : >> { %v1686_v46 = vpack.c.bf16 %v4775_v7, %v4775_v7  ;;  %vm1304_vm11 = vcmp.eq.s32.totalorder %v5547_v17, %v888_v15  ;;  %v4709_v15 = vsel %vm1236_vm14, 1.0, %v7929_v12  ;;  %vm1245_vm14 = vcmp.eq.s32.totalorder %v5547_v17, %v5791_v27 }
 0x2ee   : >> { %4873 = vmatmul.msk.bf16.gmra.mxu1 %vm2078_vm2, %v2032_v49  ;;  %4876 = vmatmul.msk.bf16.gmra.mxu2 %vm2078_vm2, %v2035_v18  ;;  %v2033_v18 = vpack.c.b16 %v1937_v13, %v1936_v14  ;;  %v6130_v7 = vpop.f32.mrf.mxu1 }
 0x2ef   : >> { %v1942_v32 = vunpack.c.l.b16 %v1686_v46 }
 0x2f2   : >> { %541 = vperm.xlu0 %5330, %v5589_v31   ;;  %978 = vperm.xlu2 %5181, %v6009_v56  }
 0x2f3   : >> { %984 = vperm.xlu1 %5182, %v6009_v56  }
 0x2f4   : >> { %v6125_v31 = vpop.permute.xlu0 %935 }
 0x2f5   : >> { %v882_v57 = vpop.permute.xlu1 %881 }
 0x2f6   : >> { %vm1303_vm10 = vcmp.eq.s32.totalorder %v5547_v17, %v882_v57  ;;  %v4777_v57 = vsel %vm1304_vm11, 1.0, %v7929_v12 }
 0x2f7   : >> { %v4776_v47 = vsel %vm1303_vm10, 1.0, %v7929_v12  ;;  %v1688_v46 = vpack.c.bf16 %v4777_v57, %v4777_v57  ;;  %v7959_v57 = vmov 0  }
 0x2f8   : >> { %v1687_v19 = vpack.c.bf16 %v4776_v47, %v4776_v47 }
 0x2fa   : >> { %v1943_v49 = vunpack.c.l.b16 %v1687_v19  ;;  %1026 = vperm.xlu0 %5330, %v6009_v56   ;;  %5183 = vset.pattern.permute.xlu2 %v5598_v33  ;;  %v1944_v19 = vunpack.c.l.b16 %v1688_v46 }
 0x2fb   : >> { %5184 = vset.pattern.permute.xlu1 %v5625_v38 }
 0x2fc   : >> { %v2036_v23 = vpack.c.b16 %v1943_v49, %v1942_v32  ;;  %v6135_v60 = vpop.permute.xlu0 %2786  ;;  %v900_v32 = vpop.permute.xlu2 %899 }
 0x2fd   : >> { %vm1306_vm13 = vcmp.eq.s32.totalorder %v5547_v17, %v900_v32 }
 0x2fe   : >> { %4874 = vmatmul.msk.bf16.gmra.mxu1 %vm2078_vm2, %v2033_v18  ;;  %4877 = vmatmul.msk.bf16.gmra.mxu2 %vm2078_vm2, %v2036_v23  ;;  %v4779_v23 = vsel %vm1306_vm13, 1.0, %v7929_v12  ;;  %vm1312_vm13 = vcmp.eq.s32.totalorder %v5547_v17, %v6125_v31 }
 0x2ff   : >> { %v1690_v46 = vpack.c.bf16 %v4779_v23, %v4779_v23 }
 0x302   : >> { %2877 = vperm.xlu0 %5330, %v6019_v30   ;;  %990 = vperm.xlu2 %5183, %v6009_v56  }
 0x303   : >> { %1002 = vperm.xlu1 %5184, %v6009_v56  }
 0x304   : >> { %v6146_v49 = vpop.permute.xlu0 %3271 }
 0x305   : >> { %v894_v53 = vpop.permute.xlu1 %893  ;;  %7958 = vst [vmem:[#allocation54_spill] sm:$0xff] %v6146_v49 }
 0x306   : >> { %vm1305_vm12 = vcmp.eq.s32.totalorder %v5547_v17, %v894_v53  ;;  %v4780_v53 = vsel %vm1307_vm15, 1.0, %v7929_v12 }
 0x307   : >> { %v4778_v47 = vsel %vm1305_vm12, 1.0, %v7929_v12  ;;  %v1691_v0 = vpack.c.bf16 %v4780_v53, %v4780_v53  ;;  %vm1243_vm12 = vcmp.eq.s32.totalorder %v5547_v17, %v5779_v21 }
 0x308   : >> { %v1689_v14 = vpack.c.bf16 %v4778_v47, %v4778_v47 }
 0x309   : >> { %v1947_v54 = vunpack.c.l.b16 %v1691_v0 }
 0x30a   : >> { %v1945_v13 = vunpack.c.l.b16 %v1689_v14  ;;  %3362 = vperm.xlu0 %5330, %v6028_v29   ;;  %5185 = vset.pattern.permute.xlu2 %v5637_v40  ;;  %v1620_v14 = vpack.c.bf16 %v4709_v15, %v4709_v15  ;;  %v4711_v15 = vsel %vm1238_vm1, 1.0, %v7929_v12 }
 0x30b   : >> { %5186 = vset.pattern.permute.xlu1 %v5640_v41 }
 0x30c   : >> { %v2037_v18 = vpack.c.b16 %v1945_v13, %v1944_v19  ;;  %v1946_v13 = vunpack.c.l.b16 %v1690_v46  ;;  %v1876_v32 = vunpack.c.l.b16 %v1620_v14  ;;  %v918_v23 = vpop.permute.xlu2 %917  ;;  %v1623_v46 = vpack.c.bf16 %v4712_v6, %v4712_v6 }
 0x30d   : >> { %vm1309_vm5 = vcmp.eq.s32.totalorder %v5547_v17, %v918_v23  ;;  %v4714_v6 = vsel %vm1241_vm8, 1.0, %v7929_v12 }
 0x30e   : >> { %4878 = vmatmul.msk.bf16.gmra.mxu2 %vm2078_vm2, %v2037_v18  ;;  %v2038_v16 = vpack.c.b16 %v1947_v54, %v1946_v13  ;;  %v1879_v0 = vunpack.c.l.b16 %v1623_v46  ;;  %v1625_v46 = vpack.c.bf16 %v4714_v6, %v4714_v6 }
 0x312   : >> { %1008 = vperm.xlu2 %5185, %v6009_v56   ;;  %5338 = vset.pattern.permute.xlu0 %v7959_v57 }
 0x313   : >> { %1014 = vperm.xlu1 %5186, %v6009_v56  }
 0x314   : >> { %v482_v47 = vpop.permute.xlu0 %481 }
 0x315   : >> { %vm1237_vm0 = vcmp.eq.s32.totalorder %v5547_v17, %v482_v47  ;;  %v912_v62 = vpop.permute.xlu1 %911 }
 0x316   : >> { %v4710_v10 = vsel %vm1237_vm0, 1.0, %v7929_v12  ;;  %vm1308_vm3 = vcmp.eq.s32.totalorder %v5547_v17, %v912_v62  ;;  %v4782_v62 = vsel %vm1309_vm5, 1.0, %v7929_v12  ;;  %vm1244_vm0 = vcmp.eq.s32.totalorder %v5547_v17, %v5756_v5 }
 0x317   : >> { %v1621_v19 = vpack.c.bf16 %v4710_v10, %v4710_v10  ;;  %v4781_v54 = vsel %vm1308_vm3, 1.0, %v7929_v12  ;;  %v1693_v1 = vpack.c.bf16 %v4782_v62, %v4782_v62 }
 0x319   : >> { %v1877_v18 = vunpack.c.l.b16 %v1621_v19  ;;  %v1949_v10 = vunpack.c.l.b16 %v1693_v1 }
 0x31a   : >> { %5187 = vset.pattern.permute.xlu2 %v5610_v35 }
 0x31b   : >> { %5188 = vset.pattern.permute.xlu1 %v5649_v42  ;;  %v2003_v49 = vpack.c.b16 %v1877_v18, %v1876_v32 }
 0x31c   : >> { %v6173_v53 = vpop.permute.xlu0 %966  ;;  %v930_v23 = vpop.permute.xlu2 %929 }
 0x31d   : >> { %4844 = vmatmul.msk.bf16.gmra.mxu0 %vm2078_vm2, %v2003_v49  ;;  %v1622_v49 = vpack.c.bf16 %v4711_v15, %v4711_v15  ;;  %v4713_v15 = vsel %vm1240_vm6, 1.0, %v7929_v12  ;;  %vm1311_vm9 = vcmp.eq.s32.totalorder %v5547_v17, %v930_v23  ;;  %vm1317_vm5 = vcmp.eq.s32.totalorder %v5547_v17, %v6173_v53 }
 0x31e   : >> { %4879 = vmatmul.msk.bf16.gmra.mxu2 %vm2078_vm2, %v2038_v16  ;;  %v1692_v16 = vpack.c.bf16 %v4781_v54, %v4781_v54  ;;  %v1624_v9 = vpack.c.bf16 %v4713_v15, %v4713_v15  ;;  %v4716_v15 = vsel %vm1243_vm12, 1.0, %v7929_v12 }
 0x31f   : >> { %v1878_v47 = vunpack.c.l.b16 %v1622_v49  ;;  %v4784_v49 = vsel %vm1311_vm9, 1.0, %v7929_v12  ;;  %vm1249_vm9 = vcmp.eq.s32.totalorder %v5547_v17, %v5777_v20 }
 0x320   : >> { %v1948_v14 = vunpack.c.l.b16 %v1692_v16  ;;  %v1695_v3 = vpack.c.bf16 %v4784_v49, %v4784_v49  ;;  %v1880_v1 = vunpack.c.l.b16 %v1624_v9  ;;  %v1627_v49 = vpack.c.bf16 %v4716_v15, %v4716_v15 }
 0x321   : >> { %v2004_v32 = vpack.c.b16 %v1879_v0, %v1878_v47 }
 0x322   : >> { %1020 = vperm.xlu2 %5187, %v6009_v56   ;;  %v2039_v18 = vpack.c.b16 %v1949_v10, %v1948_v14  ;;  %v1881_v14 = vunpack.c.l.b16 %v1625_v46  ;;  %v1951_v0 = vunpack.c.l.b16 %v1695_v3  ;;  %v1883_v31 = vunpack.c.l.b16 %v1627_v49 }
 0x323   : >> { %1032 = vperm.xlu1 %5188, %v6009_v56  }
 0x324   : >> { %v6180_v19 = vpop.permute.xlu0 %2817 }
 0x325   : >> { %7960 = vst [vmem:[#allocation55_spill] sm:$0xff] %v6180_v19  ;;  %v924_v13 = vpop.permute.xlu1 %923 }
 0x326   : >> { %vm1310_vm7 = vcmp.eq.s32.totalorder %v5547_v17, %v924_v13 }
 0x327   : >> { %v4783_v54 = vsel %vm1310_vm7, 1.0, %v7929_v12  ;;  %vm1248_vm7 = vcmp.eq.s32.totalorder %v5547_v17, %v5803_v45 }
 0x328   : >> { %v1694_v62 = vpack.c.bf16 %v4783_v54, %v4783_v54  ;;  %v4785_v54 = vsel %vm1312_vm13, 1.0, %v7929_v12  ;;  %vm1251_vm13 = vcmp.eq.s32.totalorder %v5547_v17, %v5789_v24 }
 0x32a   : >> { %5189 = vset.pattern.permute.xlu2 %v5658_v43  ;;  %v1950_v47 = vunpack.c.l.b16 %v1694_v62  ;;  %v1696_v62 = vpack.c.bf16 %v4785_v54, %v4785_v54 }
 0x32b   : >> { %5190 = vset.pattern.permute.xlu1 %v5573_v25 }
 0x32c   : >> { %v6198_v16 = vpop.permute.xlu0 %3302 }
 0x32d   : >> { %4845 = vmatmul.msk.bf16.gmra.mxu0 %vm2078_vm2, %v2004_v32  ;;  %7961 = vst [vmem:[#allocation56_spill] sm:$0xff] %v6198_v16  ;;  %v2040_v32 = vpack.c.b16 %v1951_v0, %v1950_v47 }
 0x32e   : >> { %4880 = vmatmul.msk.bf16.gmra.mxu2 %vm2078_vm2, %v2039_v18 }
 0x332   : >> { %1038 = vperm.xlu2 %5189, %v6009_v56   ;;  %v2005_v56 = vpack.c.b16 %v1881_v14, %v1880_v1  ;;  %v1952_v1 = vunpack.c.l.b16 %v1696_v62 }
 0x333   : >> { %1045 = vperm.xlu1 %5190, %v5631_v39  }
 0x335   : >> { %v942_v10 = vpop.permute.xlu1 %941 }
 0x336   : >> { %vm1313_vm11 = vcmp.eq.s32.totalorder %v5547_v17, %v942_v10  ;;  %v949_v10 = vpop.permute.xlu2 %948 }
 0x337   : >> { %v4786_v23 = vsel %vm1313_vm11, 1.0, %v7929_v12  ;;  %vm1314_vm1 = vcmp.eq.s32.totalorder %v5547_v17, %v949_v10  ;;  %vm1250_vm11 = vcmp.eq.s32.totalorder %v5547_v17, %v5812_v52 }
 0x338   : >> { %v1697_v9 = vpack.c.bf16 %v4786_v23, %v4786_v23  ;;  %v4787_v23 = vsel %vm1314_vm1, 1.0, %v7929_v12  ;;  %vm1252_vm1 = vcmp.eq.s32.totalorder %v5547_v17, %v5747_v2 }
 0x339   : >> { %v1698_v5 = vpack.c.bf16 %v4787_v23, %v4787_v23 }
 0x33a   : >> { %5191 = vset.pattern.permute.xlu2 %v5577_v26  ;;  %v1953_v46 = vunpack.c.l.b16 %v1697_v9 }
 0x33b   : >> { %5193 = vset.pattern.permute.xlu1 %v5676_v48  ;;  %v1954_v62 = vunpack.c.l.b16 %v1698_v5 }
 0x33c   : >> { %v512_v13 = vpop.permute.xlu0 %511  ;;  %v2041_v0 = vpack.c.b16 %v1953_v46, %v1952_v1 }
 0x33d   : >> { %vm1242_vm10 = vcmp.eq.s32.totalorder %v5547_v17, %v512_v13  ;;  %4846 = vmatmul.msk.bf16.gmra.mxu0 %vm2078_vm2, %v2005_v56  ;;  %v4718_v56 = vsel %vm1245_vm14, 1.0, %v7929_v12 }
 0x33e   : >> { %4881 = vmatmul.msk.bf16.gmra.mxu2 %vm2078_vm2, %v2040_v32  ;;  %v4715_v18 = vsel %vm1242_vm10, 1.0, %v7929_v12  ;;  %v4717_v32 = vsel %vm1244_vm0, 1.0, %v7929_v12  ;;  %v1629_v27 = vpack.c.bf16 %v4718_v56, %v4718_v56 }
 0x33f   : >> { %v1626_v6 = vpack.c.bf16 %v4715_v18, %v4715_v18  ;;  %v1628_v54 = vpack.c.bf16 %v4717_v32, %v4717_v32 }
 0x341   : >> { %v1882_v21 = vunpack.c.l.b16 %v1626_v6  ;;  %v1885_v6 = vunpack.c.l.b16 %v1629_v27  ;;  %v1884_v49 = vunpack.c.l.b16 %v1628_v54 }
 0x342   : >> { %1051 = vperm.xlu2 %5191, %v5631_v39  }
 0x343   : >> { %1063 = vperm.xlu1 %5193, %v5631_v39   ;;  %v2006_v14 = vpack.c.b16 %v1883_v31, %v1882_v21  ;;  %v961_v21 = vpop.permute.xlu2 %960  ;;  %v2007_v46 = vpack.c.b16 %v1885_v6, %v1884_v49 }
 0x344   : >> { %v6216_v3 = vpop.permute.xlu0 %996  ;;  %vm1316_vm3 = vcmp.eq.s32.totalorder %v5547_v17, %v961_v21 }
 0x345   : >> { %v955_v47 = vpop.permute.xlu1 %954 }
 0x346   : >> { %vm1315_vm15 = vcmp.eq.s32.totalorder %v5547_v17, %v955_v47  ;;  %v4789_v47 = vsel %vm1316_vm3, 1.0, %v7929_v12  ;;  %vm1322_vm3 = vcmp.eq.s32.totalorder %v5547_v17, %v6216_v3 }
 0x347   : >> { %v4788_v13 = vsel %vm1315_vm15, 1.0, %v7929_v12  ;;  %v1700_v10 = vpack.c.bf16 %v4789_v47, %v4789_v47  ;;  %vm1253_vm15 = vcmp.eq.s32.totalorder %v5547_v17, %v5821_v55  ;;  %v4725_v55 = vsel %vm1252_vm1, 1.0, %v7929_v12 }
 0x348   : >> { %v1699_v15 = vpack.c.bf16 %v4788_v13, %v4788_v13  ;;  %v1636_v2 = vpack.c.bf16 %v4725_v55, %v4725_v55 }
 0x349   : >> { %v1956_v53 = vunpack.c.l.b16 %v1700_v10 }
 0x34a   : >> { %5194 = vset.pattern.permute.xlu2 %v5601_v34  ;;  %v1955_v9 = vunpack.c.l.b16 %v1699_v15 }
 0x34b   : >> { %5195 = vset.pattern.permute.xlu1 %v5613_v36 }
 0x34c   : >> { %v6231_v18 = vpop.permute.xlu0 %2847  ;;  %v2042_v1 = vpack.c.b16 %v1955_v9, %v1954_v62  ;;  %v979_v49 = vpop.permute.xlu2 %978  ;;  %v4721_v62 = vsel %vm1248_vm7, 1.0, %v7929_v12 }
 0x34d   : >> { %4847 = vmatmul.msk.bf16.gmra.mxu0 %vm2078_vm2, %v2006_v14  ;;  %7962 = vst [vmem:[#allocation57_spill] sm:$0xff] %v6231_v18  ;;  %v4719_v14 = vsel %vm1246_vm4, 1.0, %v7929_v12  ;;  %vm1319_vm10 = vcmp.eq.s32.totalorder %v5547_v17, %v979_v49  ;;  %v1632_v45 = vpack.c.bf16 %v4721_v62, %v4721_v62  ;;  %vm1255_vm4 = vcmp.eq.s32.totalorder %v5547_v17, %v5830_v58 }
 0x34e   : >> { %4882 = vmatmul.msk.bf16.gmra.mxu2 %vm2078_vm2, %v2041_v0  ;;  %v4790_v0 = vsel %vm1317_vm5, 1.0, %v7929_v12  ;;  %v1630_v13 = vpack.c.bf16 %v4719_v14, %v4719_v14 }
 0x34f   : >> { %v1701_v32 = vpack.c.bf16 %v4790_v0, %v4790_v0  ;;  %v1888_v10 = vunpack.c.l.b16 %v1632_v45 }
 0x350   : >> { %v1886_v23 = vunpack.c.l.b16 %v1630_v13 }
 0x351   : >> { %v1957_v54 = vunpack.c.l.b16 %v1701_v32 }
 0x352   : >> { %1069 = vperm.xlu2 %5194, %v5631_v39  }
 0x353   : >> { %1075 = vperm.xlu1 %5195, %v5631_v39   ;;  %v2043_v9 = vpack.c.b16 %v1957_v54, %v1956_v53  ;;  %v4724_v54 = vsel %vm1251_vm13, 1.0, %v7929_v12  ;;  %vm1332_vm13 = vcmp.eq.s32.totalorder %v5547_v17, %v5775_v11 }
 0x354   : >> { %v6238_v31 = vpop.permute.xlu0 %3332 }
 0x355   : >> { %v973_v5 = vpop.permute.xlu1 %972 }
 0x356   : >> { %vm1318_vm8 = vcmp.eq.s32.totalorder %v5547_v17, %v973_v5 }
 0x357   : >> { %v4791_v21 = vsel %vm1318_vm8, 1.0, %v7929_v12 }
 0x358   : >> { %v1702_v47 = vpack.c.bf16 %v4791_v21, %v4791_v21 }
 0x35a   : >> { %5196 = vset.pattern.permute.xlu2 %v5616_v37  ;;  %v1958_v20 = vunpack.c.l.b16 %v1702_v47 }
 0x35b   : >> { %5198 = vset.pattern.permute.xlu1 %v5696_v59 }
 0x35c   : >> { %v991_v53 = vpop.permute.xlu2 %990 }
 0x35d   : >> { %4848 = vmatmul.msk.bf16.gmra.mxu0 %vm2078_vm2, %v2007_v46  ;;  %v4722_v46 = vsel %vm1249_vm9, 1.0, %v7929_v12  ;;  %vm1321_vm14 = vcmp.eq.s32.totalorder %v5547_v17, %v991_v53 }
 0x35e   : >> { %4883 = vmatmul.msk.bf16.gmra.mxu2 %vm2078_vm2, %v2042_v1  ;;  %v4792_v1 = vsel %vm1319_vm10, 1.0, %v7929_v12  ;;  %v1633_v14 = vpack.c.bf16 %v4722_v46, %v4722_v46  ;;  %v4794_v5 = vsel %vm1321_vm14, 1.0, %v7929_v12  ;;  %vm1256_vm10 = vcmp.eq.s32.totalorder %v5547_v17, %v5810_v51 }
 0x35f   : >> { %v1703_v0 = vpack.c.bf16 %v4792_v1, %v4792_v1  ;;  %v1705_v62 = vpack.c.bf16 %v4794_v5, %v4794_v5 }
 0x361   : >> { %v1959_v13 = vunpack.c.l.b16 %v1703_v0  ;;  %v6286_v21 = vpop.f32.mrf.mxu2  ;;  %v1961_v1 = vunpack.c.l.b16 %v1705_v62 }
 0x362   : >> { %1081 = vperm.xlu2 %5196, %v5631_v39   ;;  %7963 = vst [vmem:[#allocation58_spill] sm:$0xff] %v6286_v21 }
 0x363   : >> { %1093 = vperm.xlu1 %5198, %v5631_v39  }
 0x364   : >> { %v542_v56 = vpop.permute.xlu0 %541 }
 0x365   : >> { %vm1247_vm6 = vcmp.eq.s32.totalorder %v5547_v17, %v542_v56  ;;  %v1889_v56 = vunpack.c.l.b16 %v1633_v14  ;;  %v985_v32 = vpop.permute.xlu1 %984 }
 0x366   : >> { %v4720_v8 = vsel %vm1247_vm6, 1.0, %v7929_v12  ;;  %vm1320_vm12 = vcmp.eq.s32.totalorder %v5547_v17, %v985_v32  ;;  %vm1254_vm6 = vcmp.eq.s32.totalorder %v5547_v17, %v5801_v44 }
 0x367   : >> { %v1631_v27 = vpack.c.bf16 %v4720_v8, %v4720_v8  ;;  %v2009_v8 = vpack.c.b16 %v1889_v56, %v1888_v10 }
 0x369   : >> { %v1887_v15 = vunpack.c.l.b16 %v1631_v27  ;;  %v2044_v27 = vpack.c.b16 %v1959_v13, %v1958_v20  ;;  %v4726_v20 = vsel %vm1253_vm15, 1.0, %v7929_v12  ;;  %v6304_v13 = vpop.f32.mrf.mxu2 }
 0x36a   : >> { %5199 = vset.pattern.permute.xlu2 %v5625_v38  ;;  %7964 = vst [vmem:[#allocation59_spill] sm:$0xff] %v6304_v13  ;;  %v1637_v32 = vpack.c.bf16 %v4726_v20, %v4726_v20 }
 0x36b   : >> { %5200 = vset.pattern.permute.xlu1 %v5637_v40  ;;  %v2008_v6 = vpack.c.b16 %v1887_v15, %v1886_v23  ;;  %v4723_v23 = vsel %vm1250_vm11, 1.0, %v7929_v12  ;;  %v4793_v15 = vsel %vm1320_vm12, 1.0, %v7929_v12  ;;  %vm1257_vm12 = vcmp.eq.s32.totalorder %v5547_v17, %v5754_v4 }
 0x36c   : >> { %v1634_v52 = vpack.c.bf16 %v4723_v23, %v4723_v23  ;;  %v1009_v49 = vpop.permute.xlu2 %1008  ;;  %v1893_v3 = vunpack.c.l.b16 %v1637_v32 }
 0x36d   : >> { %4849 = vmatmul.msk.bf16.gmra.mxu0 %vm2078_vm2, %v2008_v6  ;;  %v1704_v6 = vpack.c.bf16 %v4793_v15, %v4793_v15  ;;  %vm1324_vm7 = vcmp.eq.s32.totalorder %v5547_v17, %v1009_v49 }
 0x36e   : >> { %4884 = vmatmul.msk.bf16.gmra.mxu2 %vm2078_vm2, %v2043_v9  ;;  %v1635_v9 = vpack.c.bf16 %v4724_v54, %v4724_v54  ;;  %v1890_v24 = vunpack.c.l.b16 %v1634_v52  ;;  %v1892_v52 = vunpack.c.l.b16 %v1636_v2 }
 0x36f   : >> { %v1960_v46 = vunpack.c.l.b16 %v1704_v6 }
 0x370   : >> { %v1891_v45 = vunpack.c.l.b16 %v1635_v9  ;;  %v2011_v6 = vpack.c.b16 %v1893_v3, %v1892_v52 }
 0x371   : >> { %v2045_v0 = vpack.c.b16 %v1961_v1, %v1960_v46  ;;  %v6313_v9 = vpop.f32.mrf.mxu2  ;;  %v4728_v46 = vsel %vm1255_vm4, 1.0, %v7929_v12 }
 0x372   : >> { %1099 = vperm.xlu2 %5199, %v5631_v39   ;;  %v2010_v14 = vpack.c.b16 %v1891_v45, %v1890_v24  ;;  %v4727_v45 = vsel %vm1254_vm6, 1.0, %v7929_v12  ;;  %v1639_v1 = vpack.c.bf16 %v4728_v46, %v4728_v46 }
 0x373   : >> { %1105 = vperm.xlu1 %5200, %v5631_v39  }
 0x374   : >> { %v1895_v32 = vunpack.c.l.b16 %v1639_v1 }
 0x375   : >> { %v1003_v47 = vpop.permute.xlu1 %1002 }
 0x376   : >> { %vm1323_vm0 = vcmp.eq.s32.totalorder %v5547_v17, %v1003_v47  ;;  %v4797_v47 = vsel %vm1324_vm7, 1.0, %v7929_v12 }
 0x377   : >> { %v4796_v56 = vsel %vm1323_vm0, 1.0, %v7929_v12 }
 0x379   : >> { %v6333_v49 = vpop.f32.mrf.mxu2 }
 0x37a   : >> { %5201 = vset.pattern.permute.xlu2 %v5640_v41  ;;  %7965 = vst [vmem:[#allocation60_spill] sm:$0xff] %v6333_v49 }
 0x37b   : >> { %5203 = vset.pattern.permute.xlu1 %v5720_v63 }
 0x37c   : >> { %v6292_v10 = vpop.permute.xlu2 %1020 }
 0x37d   : >> { %4850 = vmatmul.msk.bf16.gmra.mxu0 %vm2078_vm2, %v2009_v8  ;;  %v4795_v8 = vsel %vm1322_vm3, 1.0, %v7929_v12  ;;  %vm1326_vm11 = vcmp.eq.s32.totalorder %v5547_v17, %v6292_v10  ;;  %v4730_v10 = vsel %vm1257_vm12, 1.0, %v7929_v12 }
 0x37e   : >> { %4885 = vmatmul.msk.bf16.gmra.mxu2 %vm2078_vm2, %v2044_v27  ;;  %v1707_v27 = vpack.c.bf16 %v4796_v56, %v4796_v56  ;;  %v1706_v15 = vpack.c.bf16 %v4795_v8, %v4795_v8  ;;  %v1708_v56 = vpack.c.bf16 %v4797_v47, %v4797_v47  ;;  %v4799_v46 = vsel %vm1326_vm11, 1.0, %v7929_v12 }
 0x37f   : >> { %v1710_v11 = vpack.c.bf16 %v4799_v46, %v4799_v46  ;;  %v1641_v1 = vpack.c.bf16 %v4730_v10, %v4730_v10 }
 0x380   : >> { %v1963_v54 = vunpack.c.l.b16 %v1707_v27  ;;  %v1962_v5 = vunpack.c.l.b16 %v1706_v15  ;;  %v1964_v15 = vunpack.c.l.b16 %v1708_v56 }
 0x381   : >> { %v6352_v51 = vpop.f32.mrf.mxu2  ;;  %v1966_v56 = vunpack.c.l.b16 %v1710_v11 }
 0x382   : >> { %1111 = vperm.xlu2 %5201, %v5631_v39   ;;  %v2046_v62 = vpack.c.b16 %v1963_v54, %v1962_v5  ;;  %7966 = vst [vmem:[#allocation61_spill] sm:$0xff] %v6352_v51 }
 0x383   : >> { %1123 = vperm.xlu1 %5203, %v5631_v39  }
 0x385   : >> { %v1015_v53 = vpop.permute.xlu1 %1014 }
 0x386   : >> { %vm1325_vm5 = vcmp.eq.s32.totalorder %v5547_v17, %v1015_v53 }
 0x387   : >> { %v4798_v58 = vsel %vm1325_vm5, 1.0, %v7929_v12 }
 0x388   : >> { %v1709_v44 = vpack.c.bf16 %v4798_v58, %v4798_v58  ;;  %v4805_v58 = vsel %vm1332_vm13, 1.0, %v7929_v12 }
 0x38a   : >> { %5204 = vset.pattern.permute.xlu2 %v5649_v42  ;;  %v1965_v27 = vunpack.c.l.b16 %v1709_v44 }
 0x38b   : >> { %5205 = vset.pattern.permute.xlu1 %v5658_v43 }
 0x38c   : >> { %v6309_v23 = vpop.permute.xlu2 %1038  ;;  %v2047_v5 = vpack.c.b16 %v1965_v27, %v1964_v15 }
 0x38d   : >> { %4851 = vmatmul.msk.bf16.gmra.mxu0 %vm2078_vm2, %v2010_v14  ;;  %vm1329_vm4 = vcmp.eq.s32.totalorder %v5547_v17, %v6309_v23 }
 0x38e   : >> { %4886 = vmatmul.msk.bf16.gmra.mxu2 %vm2078_vm2, %v2045_v0  ;;  %v1638_v0 = vpack.c.bf16 %v4727_v45, %v4727_v45 }
 0x390   : >> { %v1894_v53 = vunpack.c.l.b16 %v1638_v0 }
 0x392   : >> { %1129 = vperm.xlu2 %5204, %v5631_v39   ;;  %v2012_v52 = vpack.c.b16 %v1895_v32, %v1894_v53  ;;  %v1897_v32 = vunpack.c.l.b16 %v1641_v1  ;;  %v6364_v53 = vpop.f32.mrf.mxu2 }
 0x393   : >> { %1135 = vperm.xlu1 %5205, %v5631_v39  }
 0x395   : >> { %v6317_v39 = vpop.permute.xlu1 %1032 }
 0x396   : >> { %vm1328_vm1 = vcmp.eq.s32.totalorder %v5547_v17, %v6317_v39 }
 0x397   : >> { %v4801_v46 = vsel %vm1328_vm1, 1.0, %v7929_v12 }
 0x398   : >> { %v1712_v23 = vpack.c.bf16 %v4801_v46, %v4801_v46  ;;  %v7972_v46 = vld [vmem:[#allocation23_spill] sm:$0xff] }
 0x39a   : >> { %5206 = vset.pattern.permute.xlu2 %v5573_v25  ;;  %v6389_v11 = vpop.f32.mrf.mxu2 }
 0x39b   : >> { %5207 = vset.pattern.permute.xlu1 %v5581_v28 }
 0x39c   : >> { %v1052_v24 = vpop.permute.xlu2 %1051 }
 0x39d   : >> { %4852 = vmatmul.msk.bf16.gmra.mxu0 %vm2078_vm2, %v2011_v6  ;;  %vm1331_vm8 = vcmp.eq.s32.totalorder %v5547_v17, %v1052_v24  ;;  %v4729_v24 = vsel %vm1256_vm10, 1.0, %v7929_v12 }
 0x39e   : >> { %4887 = vmatmul.msk.bf16.gmra.mxu2 %vm2078_vm2, %v2046_v62  ;;  %v4804_v14 = vsel %vm1331_vm8, 1.0, %v7929_v12  ;;  %v1027_v62 = vpop.permute.xlu0 %1026  ;;  %v1640_v45 = vpack.c.bf16 %v4729_v24, %v4729_v24 }
 0x39f   : >> { %v1715_v55 = vpack.c.bf16 %v4804_v14, %v4804_v14  ;;  %vm1327_vm14 = vcmp.eq.s32.totalorder %v5547_v17, %v1027_v62  ;;  %v1716_v14 = vpack.c.bf16 %v4805_v58, %v4805_v58  ;;  %v7968_v62 = vld [vmem:[#allocation21_spill] sm:$0xff] }
 0x3a0   : >> { %v4800_v4 = vsel %vm1327_vm14, 1.0, %v7929_v12  ;;  %v1896_v0 = vunpack.c.l.b16 %v1640_v45  ;;  %vm1259_vm3 = vcmp.eq.s32.totalorder %v5547_v17, %v7968_v62  ;;  %v4802_v45 = vsel %vm1329_vm4, 1.0, %v7929_v12  ;;  %v7970_v62 = vld [vmem:[#allocation26_spill] sm:$0xff] }
 0x3a1   : >> { %v1971_v3 = vunpack.c.l.b16 %v1715_v55  ;;  %v1711_v44 = vpack.c.bf16 %v4800_v4, %v4800_v4  ;;  %v1972_v27 = vunpack.c.l.b16 %v1716_v14  ;;  %v4732_v10 = vsel %vm1259_vm3, 1.0, %v7929_v12 }
 0x3a2   : >> { %1142 = vperm.xlu2 %5206, %v5708_v61   ;;  %v1643_v1 = vpack.c.bf16 %v4732_v10, %v4732_v10  ;;  %v1713_v14 = vpack.c.bf16 %v4802_v45, %v4802_v45  ;;  %vm1260_vm7 = vcmp.eq.s32.totalorder %v5547_v17, %v7970_v62  ;;  %v7973_v10 = vld [vmem:[#allocation16_spill] sm:$0xff] }
 0x3a3   : >> { %1154 = vperm.xlu1 %5207, %v5708_v61   ;;  %vm1337_vm10 = vcmp.eq.s32.totalorder %v5547_v17, %v7973_v10 }
 0x3a5   : >> { %v1046_v20 = vpop.permute.xlu1 %1045 }
 0x3a6   : >> { %vm1330_vm9 = vcmp.eq.s32.totalorder %v5547_v17, %v1046_v20 }
 0x3a7   : >> { %v4803_v8 = vsel %vm1330_vm9, 1.0, %v7929_v12  ;;  %vm1261_vm9 = vcmp.eq.s32.totalorder %v5547_v17, %v7972_v46 }
 0x3a8   : >> { %v1714_v2 = vpack.c.bf16 %v4803_v8, %v4803_v8  ;;  %v6362_v8 = vpop.f32.mrf.mxu0 }
 0x3aa   : >> { %v1970_v54 = vunpack.c.l.b16 %v1714_v2  ;;  %5208 = vset.pattern.permute.xlu2 %v5676_v48  ;;  %v1967_v2 = vunpack.c.l.b16 %v1711_v44 }
 0x3ab   : >> { %5209 = vset.pattern.permute.xlu1 %v5601_v34 }
 0x3ac   : >> { %v2050_v6 = vpack.c.b16 %v1971_v3, %v1970_v54  ;;  %v2013_v3 = vpack.c.b16 %v1897_v32, %v1896_v0  ;;  %v2048_v54 = vpack.c.b16 %v1967_v2, %v1966_v56  ;;  %v1968_v56 = vunpack.c.l.b16 %v1712_v23 }
 0x3ad   : >> { %4853 = vmatmul.msk.bf16.gmra.mxu0 %vm2078_vm2, %v2012_v52  ;;  %v1899_v32 = vunpack.c.l.b16 %v1643_v1  ;;  %v4810_v23 = vsel %vm1337_vm10, 1.0, %v7929_v12 }
 0x3ae   : >> { %4888 = vmatmul.msk.bf16.gmra.mxu2 %vm2078_vm2, %v2047_v5  ;;  %4891 = vmatmul.msk.bf16.vlgmr.msra.gmra.mxu3 %vm2078_vm2, %v2050_v6  ;;  %v7967_v5 = vld [vmem:[#allocation25_spill] sm:$0xff]  ;;  %v1070_v6 = vpop.permute.xlu2 %1069 }
 0x3af   : >> { %vm1258_vm0 = vcmp.eq.s32.totalorder %v5547_v17, %v7967_v5  ;;  %vm1334_vm5 = vcmp.eq.s32.totalorder %v5547_v17, %v1070_v6  ;;  %7969 = vst [vmem:[#allocation25_spill] sm:$0xff] %v6389_v11 }
 0x3b0   : >> { %v4731_v24 = vsel %vm1258_vm0, 1.0, %v7929_v12  ;;  %v6384_v39 = vpop.f32.mrf.mxu0  ;;  %v4807_v4 = vsel %vm1334_vm5, 1.0, %v7929_v12 }
 0x3b1   : >> { %v1642_v58 = vpack.c.bf16 %v4731_v24, %v4731_v24  ;;  %v1718_v44 = vpack.c.bf16 %v4807_v4, %v4807_v4  ;;  %v6400_v24 = vpop.f32.mrf.mxu2  ;;  %v4734_v4 = vsel %vm1261_vm9, 1.0, %v7929_v12 }
 0x3b2   : >> { %1160 = vperm.xlu2 %5208, %v5708_v61   ;;  %7971 = vst [vmem:[#allocation21_spill] sm:$0xff] %v6400_v24 }
 0x3b3   : >> { %1166 = vperm.xlu1 %5209, %v5708_v61   ;;  %v1898_v0 = vunpack.c.l.b16 %v1642_v58  ;;  %v1974_v2 = vunpack.c.l.b16 %v1718_v44  ;;  %v4733_v58 = vsel %vm1260_vm7, 1.0, %v7929_v12 }
 0x3b4   : >> { %v1644_v1 = vpack.c.bf16 %v4733_v58, %v4733_v58 }
 0x3b5   : >> { %v1064_v47 = vpop.permute.xlu1 %1063 }
 0x3b6   : >> { %vm1333_vm15 = vcmp.eq.s32.totalorder %v5547_v17, %v1064_v47 }
 0x3b7   : >> { %v4806_v20 = vsel %vm1333_vm15, 1.0, %v7929_v12 }
 0x3b8   : >> { %v1717_v55 = vpack.c.bf16 %v4806_v20, %v4806_v20 }
 0x3ba   : >> { %v1973_v15 = vunpack.c.l.b16 %v1717_v55  ;;  %5210 = vset.pattern.permute.xlu2 %v5613_v36 }
 0x3bb   : >> { %5211 = vset.pattern.permute.xlu1 %v5598_v33 }
 0x3bc   : >> { %v2051_v52 = vpack.c.b16 %v1973_v15, %v1972_v27  ;;  %v1969_v27 = vunpack.c.l.b16 %v1713_v14  ;;  %v1645_v14 = vpack.c.bf16 %v4734_v4, %v4734_v4 }
 0x3bd   : >> { %4854 = vmatmul.msk.bf16.gmra.mxu0 %vm2078_vm2, %v2013_v3  ;;  %v2014_v3 = vpack.c.b16 %v1899_v32, %v1898_v0  ;;  %v1721_v0 = vpack.c.bf16 %v4810_v23, %v4810_v23 }
 0x3be   : >> { %4889 = vmatmul.msk.bf16.gmra.mxu2 %vm2078_vm2, %v2048_v54  ;;  %4892 = vmatmul.msk.bf16.gmra.mxu3 %vm2078_vm2, %v2051_v52  ;;  %v6394_v54 = vpop.f32.mrf.mxu0  ;;  %v1082_v52 = vpop.permute.xlu2 %1081  ;;  %v2049_v5 = vpack.c.b16 %v1969_v27, %v1968_v56 }
 0x3bf   : >> { %vm1336_vm8 = vcmp.eq.s32.totalorder %v5547_v17, %v1082_v52  ;;  %v1977_v32 = vunpack.c.l.b16 %v1721_v0 }
 0x3c0   : >> { %v4809_v45 = vsel %vm1336_vm8, 1.0, %v7929_v12 }
 0x3c2   : >> { %1172 = vperm.xlu2 %5210, %v5708_v61  }
 0x3c3   : >> { %1184 = vperm.xlu1 %5211, %v5708_v61  }
 0x3c5   : >> { %v1076_v47 = vpop.permute.xlu1 %1075 }
 0x3c6   : >> { %vm1335_vm6 = vcmp.eq.s32.totalorder %v5547_v17, %v1076_v47  ;;  %v1720_v47 = vpack.c.bf16 %v4809_v45, %v4809_v45  ;;  %v6415_v44 = vpop.f32.mrf.mxu0 }
 0x3c7   : >> { %v4808_v20 = vsel %vm1335_vm6, 1.0, %v7929_v12 }
 0x3c8   : >> { %v1719_v55 = vpack.c.bf16 %v4808_v20, %v4808_v20  ;;  %v1900_v20 = vunpack.c.l.b16 %v1644_v1  ;;  %v1976_v56 = vunpack.c.l.b16 %v1720_v47 }
 0x3ca   : >> { %v1975_v15 = vunpack.c.l.b16 %v1719_v55  ;;  %5212 = vset.pattern.permute.xlu2 %v5696_v59  ;;  %v1901_v55 = vunpack.c.l.b16 %v1645_v14 }
 0x3cb   : >> { %5213 = vset.pattern.permute.xlu1 %v5625_v38 }
 0x3cc   : >> { %v2052_v6 = vpack.c.b16 %v1975_v15, %v1974_v2  ;;  %v2015_v27 = vpack.c.b16 %v1901_v55, %v1900_v20  ;;  %v2053_v15 = vpack.c.b16 %v1977_v32, %v1976_v56  ;;  %v1100_v52 = vpop.permute.xlu2 %1099 }
 0x3cd   : >> { %4855 = vmatmul.msk.bf16.gmra.mxu0 %vm2078_vm2, %v2014_v3  ;;  %v7974_v3 = vld [vmem:[#allocation27_spill] sm:$0xff]  ;;  %vm1339_vm14 = vcmp.eq.s32.totalorder %v5547_v17, %v1100_v52 }
 0x3ce   : >> { %4890 = vmatmul.msk.bf16.gmra.mxu2 %vm2078_vm2, %v2049_v5  ;;  %4893 = vmatmul.msk.bf16.gmra.mxu3 %vm2078_vm2, %v2052_v6  ;;  %vm1263_vm11 = vcmp.eq.s32.totalorder %v5547_v17, %v7974_v3  ;;  %v7975_v5 = vld [vmem:[#allocation14_spill] sm:$0xff]  ;;  %v6426_v6 = vpop.f32.mrf.mxu0  ;;  %v4812_v45 = vsel %vm1339_vm14, 1.0, %v7929_v12  ;;  %v7977_v3 = vld [vmem:[#allocation24_spill] sm:$0xff] }
 0x3cf   : >> { %vm1262_vm13 = vcmp.eq.s32.totalorder %v5547_v17, %v7975_v5  ;;  %v4736_v62 = vsel %vm1263_vm11, 1.0, %v7929_v12  ;;  %v1723_v1 = vpack.c.bf16 %v4812_v45, %v4812_v45  ;;  %vm1264_vm1 = vcmp.eq.s32.totalorder %v5547_v17, %v7977_v3 }
 0x3d0   : >> { %v4735_v10 = vsel %vm1262_vm13, 1.0, %v7929_v12  ;;  %v1647_v58 = vpack.c.bf16 %v4736_v62, %v4736_v62  ;;  %v4737_v62 = vsel %vm1264_vm1, 1.0, %v7929_v12 }
 0x3d1   : >> { %v1646_v23 = vpack.c.bf16 %v4735_v10, %v4735_v10  ;;  %v1979_v56 = vunpack.c.l.b16 %v1723_v1 }
 0x3d2   : >> { %1190 = vperm.xlu2 %5212, %v5708_v61   ;;  %v1903_v47 = vunpack.c.l.b16 %v1647_v58 }
 0x3d3   : >> { %1196 = vperm.xlu1 %5213, %v5708_v61   ;;  %v1902_v0 = vunpack.c.l.b16 %v1646_v23 }
 0x3d5   : >> { %v1094_v2 = vpop.permute.xlu1 %1093  ;;  %v2016_v55 = vpack.c.b16 %v1903_v47, %v1902_v0 }
 0x3d6   : >> { %vm1338_vm12 = vcmp.eq.s32.totalorder %v5547_v17, %v1094_v2  ;;  %v6435_v20 = vpop.f32.mrf.mxu0  ;;  %v7976_v2 = vld [vmem:[#allocation29_spill] sm:$0xff] }
 0x3d7   : >> { %v4811_v46 = vsel %vm1338_vm12, 1.0, %v7929_v12  ;;  %vm1265_vm15 = vcmp.eq.s32.totalorder %v5547_v17, %v7976_v2  ;;  %v7978_v2 = vld [vmem:[#allocation18_spill] sm:$0xff] }
 0x3d8   : >> { %v1722_v4 = vpack.c.bf16 %v4811_v46, %v4811_v46  ;;  %v4738_v52 = vsel %vm1265_vm15, 1.0, %v7929_v12  ;;  %vm1342_vm5 = vcmp.eq.s32.totalorder %v5547_v17, %v7978_v2  ;;  %v7980_v2 = vld [vmem:[#allocation28_spill] sm:$0xff] }
 0x3d9   : >> { %v1649_v46 = vpack.c.bf16 %v4738_v52, %v4738_v52  ;;  %v4815_v3 = vsel %vm1342_vm5, 1.0, %v7929_v12  ;;  %v7979_v52 = vld [vmem:[#allocation15_spill] sm:$0xff]  ;;  %vm1347_vm9 = vcmp.eq.s32.totalorder %v5547_v17, %v7980_v2 }
 0x3da   : >> { %5214 = vset.pattern.permute.xlu2 %v5637_v40  ;;  %v1978_v14 = vunpack.c.l.b16 %v1722_v4  ;;  %v1648_v4 = vpack.c.bf16 %v4737_v62, %v4737_v62  ;;  %v1726_v62 = vpack.c.bf16 %v4815_v3, %v4815_v3  ;;  %v4820_v3 = vsel %vm1347_vm9, 1.0, %v7929_v12 }
 0x3db   : >> { %5215 = vset.pattern.permute.xlu1 %v5610_v35  ;;  %v1905_v1 = vunpack.c.l.b16 %v1649_v46 }
 0x3dd   : >> { %4856 = vmatmul.msk.bf16.gmra.mxu0 %vm2078_vm2, %v2015_v27  ;;  %v2054_v27 = vpack.c.b16 %v1979_v56, %v1978_v14  ;;  %v1904_v14 = vunpack.c.l.b16 %v1648_v4 }
 0x3de   : >> { %4894 = vmatmul.msk.bf16.gmra.mxu3 %vm2078_vm2, %v2053_v15  ;;  %v1112_v15 = vpop.permute.xlu2 %1111  ;;  %v6451_v10 = vpop.f32.mrf.mxu0 }
 0x3df   : >> { %vm1341_vm3 = vcmp.eq.s32.totalorder %v5547_v17, %v1112_v15  ;;  %v2017_v56 = vpack.c.b16 %v1905_v1, %v1904_v14 }
 0x3e0   : >> { %v4814_v58 = vsel %vm1341_vm3, 1.0, %v7929_v12 }
 0x3e1   : >> { %v1725_v23 = vpack.c.bf16 %v4814_v58, %v4814_v58  ;;  %v1982_v58 = vunpack.c.l.b16 %v1726_v62  ;;  %v1731_v62 = vpack.c.bf16 %v4820_v3, %v4820_v3 }
 0x3e2   : >> { %1202 = vperm.xlu2 %5214, %v5708_v61  }
 0x3e3   : >> { %1214 = vperm.xlu1 %5215, %v5708_v61   ;;  %v1981_v0 = vunpack.c.l.b16 %v1725_v23 }
 0x3e5   : >> { %v1106_v32 = vpop.permute.xlu1 %1105 }
 0x3e6   : >> { %vm1340_vm0 = vcmp.eq.s32.totalorder %v5547_v17, %v1106_v32 }
 0x3e7   : >> { %v4813_v5 = vsel %vm1340_vm0, 1.0, %v7929_v12 }
 0x3e8   : >> { %v1724_v45 = vpack.c.bf16 %v4813_v5, %v4813_v5 }
 0x3ea   : >> { %5216 = vset.pattern.permute.xlu2 %v5720_v63  ;;  %v1980_v47 = vunpack.c.l.b16 %v1724_v45 }
 0x3eb   : >> { %5217 = vset.pattern.permute.xlu1 %v5649_v42 }
 0x3ec   : >> { %v2055_v32 = vpack.c.b16 %v1981_v0, %v1980_v47  ;;  %v1130_v23 = vpop.permute.xlu2 %1129 }
 0x3ed   : >> { %4857 = vmatmul.msk.bf16.gmra.mxu0 %vm2078_vm2, %v2016_v55  ;;  %vm1344_vm7 = vcmp.eq.s32.totalorder %v5547_v17, %v1130_v23 }
 0x3ee   : >> { %4895 = vmatmul.msk.bf16.gmra.mxu3 %vm2078_vm2, %v2054_v27  ;;  %v6457_v27 = vpop.f32.mrf.mxu0  ;;  %v4817_v1 = vsel %vm1344_vm7, 1.0, %v7929_v12 }
 0x3ef   : >> { %v1728_v14 = vpack.c.bf16 %v4817_v1, %v4817_v1 }
 0x3f2   : >> { %1220 = vperm.xlu2 %5216, %v5708_v61  }
 0x3f3   : >> { %1226 = vperm.xlu1 %5217, %v5708_v61  }
 0x3f5   : >> { %v1124_v55 = vpop.permute.xlu1 %1123 }
 0x3f6   : >> { %vm1343_vm4 = vcmp.eq.s32.totalorder %v5547_v17, %v1124_v55 }
 0x3f7   : >> { %v4816_v15 = vsel %vm1343_vm4, 1.0, %v7929_v12 }
 0x3f8   : >> { %v1727_v5 = vpack.c.bf16 %v4816_v15, %v4816_v15 }
 0x3fa   : >> { %5218 = vset.pattern.permute.xlu2 %v5658_v43  ;;  %v1983_v46 = vunpack.c.l.b16 %v1727_v5 }
 0x3fb   : >> { %5219 = vset.pattern.permute.xlu1 %v5577_v26 }
 0x3fc   : >> { %v2056_v4 = vpack.c.b16 %v1983_v46, %v1982_v58  ;;  %v1143_v55 = vpop.permute.xlu2 %1142  ;;  %v1987_v58 = vunpack.c.l.b16 %v1731_v62 }
 0x3fd   : >> { %4858 = vmatmul.msk.bf16.gmra.mxu0 %vm2078_vm2, %v2017_v56  ;;  %v1984_v56 = vunpack.c.l.b16 %v1728_v14  ;;  %vm1346_vm8 = vcmp.eq.s32.totalorder %v5547_v17, %v1143_v55 }
 0x3fe   : >> { %4896 = vmatmul.msk.bf16.gmra.mxu3 %vm2078_vm2, %v2055_v32  ;;  %v4819_v15 = vsel %vm1346_vm8, 1.0, %v7929_v12 }
 0x3ff   : >> { %v1730_v5 = vpack.c.bf16 %v4819_v15, %v4819_v15 }
 0x401   : >> { %v1986_v46 = vunpack.c.l.b16 %v1730_v5 }
 0x402   : >> { %1232 = vperm.xlu2 %5218, %v5708_v61  }
 0x403   : >> { %2611 = vperm.xlu1 %5219, %v7979_v52  }
 0x405   : >> { %v1136_v45 = vpop.permute.xlu1 %1135 }
 0x406   : >> { %vm1345_vm6 = vcmp.eq.s32.totalorder %v5547_v17, %v1136_v45 }
 0x407   : >> { %v4818_v61 = vsel %vm1345_vm6, 1.0, %v7929_v12 }
 0x408   : >> { %v1729_v47 = vpack.c.bf16 %v4818_v61, %v4818_v61 }
 0x40a   : >> { %5220 = vset.pattern.permute.xlu2 %v5581_v28  ;;  %v1985_v0 = vunpack.c.l.b16 %v1729_v47 }
 0x40b   : >> { %5221 = vset.pattern.permute.xlu1 %v5676_v48 }
 0x40c   : >> { %v2057_v32 = vpack.c.b16 %v1985_v0, %v1984_v56  ;;  %v1161_v23 = vpop.permute.xlu2 %1160  ;;  %v6498_v56 = vpop.f32.mrf.mxu0 }
 0x40d   : >> { %vm1349_vm11 = vcmp.eq.s32.totalorder %v5547_v17, %v1161_v23 }
 0x40e   : >> { %4897 = vmatmul.msk.bf16.gmra.mxu3 %vm2078_vm2, %v2056_v4  ;;  %v2058_v4 = vpack.c.b16 %v1987_v58, %v1986_v46  ;;  %v4822_v47 = vsel %vm1349_vm11, 1.0, %v7929_v12 }
 0x40f   : >> { %v1733_v0 = vpack.c.bf16 %v4822_v47, %v4822_v47 }
 0x411   : >> { %v1989_v2 = vunpack.c.l.b16 %v1733_v0 }
 0x412   : >> { %2617 = vperm.xlu2 %5220, %v7979_v52  }
 0x413   : >> { %2623 = vperm.xlu1 %5221, %v7979_v52  }
 0x414   : >> { %v6510_v58 = vpop.f32.mrf.mxu0 }
 0x415   : >> { %v1155_v45 = vpop.permute.xlu1 %1154 }
 0x416   : >> { %vm1348_vm10 = vcmp.eq.s32.totalorder %v5547_v17, %v1155_v45 }
 0x417   : >> { %v4821_v61 = vsel %vm1348_vm10, 1.0, %v7929_v12 }
 0x418   : >> { %v1732_v14 = vpack.c.bf16 %v4821_v61, %v4821_v61 }
 0x41a   : >> { %5222 = vset.pattern.permute.xlu2 %v5601_v34  ;;  %v1988_v55 = vunpack.c.l.b16 %v1732_v14 }
 0x41b   : >> { %5223 = vset.pattern.permute.xlu1 %v5616_v37 }
 0x41c   : >> { %v2059_v3 = vpack.c.b16 %v1989_v2, %v1988_v55  ;;  %v1173_v5 = vpop.permute.xlu2 %1172  ;;  %v6519_v55 = vpop.f32.mrf.mxu0 }
 0x41d   : >> { %vm1351_vm13 = vcmp.eq.s32.totalorder %v5547_v17, %v1173_v5 }
 0x41e   : >> { %4898 = vmatmul.msk.bf16.gmra.mxu3 %vm2078_vm2, %v2057_v32  ;;  %v4824_v45 = vsel %vm1351_vm13, 1.0, %v7929_v12 }
 0x41f   : >> { %v1735_v23 = vpack.c.bf16 %v4824_v45, %v4824_v45 }
 0x421   : >> { %v1991_v14 = vunpack.c.l.b16 %v1735_v23 }
 0x422   : >> { %2629 = vperm.xlu2 %5222, %v7979_v52  }
 0x423   : >> { %2641 = vperm.xlu1 %5223, %v7979_v52  }
 0x425   : >> { %v1167_v15 = vpop.permute.xlu1 %1166 }
 0x426   : >> { %vm1350_vm12 = vcmp.eq.s32.totalorder %v5547_v17, %v1167_v15 }
 0x427   : >> { %v4823_v62 = vsel %vm1350_vm12, 1.0, %v7929_v12 }
 0x42a   : >> { %5224 = vset.pattern.permute.xlu2 %v5598_v33 }
 0x42b   : >> { %5225 = vset.pattern.permute.xlu1 %v5696_v59 }
 0x42c   : >> { %v1191_v2 = vpop.permute.xlu2 %1190 }
 0x42d   : >> { %vm1354_vm1 = vcmp.eq.s32.totalorder %v5547_v17, %v1191_v2 }
 0x42e   : >> { %4899 = vmatmul.msk.bf16.gmra.mxu3 %vm2078_vm2, %v2058_v4  ;;  %v1734_v4 = vpack.c.bf16 %v4823_v62, %v4823_v62 }
 0x430   : >> { %v1990_v61 = vunpack.c.l.b16 %v1734_v4 }
 0x431   : >> { %v6493_v1 = vpop.f32.mrf.mxu3 }
 0x432   : >> { %2647 = vperm.xlu2 %5224, %v7979_v52   ;;  %v2060_v15 = vpack.c.b16 %v1991_v14, %v1990_v61  ;;  %v6531_v14 = vpop.f32.mrf.mxu0 }
 0x433   : >> { %2653 = vperm.xlu1 %5225, %v7979_v52   ;;  %7985 = vst [vmem:[#allocation27_spill] sm:$0xff] %v6531_v14 }
 0x435   : >> { %v1185_v0 = vpop.permute.xlu1 %1184 }
 0x436   : >> { %vm1353_vm14 = vcmp.eq.s32.totalorder %v5547_v17, %v1185_v0 }
 0x437   : >> { %v4826_v5 = vsel %vm1353_vm14, 1.0, %v7929_v12  ;;  %vm3496_vm14 = vcmp.eq.s32.totalorder %v5547_v17, %v6238_v31 }
 0x438   : >> { %v1737_v4 = vpack.c.bf16 %v4826_v5, %v4826_v5 }
 0x439   : >> { %v6500_v32 = vpop.f32.mrf.mxu3 }
 0x43a   : >> { %7981 = vst [vmem:[#allocation26_spill] sm:$0xff] %v6500_v32  ;;  %5226 = vset.pattern.permute.xlu2 %v5625_v38  ;;  %v1993_v0 = vunpack.c.l.b16 %v1737_v4  ;;  %v6539_v5 = vpop.f32.mrf.mxu0 }
 0x43b   : >> { %5227 = vset.pattern.permute.xlu1 %v5640_v41 }
 0x43c   : >> { %v1203_v23 = vpop.permute.xlu2 %1202 }
 0x43d   : >> { %vm1356_vm4 = vcmp.eq.s32.totalorder %v5547_v17, %v1203_v23 }
 0x43e   : >> { %4900 = vmatmul.msk.bf16.gmra.mxu3 %vm2078_vm2, %v2059_v3  ;;  %v7983_v3 = vld [vmem:[#allocation31_spill] sm:$0xff] }
 0x43f   : >> { %vm1352_vm15 = vcmp.eq.s32.totalorder %v5547_v17, %v7983_v3 }
 0x440   : >> { %v4825_v45 = vsel %vm1352_vm15, 1.0, %v7929_v12 }
 0x441   : >> { %v6508_v46 = vpop.f32.mrf.mxu3  ;;  %v1736_v61 = vpack.c.bf16 %v4825_v45, %v4825_v45 }
 0x442   : >> { %7982 = vst [vmem:[#allocation23_spill] sm:$0xff] %v6508_v46  ;;  %2659 = vperm.xlu2 %5226, %v7979_v52  }
 0x443   : >> { %2671 = vperm.xlu1 %5227, %v7979_v52   ;;  %v1992_v16 = vunpack.c.l.b16 %v1736_v61  ;;  %v4827_v61 = vsel %vm1354_vm1, 1.0, %v7929_v12 }
 0x445   : >> { %v1197_v3 = vpop.permute.xlu1 %1196 }
 0x446   : >> { %vm1355_vm0 = vcmp.eq.s32.totalorder %v5547_v17, %v1197_v3 }
 0x447   : >> { %v4828_v45 = vsel %vm1355_vm0, 1.0, %v7929_v12 }
 0x448   : >> { %v1739_v32 = vpack.c.bf16 %v4828_v45, %v4828_v45  ;;  %v7989_v45 = vld [vmem:[#allocation33_spill] sm:$0xff] }
 0x449   : >> { %v6515_v47 = vpop.f32.mrf.mxu3  ;;  %vm1357_vm5 = vcmp.eq.s32.totalorder %v5547_v17, %v7989_v45 }
 0x44a   : >> { %5228 = vset.pattern.permute.xlu2 %v5610_v35  ;;  %v1995_v3 = vunpack.c.l.b16 %v1739_v32 }
 0x44b   : >> { %5229 = vset.pattern.permute.xlu1 %v5720_v63 }
 0x44c   : >> { %v1221_v46 = vpop.permute.xlu2 %1220 }
 0x44d   : >> { %vm1359_vm7 = vcmp.eq.s32.totalorder %v5547_v17, %v1221_v46 }
 0x44e   : >> { %4901 = vmatmul.msk.bf16.gmra.mxu3 %vm2078_vm2, %v2060_v15 }
 0x451   : >> { %v6526_v62 = vpop.f32.mrf.mxu3 }
 0x452   : >> { %7984 = vst [vmem:[#allocation16_spill] sm:$0xff] %v6526_v62  ;;  %2677 = vperm.xlu2 %5228, %v7979_v52   ;;  %v2061_v62 = vpack.c.b16 %v1993_v0, %v1992_v16  ;;  %v1738_v0 = vpack.c.bf16 %v4827_v61, %v4827_v61  ;;  %v4829_v61 = vsel %vm1356_vm4, 1.0, %v7929_v12 }
 0x453   : >> { %2683 = vperm.xlu1 %5229, %v7979_v52   ;;  %v1740_v23 = vpack.c.bf16 %v4829_v61, %v4829_v61 }
 0x454   : >> { %v1994_v51 = vunpack.c.l.b16 %v1738_v0 }
 0x456   : >> { %v2062_v2 = vpack.c.b16 %v1995_v3, %v1994_v51  ;;  %v1215_v3 = vpop.permute.xlu1 %1214 }
 0x457   : >> { %vm1358_vm6 = vcmp.eq.s32.totalorder %v5547_v17, %v1215_v3 }
 0x458   : >> { %v4831_v61 = vsel %vm1358_vm6, 1.0, %v7929_v12 }
 0x459   : >> { %v6533_v15 = vpop.f32.mrf.mxu3 }
 0x45a   : >> { %7986 = vst [vmem:[#allocation14_spill] sm:$0xff] %v6533_v15  ;;  %5230 = vset.pattern.permute.xlu2 %v5649_v42  ;;  %v7987_v15 = vld [vmem:[#allocation34_spill] sm:$0xff] }
 0x45b   : >> { %5231 = vset.pattern.permute.xlu1 %v5573_v25 }
 0x45c   : >> { %v1233_v16 = vpop.permute.xlu2 %1232 }
 0x45d   : >> { %vm1361_vm9 = vcmp.eq.s32.totalorder %v5547_v17, %v1233_v16 }
 0x45e   : >> { %4902 = vmatmul.msk.bf16.gmra.mxu3 %vm2078_vm2, %v2061_v62  ;;  %v6550_v62 = vpop.f32.mrf.mxu0 }
 0x461   : >> { %v6543_v4 = vpop.f32.mrf.mxu3 }
 0x462   : >> { %2689 = vperm.xlu2 %5230, %v7979_v52  }
 0x463   : >> { %2702 = vperm.xlu1 %5231, %v7987_v15  }
 0x466   : >> { %v6567_v51 = vpop.f32.mrf.mxu0 }
 0x467   : >> { %7991 = vst [vmem:[#allocation18_spill] sm:$0xff] %v6567_v51 }
 0x469   : >> { %v6548_v24 = vpop.f32.mrf.mxu3 }
 0x46a   : >> { %7988 = vst [vmem:[#allocation29_spill] sm:$0xff] %v6548_v24  ;;  %5232 = vset.pattern.permute.xlu2 %v5577_v26 }
 0x46b   : >> { %5233 = vset.pattern.permute.xlu1 %v5581_v28 }
 0x46c   : >> { %v2618_v13 = vpop.permute.xlu2 %2617 }
 0x46d   : >> { %vm3378_vm3 = vcmp.eq.s32.totalorder %v5547_v17, %v2618_v13  ;;  %v4830_v13 = vsel %vm1357_vm5, 1.0, %v7929_v12 }
 0x46e   : >> { %v4909_v52 = vsel %vm3378_vm3, 1.0, %v7929_v12  ;;  %4903 = vmatmul.msk.bf16.gmra.mxu3 %vm2078_vm2, %v2062_v2  ;;  %v1741_v2 = vpack.c.bf16 %v4830_v13, %v4830_v13  ;;  %v6573_v24 = vpop.f32.mrf.mxu0  ;;  %vm3406_vm3 = vcmp.eq.s32.totalorder %v5547_v17, %v6135_v60 }
 0x46f   : >> { %v3762_v32 = vmul.f32 %v4909_v52, %v6394_v54  ;;  %v1996_v54 = vunpack.c.l.b16 %v1740_v23  ;;  %v4832_v23 = vsel %vm1359_vm7, 1.0, %v7929_v12 }
 0x470   : >> { %v1997_v45 = vunpack.c.l.b16 %v1741_v2  ;;  %v1742_v2 = vpack.c.bf16 %v4831_v61, %v4831_v61 }
 0x471   : >> { %v6562_v0 = vpop.f32.mrf.mxu3  ;;  %3892 = vadd.xlane.f32.xlu0 %v3762_v32 }
 0x472   : >> { %7990 = vst [vmem:[#allocation24_spill] sm:$0xff] %v6562_v0  ;;  %2708 = vperm.xlu2 %5232, %v7987_v15   ;;  %v2063_v32 = vpack.c.b16 %v1997_v45, %v1996_v54  ;;  %v1227_v0 = vpop.permute.xlu1 %1226  ;;  %v1743_v45 = vpack.c.bf16 %v4832_v23, %v4832_v23  ;;  %v1998_v3 = vunpack.c.l.b16 %v1742_v2 }
 0x473   : >> { %2714 = vperm.xlu1 %5233, %v7987_v15   ;;  %vm1360_vm8 = vcmp.eq.s32.totalorder %v5547_v17, %v1227_v0 }
 0x474   : >> { %v1999_v46 = vunpack.c.l.b16 %v1743_v45  ;;  %v4833_v61 = vsel %vm1360_vm8, 1.0, %v7929_v12  ;;  %v4834_v45 = vsel %vm1361_vm9, 1.0, %v7929_v12 }
 0x475   : >> { %v1745_v19 = vpack.c.bf16 %v4834_v45, %v4834_v45 }
 0x476   : >> { %v6586_v11 = vpop.f32.mrf.mxu0 }
 0x479   : >> { %v6569_v52 = vpop.f32.mrf.mxu3 }
 0x47a   : >> { %5234 = vset.pattern.permute.xlu2 %v5676_v48  ;;  %v6584_v54 = vpop.permute.xlu1 %2611 }
 0x47b   : >> { %5235 = vset.pattern.permute.xlu1 %v5613_v36 }
 0x47c   : >> { %v6592_v49 = vpop.permute.xlu2 %2629 }
 0x47e   : >> { %4904 = vmatmul.msk.bf16.gmra.mxu3 %vm2078_vm2, %v2063_v32  ;;  %v6602_v2 = vpop.f32.mrf.mxu0 }
 0x47f   : >> { %7994 = vst [vmem:[#allocation31_spill] sm:$0xff] %v6602_v2  ;;  %v2001_v2 = vunpack.c.l.b16 %v1745_v19 }
 0x481   : >> { %v6579_v13 = vpop.f32.mrf.mxu3 }
 0x482   : >> { %7992 = vst [vmem:[#allocation15_spill] sm:$0xff] %v6579_v13  ;;  %2720 = vperm.xlu2 %5234, %v7987_v15   ;;  %v2064_v13 = vpack.c.b16 %v1999_v46, %v1998_v3  ;;  %v1744_v3 = vpack.c.bf16 %v4833_v61, %v4833_v61 }
 0x483   : >> { %2732 = vperm.xlu1 %5235, %v7987_v15  }
 0x485   : >> { %v6594_v21 = vpop.permute.xlu1 %2623 }
 0x486   : >> { %v2325_v61 = vpop.f32.mrf.mxu0 }
 0x489   : >> { %v6588_v32 = vpop.f32.mrf.mxu3 }
 0x48a   : >> { %5236 = vset.pattern.permute.xlu2 %v5616_v37 }
 0x48b   : >> { %5237 = vset.pattern.permute.xlu1 %v5598_v33 }
 0x48c   : >> { %v6607_v46 = vpop.permute.xlu2 %2647 }
 0x48e   : >> { %4905 = vmatmul.msk.bf16.gmra.mxu3 %vm2078_vm2, %v2064_v13  ;;  %v2000_v13 = vunpack.c.l.b16 %v1744_v3  ;;  %v6624_v19 = vpop.f32.mrf.mxu0 }
 0x48f   : >> { %7997 = vst [vmem:[#allocation62_spill] sm:$0xff] %v6624_v19 }
 0x490   : >> { %v2065_v51 = vpack.c.b16 %v2001_v2, %v2000_v13 }
 0x491   : >> { %v6600_v23 = vpop.f32.mrf.mxu3 }
 0x492   : >> { %7993 = vst [vmem:[#allocation28_spill] sm:$0xff] %v6600_v23  ;;  %2738 = vperm.xlu2 %5236, %v7987_v15  }
 0x493   : >> { %2744 = vperm.xlu1 %5237, %v7987_v15  }
 0x495   : >> { %v2642_v0 = vpop.permute.xlu1 %2641 }
 0x496   : >> { %vm3382_vm10 = vcmp.eq.s32.totalorder %v5547_v17, %v2642_v0  ;;  %v6633_v2 = vpop.f32.mrf.mxu0 }
 0x497   : >> { %v4913_v16 = vsel %vm3382_vm10, 1.0, %v7929_v12  ;;  %7999 = vst [vmem:[#allocation64_spill] sm:$0xff] %v6633_v2 }
 0x498   : >> { %v3766_v23 = vmul.f32 %v4913_v16, %v6451_v10  ;;  %v8001_v16 = vld [vmem:[#allocation43_spill] sm:$0xff] }
 0x499   : >> { %v6612_v18 = vpop.f32.mrf.mxu3  ;;  %vm3391_vm12 = vcmp.eq.s32.totalorder %v5547_v17, %v8001_v16 }
 0x49a   : >> { %7995 = vst [vmem:[#allocation34_spill] sm:$0xff] %v6612_v18  ;;  %3900 = vadd.xlane.f32.xlu0 %v3766_v23  ;;  %5238 = vset.pattern.permute.xlu2 %v5696_v59  ;;  %v4922_v13 = vsel %vm3391_vm12, 1.0, %v7929_v12 }
 0x49b   : >> { %5239 = vset.pattern.permute.xlu1 %v5637_v40 }
 0x49c   : >> { %v2660_v14 = vpop.permute.xlu2 %2659 }
 0x49d   : >> { %vm3385_vm11 = vcmp.eq.s32.totalorder %v5547_v17, %v2660_v14 }
 0x49e   : >> { %v4916_v45 = vsel %vm3385_vm11, 1.0, %v7929_v12  ;;  %4906 = vmatmul.msk.bf16.gmra.mxu3 %vm2078_vm2, %v2065_v51 }
 0x49f   : >> { %v3769_v3 = vmul.f32 %v4916_v45, %v6510_v58  ;;  %v3775_v45 = vmul.f32 %v4922_v13, %v6573_v24 }
 0x4a1   : >> { %v6620_v10 = vpop.f32.mrf.mxu3 }
 0x4a2   : >> { %7996 = vst [vmem:[#allocation33_spill] sm:$0xff] %v6620_v10  ;;  %3906 = vadd.xlane.f32.xlu0 %v3769_v3  ;;  %2750 = vperm.xlu2 %5238, %v7987_v15  }
 0x4a3   : >> { %2762 = vperm.xlu1 %5239, %v7987_v15  }
 0x4a9   : >> { %v6626_v23 = vpop.f32.mrf.mxu3 }
 0x4aa   : >> { %7998 = vst [vmem:[#allocation63_spill] sm:$0xff] %v6626_v23  ;;  %5240 = vset.pattern.permute.xlu2 %v5640_v41 }
 0x4ab   : >> { %5241 = vset.pattern.permute.xlu1 %v5610_v35 }
 0x4ac   : >> { %v2678_v14 = vpop.permute.xlu2 %2677 }
 0x4ad   : >> { %vm3388_vm2 = vcmp.eq.s32.totalorder %v5547_v17, %v2678_v14 }
 0x4ae   : >> { %v4919_v58 = vsel %vm3388_vm2, 1.0, %v7929_v12 }
 0x4af   : >> { %v3772_v51 = vmul.f32 %v4919_v58, %v6539_v5  ;;  %v2332_v5 = vpop.f32.mrf.mxu0 }
 0x4b1   : >> { %v6635_v0 = vpop.f32.mrf.mxu3  ;;  %3912 = vadd.xlane.f32.xlu0 %v3772_v51  ;;  %v6653_v51 = vpop.permute.xlu1 %2653 }
 0x4b2   : >> { %8000 = vst [vmem:[#allocation65_spill] sm:$0xff] %v6635_v0  ;;  %2768 = vperm.xlu2 %5240, %v7987_v15  }
 0x4b3   : >> { %2774 = vperm.xlu1 %5241, %v7987_v15  }
 0x4b7   : >> { %v6651_v58 = vpop.f32.mrf.mxu0 }
 0x4b8   : >> { %8003 = vst [vmem:[#allocation66_spill] sm:$0xff] %v6651_v58 }
 0x4b9   : >> { %v6643_v3 = vpop.f32.mrf.mxu3  ;;  %3918 = vadd.xlane.f32.xlu0 %v3775_v45  ;;  %v6659_v24 = vpop.permute.xlu1 %2671 }
 0x4ba   : >> { %5242 = vset.pattern.permute.xlu2 %v5720_v63 }
 0x4bb   : >> { %5243 = vset.pattern.permute.xlu1 %v5658_v43 }
 0x4bf   : >> { %v6661_v13 = vpop.f32.mrf.mxu0 }
 0x4c0   : >> { %8005 = vst [vmem:[#allocation68_spill] sm:$0xff] %v6661_v13 }
 0x4c1   : >> { %v6647_v14 = vpop.f32.mrf.mxu3 }
 0x4c2   : >> { %8002 = vst [vmem:[#allocation43_spill] sm:$0xff] %v6647_v14  ;;  %2780 = vperm.xlu2 %5242, %v7987_v15  }
 0x4c3   : >> { %2792 = vperm.xlu1 %5243, %v7987_v15  }
 0x4c5   : >> { %v6667_v15 = vpop.permute.xlu1 %2683 }
 0x4c7   : >> { %v2340_v23 = vpop.f32.mrf.mxu0 }
 0x4c9   : >> { %v6655_v16 = vpop.f32.mrf.mxu3 }
 0x4ca   : >> { %8004 = vst [vmem:[#allocation67_spill] sm:$0xff] %v6655_v16  ;;  %5244 = vset.pattern.permute.xlu2 %v5573_v25  ;;  %v6673_v16 = vpop.permute.xlu2 %2689 }
 0x4cb   : >> { %5245 = vset.pattern.permute.xlu1 %v5577_v26  ;;  %8007 = vst [vmem:[#allocation70_spill] sm:$0xff] %v6673_v16 }
 0x4cf   : >> { %v6679_v13 = vpop.f32.mrf.mxu0 }
 0x4d0   : >> { %8009 = vst [vmem:[#allocation72_spill] sm:$0xff] %v6679_v13 }
 0x4d1   : >> { %v6663_v45 = vpop.f32.mrf.mxu3 }
 0x4d2   : >> { %2799 = vperm.xlu2 %5244, %v6019_v30   ;;  %v6683_v2 = vpop.permute.xlu2 %2708 }
 0x4d3   : >> { %2805 = vperm.xlu1 %5245, %v6019_v30   ;;  %8010 = vst [vmem:[#allocation73_spill] sm:$0xff] %v6683_v2 }
 0x4d5   : >> { %v6675_v0 = vpop.permute.xlu1 %2702 }
 0x4d9   : >> { %v6669_v18 = vpop.f32.mrf.mxu3 }
 0x4da   : >> { %8006 = vst [vmem:[#allocation69_spill] sm:$0xff] %v6669_v18  ;;  %5246 = vset.pattern.permute.xlu2 %v5581_v28 }
 0x4db   : >> { %5247 = vset.pattern.permute.xlu1 %v5601_v34 }
 0x4dc   : >> { %v6693_v13 = vpop.permute.xlu2 %2720 }
 0x4dd   : >> { %8012 = vst [vmem:[#allocation75_spill] sm:$0xff] %v6693_v13 }
 0x4e1   : >> { %v6677_v14 = vpop.f32.mrf.mxu3 }
 0x4e2   : >> { %8008 = vst [vmem:[#allocation71_spill] sm:$0xff] %v6677_v14  ;;  %2811 = vperm.xlu2 %5246, %v6019_v30   ;;  %v6691_v14 = vpop.f32.mrf.mxu0 }
 0x4e3   : >> { %2823 = vperm.xlu1 %5247, %v6019_v30   ;;  %8011 = vst [vmem:[#allocation74_spill] sm:$0xff] %v6691_v14 }
 0x4e5   : >> { %v2715_v10 = vpop.permute.xlu1 %2714 }
 0x4e6   : >> { %vm3394_vm13 = vcmp.eq.s32.totalorder %v5547_v17, %v2715_v10  ;;  %v5027_v10 = vsel %vm3496_vm14, 1.0, %v7929_v12 }
 0x4e7   : >> { %v4925_v18 = vsel %vm3394_vm13, 1.0, %v7929_v12 }
 0x4e8   : >> { %v3778_v58 = vmul.f32 %v4925_v18, %v2325_v61 }
 0x4e9   : >> { %v6687_v19 = vpop.f32.mrf.mxu3 }
 0x4ea   : >> { %3924 = vadd.xlane.f32.xlu0 %v3778_v58  ;;  %5248 = vset.pattern.permute.xlu2 %v5613_v36  ;;  %v2347_v58 = vpop.f32.mrf.mxu0 }
 0x4eb   : >> { %5249 = vset.pattern.permute.xlu1 %v5616_v37 }
 0x4ec   : >> { %v6702_v18 = vpop.permute.xlu2 %2738 }
 0x4f1   : >> { %v2580_v2 = vpop.f32.mrf.mxu3 }
 0x4f2   : >> { %v6698_v16 = vmul.f32 %v5027_v10, %v2580_v2  ;;  %2829 = vperm.xlu2 %5248, %v6019_v30  }
 0x4f3   : >> { %2835 = vperm.xlu1 %5249, %v6019_v30  }
 0x4f4   : >> { %8013 = vst [vmem:[#allocation76_spill] sm:$0xff] %v6698_v16  ;;  %v6710_v16 = vpop.f32.mrf.mxu0 }
 0x4f5   : >> { %v2733_v61 = vpop.permute.xlu1 %2732  ;;  %8014 = vst [vmem:[#allocation77_spill] sm:$0xff] %v6710_v16  ;;  %v8027_v16 = vld [vmem:[#allocation46_spill] sm:$0xff] }
 0x4f6   : >> { %vm3397_vm15 = vcmp.eq.s32.totalorder %v5547_v17, %v2733_v61 }
 0x4f7   : >> { %v4928_v14 = vsel %vm3397_vm15, 1.0, %v7929_v12 }
 0x4f8   : >> { %v3781_v13 = vmul.f32 %v4928_v14, %v2332_v5  ;;  %v6718_v5 = vpop.f32.mrf.mxu1 }
 0x4f9   : >> { %8016 = vst [vmem:[#allocation79_spill] sm:$0xff] %v6718_v5 }
 0x4fa   : >> { %3930 = vadd.xlane.f32.xlu0 %v3781_v13  ;;  %5250 = vset.pattern.permute.xlu2 %v5598_v33 }
 0x4fb   : >> { %5251 = vset.pattern.permute.xlu1 %v5625_v38 }
 0x4fc   : >> { %v2751_v31 = vpop.permute.xlu2 %2750  ;;  %v6714_v61 = vpop.f32.mrf.mxu0 }
 0x4fd   : >> { %vm3400_vm0 = vcmp.eq.s32.totalorder %v5547_v17, %v2751_v31  ;;  %8015 = vst [vmem:[#allocation78_spill] sm:$0xff] %v6714_v61 }
 0x4fe   : >> { %v4931_v2 = vsel %vm3400_vm0, 1.0, %v7929_v12 }
 0x4ff   : >> { %v3784_v10 = vmul.f32 %v4931_v2, %v2340_v23 }
 0x500   : >> { %v6726_v2 = vpop.f32.mrf.mxu1 }
 0x501   : >> { %8017 = vst [vmem:[#allocation80_spill] sm:$0xff] %v6726_v2 }
 0x502   : >> { %3936 = vadd.xlane.f32.xlu0 %v3784_v10  ;;  %2841 = vperm.xlu2 %5250, %v6019_v30   ;;  %v4937_v10 = vsel %vm3406_vm3, 1.0, %v7929_v12 }
 0x503   : >> { %2853 = vperm.xlu1 %5251, %v6019_v30  }
 0x504   : >> { %v2355_v31 = vpop.f32.mrf.mxu0 }
 0x505   : >> { %v3790_v5 = vmul.f32 %v4937_v10, %v2355_v31 }
 0x50a   : >> { %5252 = vset.pattern.permute.xlu2 %v5637_v40 }
 0x50b   : >> { %5253 = vset.pattern.permute.xlu1 %v5640_v41 }
 0x50c   : >> { %v2769_v14 = vpop.permute.xlu2 %2768 }
 0x50d   : >> { %vm3403_vm1 = vcmp.eq.s32.totalorder %v5547_v17, %v2769_v14  ;;  %v6733_v14 = vpop.permute.xlu1 %2744 }
 0x50e   : >> { %v4934_v23 = vsel %vm3403_vm1, 1.0, %v7929_v12  ;;  %8018 = vst [vmem:[#allocation81_spill] sm:$0xff] %v6733_v14 }
 0x50f   : >> { %v3787_v13 = vmul.f32 %v4934_v23, %v2347_v58  ;;  %v2385_v58 = vpop.f32.mrf.mxu1 }
 0x511   : >> { %3942 = vadd.xlane.f32.xlu0 %v3787_v13 }
 0x512   : >> { %2859 = vperm.xlu2 %5252, %v6019_v30  }
 0x513   : >> { %2865 = vperm.xlu1 %5253, %v6019_v30  }
 0x515   : >> { %v6739_v23 = vpop.permute.xlu1 %2762 }
 0x516   : >> { %8020 = vst [vmem:[#allocation83_spill] sm:$0xff] %v6739_v23 }
 0x517   : >> { %v6735_v60 = vpop.f32.mrf.mxu1 }
 0x518   : >> { %8019 = vst [vmem:[#allocation82_spill] sm:$0xff] %v6735_v60 }
 0x519   : >> { %3948 = vadd.xlane.f32.xlu0 %v3790_v5  ;;  %v8021_v5 = vld [vmem:[#allocation12_spill] sm:$0xff] }
 0x51a   : >> { %5254 = vset.pattern.permute.xlu2 %v5610_v35 }
 0x51b   : >> { %5255 = vset.pattern.permute.xlu1 %v5649_v42 }
 0x51c   : >> { %v6749_v10 = vpop.permute.xlu2 %2780 }
 0x51d   : >> { %8023 = vst [vmem:[#allocation84_spill] sm:$0xff] %v6749_v10 }
 0x51f   : >> { %v6743_v13 = vpop.f32.mrf.mxu1 }
 0x520   : >> { %8022 = vst [vmem:[#allocation12_spill] sm:$0xff] %v6743_v13 }
 0x522   : >> { %2871 = vperm.xlu2 %5254, %v6019_v30  }
 0x523   : >> { %2883 = vperm.xlu1 %5255, %v6019_v30  }
 0x525   : >> { %v6745_v31 = vpop.permute.xlu1 %2774 }
 0x527   : >> { %v2392_v60 = vpop.f32.mrf.mxu1 }
 0x52a   : >> { %5256 = vset.pattern.permute.xlu2 %v5658_v43 }
 0x52b   : >> { %5257 = vset.pattern.permute.xlu1 %v5573_v25 }
 0x52f   : >> { %v6759_v23 = vpop.f32.mrf.mxu1 }
 0x530   : >> { %8026 = vst [vmem:[#allocation87_spill] sm:$0xff] %v6759_v23 }
 0x532   : >> { %2889 = vperm.xlu2 %5256, %v6019_v30   ;;  %v6755_v30 = vpop.permute.xlu2 %2799 }
 0x533   : >> { %2896 = vperm.xlu1 %5257, %v8021_v5   ;;  %8025 = vst [vmem:[#allocation86_spill] sm:$0xff] %v6755_v30 }
 0x535   : >> { %v6751_v2 = vpop.permute.xlu1 %2792 }
 0x536   : >> { %8024 = vst [vmem:[#allocation85_spill] sm:$0xff] %v6751_v2 }
 0x537   : >> { %v6766_v2 = vpop.f32.mrf.mxu1 }
 0x538   : >> { %8029 = vst [vmem:[#allocation88_spill] sm:$0xff] %v6766_v2 }
 0x53a   : >> { %5258 = vset.pattern.permute.xlu2 %v5577_v26 }
 0x53b   : >> { %5260 = vset.pattern.permute.xlu1 %v5676_v48 }
 0x53c   : >> { %v6764_v10 = vpop.permute.xlu2 %2811 }
 0x53d   : >> { %8028 = vst [vmem:[#allocation46_spill] sm:$0xff] %v6764_v10 }
 0x542   : >> { %2902 = vperm.xlu2 %5258, %v8021_v5  }
 0x543   : >> { %2914 = vperm.xlu1 %5260, %v8021_v5  }
 0x545   : >> { %v2806_v61 = vpop.permute.xlu1 %2805 }
 0x546   : >> { %vm3409_vm4 = vcmp.eq.s32.totalorder %v5547_v17, %v2806_v61 }
 0x547   : >> { %v4940_v13 = vsel %vm3409_vm4, 1.0, %v7929_v12 }
 0x548   : >> { %v3793_v14 = vmul.f32 %v4940_v13, %v8027_v16  ;;  %v2400_v13 = vpop.f32.mrf.mxu1 }
 0x54a   : >> { %3954 = vadd.xlane.f32.xlu0 %v3793_v14  ;;  %5261 = vset.pattern.permute.xlu2 %v5601_v34 }
 0x54b   : >> { %5262 = vset.pattern.permute.xlu1 %v5613_v36 }
 0x54c   : >> { %v6770_v61 = vpop.permute.xlu2 %2829 }
 0x54d   : >> { %8030 = vst [vmem:[#allocation89_spill] sm:$0xff] %v6770_v61 }
 0x552   : >> { %2920 = vperm.xlu2 %5261, %v8021_v5  }
 0x553   : >> { %2926 = vperm.xlu1 %5262, %v8021_v5  }
 0x555   : >> { %v2824_v30 = vpop.permute.xlu1 %2823 }
 0x556   : >> { %vm3412_vm5 = vcmp.eq.s32.totalorder %v5547_v17, %v2824_v30  ;;  %v6782_v30 = vpop.f32.mrf.mxu1 }
 0x557   : >> { %v4943_v16 = vsel %vm3412_vm5, 1.0, %v7929_v12  ;;  %8031 = vst [vmem:[#allocation90_spill] sm:$0xff] %v6782_v30 }
 0x558   : >> { %v3796_v14 = vmul.f32 %v4943_v16, %v6085_v22  ;;  %v2878_v16 = vpop.permute.xlu0 %2877 }
 0x559   : >> { %vm3421_vm8 = vcmp.eq.s32.totalorder %v5547_v17, %v2878_v16 }
 0x55a   : >> { %3960 = vadd.xlane.f32.xlu0 %v3796_v14  ;;  %5263 = vset.pattern.permute.xlu2 %v5616_v37 }
 0x55b   : >> { %5265 = vset.pattern.permute.xlu1 %v5696_v59 }
 0x55c   : >> { %v2842_v2 = vpop.permute.xlu2 %2841 }
 0x55d   : >> { %vm3415_vm6 = vcmp.eq.s32.totalorder %v5547_v17, %v2842_v2 }
 0x55e   : >> { %v4946_v23 = vsel %vm3415_vm6, 1.0, %v7929_v12  ;;  %v6788_v10 = vpop.f32.mrf.mxu1 }
 0x55f   : >> { %v3799_v61 = vmul.f32 %v4946_v23, %v6130_v7  ;;  %8032 = vst [vmem:[#allocation91_spill] sm:$0xff] %v6788_v10  ;;  %v4952_v7 = vsel %vm3421_vm8, 1.0, %v7929_v12 }
 0x560   : >> { %v3805_v23 = vmul.f32 %v4952_v7, %v2392_v60 }
 0x562   : >> { %3966 = vadd.xlane.f32.xlu0 %v3799_v61  ;;  %2932 = vperm.xlu2 %5263, %v8021_v5  }
 0x563   : >> { %2944 = vperm.xlu1 %5265, %v8021_v5  }
 0x566   : >> { %v2407_v61 = vpop.f32.mrf.mxu1 }
 0x56a   : >> { %5266 = vset.pattern.permute.xlu2 %v5625_v38 }
 0x56b   : >> { %5267 = vset.pattern.permute.xlu1 %v5637_v40 }
 0x56c   : >> { %v2860_v22 = vpop.permute.xlu2 %2859 }
 0x56d   : >> { %vm3418_vm7 = vcmp.eq.s32.totalorder %v5547_v17, %v2860_v22  ;;  %v6800_v22 = vpop.permute.xlu1 %2835 }
 0x56e   : >> { %v4949_v2 = vsel %vm3418_vm7, 1.0, %v7929_v12  ;;  %8034 = vst [vmem:[#allocation93_spill] sm:$0xff] %v6800_v22 }
 0x56f   : >> { %v3802_v14 = vmul.f32 %v4949_v2, %v2385_v58  ;;  %v6798_v58 = vpop.f32.mrf.mxu1 }
 0x570   : >> { %8033 = vst [vmem:[#allocation92_spill] sm:$0xff] %v6798_v58  ;;  %v8040_v58 = vld [vmem:[#allocation13_spill] sm:$0xff] }
 0x571   : >> { %3972 = vadd.xlane.f32.xlu0 %v3802_v14 }
 0x572   : >> { %2950 = vperm.xlu2 %5266, %v8021_v5  }
 0x573   : >> { %2956 = vperm.xlu1 %5267, %v8021_v5  }
 0x575   : >> { %v6804_v16 = vpop.permute.xlu1 %2853 }
 0x576   : >> { %8035 = vst [vmem:[#allocation94_spill] sm:$0xff] %v6804_v16 }
 0x577   : >> { %v6806_v60 = vpop.f32.mrf.mxu1 }
 0x578   : >> { %8036 = vst [vmem:[#allocation95_spill] sm:$0xff] %v6806_v60 }
 0x579   : >> { %3978 = vadd.xlane.f32.xlu0 %v3805_v23 }
 0x57a   : >> { %5268 = vset.pattern.permute.xlu2 %v5640_v41 }
 0x57b   : >> { %5271 = vset.pattern.permute.xlu1 %v5720_v63 }
 0x57c   : >> { %v6814_v7 = vpop.permute.xlu2 %2871 }
 0x57d   : >> { %8037 = vst [vmem:[#allocation96_spill] sm:$0xff] %v6814_v7 }
 0x57f   : >> { %v2415_v14 = vpop.f32.mrf.mxu1 }
 0x582   : >> { %2962 = vperm.xlu2 %5268, %v8021_v5  }
 0x583   : >> { %2974 = vperm.xlu1 %5271, %v8021_v5  }
 0x585   : >> { %v6810_v2 = vpop.permute.xlu1 %2865 }
 0x587   : >> { %v6818_v10 = vpop.f32.mrf.mxu1 }
 0x588   : >> { %8039 = vst [vmem:[#allocation98_spill] sm:$0xff] %v6818_v10 }
 0x58a   : >> { %5272 = vset.pattern.permute.xlu2 %v5649_v42 }
 0x58b   : >> { %5273 = vset.pattern.permute.xlu1 %v5658_v43 }
 0x58c   : >> { %v6822_v60 = vpop.permute.xlu2 %2889 }
 0x58d   : >> { %8041 = vst [vmem:[#allocation13_spill] sm:$0xff] %v6822_v60 }
 0x58f   : >> { %v6828_v7 = vpop.f32.mrf.mxu1 }
 0x590   : >> { %8042 = vst [vmem:[#allocation99_spill] sm:$0xff] %v6828_v7 }
 0x592   : >> { %2980 = vperm.xlu2 %5272, %v8021_v5  }
 0x593   : >> { %2986 = vperm.xlu1 %5273, %v8021_v5  }
 0x595   : >> { %v6816_v23 = vpop.permute.xlu1 %2883 }
 0x596   : >> { %8038 = vst [vmem:[#allocation97_spill] sm:$0xff] %v6816_v23 }
 0x59a   : >> { %5274 = vset.pattern.permute.xlu2 %v5573_v25 }
 0x59b   : >> { %5276 = vset.pattern.permute.xlu1 %v5581_v28 }
 0x59c   : >> { %v6830_v10 = vpop.permute.xlu2 %2902 }
 0x59d   : >> { %8043 = vst [vmem:[#allocation100_spill] sm:$0xff] %v6830_v10 }
 0x5a2   : >> { %2993 = vperm.xlu2 %5274, %v8040_v58  }
 0x5a3   : >> { %3005 = vperm.xlu1 %5276, %v8040_v58  }
 0x5a5   : >> { %v2897_v5 = vpop.permute.xlu1 %2896 }
 0x5a6   : >> { %vm3424_vm9 = vcmp.eq.s32.totalorder %v5547_v17, %v2897_v5  ;;  %v2422_v5 = vpop.f32.mrf.mxu1 }
 0x5a7   : >> { %v4955_v30 = vsel %vm3424_vm9, 1.0, %v7929_v12 }
 0x5a8   : >> { %v3808_v16 = vmul.f32 %v4955_v30, %v2400_v13 }
 0x5aa   : >> { %3984 = vadd.xlane.f32.xlu0 %v3808_v16  ;;  %5277 = vset.pattern.permute.xlu2 %v5676_v48 }
 0x5ab   : >> { %5278 = vset.pattern.permute.xlu1 %v5601_v34 }
 0x5ac   : >> { %v6834_v60 = vpop.permute.xlu2 %2920 }
 0x5ad   : >> { %8044 = vst [vmem:[#allocation101_spill] sm:$0xff] %v6834_v60 }
 0x5ae   : >> { %v6842_v22 = vpop.f32.mrf.mxu1 }
 0x5af   : >> { %8045 = vst [vmem:[#allocation102_spill] sm:$0xff] %v6842_v22 }
 0x5b2   : >> { %3011 = vperm.xlu2 %5277, %v8040_v58  }
 0x5b3   : >> { %3017 = vperm.xlu1 %5278, %v8040_v58  }
 0x5b5   : >> { %v2915_v23 = vpop.permute.xlu1 %2914 }
 0x5b6   : >> { %vm3427_vm10 = vcmp.eq.s32.totalorder %v5547_v17, %v2915_v23  ;;  %v6846_v23 = vpop.f32.mrf.mxu1 }
 0x5b7   : >> { %v4958_v13 = vsel %vm3427_vm10, 1.0, %v7929_v12  ;;  %8046 = vst [vmem:[#allocation103_spill] sm:$0xff] %v6846_v23 }
 0x5b8   : >> { %v3811_v30 = vmul.f32 %v4958_v13, %v2407_v61 }
 0x5ba   : >> { %3990 = vadd.xlane.f32.xlu0 %v3811_v30  ;;  %5279 = vset.pattern.permute.xlu2 %v5613_v36 }
 0x5bb   : >> { %5281 = vset.pattern.permute.xlu1 %v5598_v33 }
 0x5bc   : >> { %v2933_v16 = vpop.permute.xlu2 %2932 }
 0x5bd   : >> { %vm3430_vm11 = vcmp.eq.s32.totalorder %v5547_v17, %v2933_v16 }
 0x5be   : >> { %v4961_v7 = vsel %vm3430_vm11, 1.0, %v7929_v12 }
 0x5bf   : >> { %v3814_v10 = vmul.f32 %v4961_v7, %v2415_v14  ;;  %v2430_v14 = vpop.f32.mrf.mxu1 }
 0x5c2   : >> { %3996 = vadd.xlane.f32.xlu0 %v3814_v10  ;;  %3023 = vperm.xlu2 %5279, %v8040_v58   ;;  %v8047_v10 = vld [vmem:[#allocation22_spill] sm:$0xff] }
 0x5c3   : >> { %3035 = vperm.xlu1 %5281, %v8040_v58   ;;  %vm3436_vm12 = vcmp.eq.s32.totalorder %v5547_v17, %v8047_v10 }
 0x5c4   : >> { %v4967_v7 = vsel %vm3436_vm12, 1.0, %v7929_v12 }
 0x5c5   : >> { %v3820_v16 = vmul.f32 %v4967_v7, %v2430_v14 }
 0x5c7   : >> { %v6870_v10 = vpop.f32.mrf.mxu1 }
 0x5c8   : >> { %8051 = vst [vmem:[#allocation106_spill] sm:$0xff] %v6870_v10  ;;  %v8056_v10 = vld [vmem:[#allocation17_spill] sm:$0xff] }
 0x5ca   : >> { %5282 = vset.pattern.permute.xlu2 %v5696_v59 }
 0x5cb   : >> { %5283 = vset.pattern.permute.xlu1 %v5625_v38 }
 0x5cc   : >> { %v2951_v61 = vpop.permute.xlu2 %2950 }
 0x5cd   : >> { %vm3433_vm2 = vcmp.eq.s32.totalorder %v5547_v17, %v2951_v61  ;;  %v2460_v61 = vpop.f32.mrf.mxu2 }
 0x5ce   : >> { %v4964_v13 = vsel %vm3433_vm2, 1.0, %v7929_v12  ;;  %vm3481_vm2 = vcmp.eq.s32.totalorder %v5547_v17, %v6113_v50 }
 0x5cf   : >> { %v3817_v30 = vmul.f32 %v4964_v13, %v2422_v5  ;;  %v6861_v5 = vpop.permute.xlu1 %2926 }
 0x5d0   : >> { %8048 = vst [vmem:[#allocation22_spill] sm:$0xff] %v6861_v5 }
 0x5d1   : >> { %4002 = vadd.xlane.f32.xlu0 %v3817_v30 }
 0x5d2   : >> { %3041 = vperm.xlu2 %5282, %v8040_v58  }
 0x5d3   : >> { %3047 = vperm.xlu1 %5283, %v8040_v58  }
 0x5d5   : >> { %v6863_v13 = vpop.f32.mrf.mxu2 }
 0x5d6   : >> { %8049 = vst [vmem:[#allocation104_spill] sm:$0xff] %v6863_v13  ;;  %v6881_v13 = vpop.f32.mrf.mxu1 }
 0x5d7   : >> { %v6867_v30 = vpop.permute.xlu1 %2944  ;;  %8055 = vst [vmem:[#allocation110_spill] sm:$0xff] %v6881_v13 }
 0x5d8   : >> { %8050 = vst [vmem:[#allocation105_spill] sm:$0xff] %v6867_v30 }
 0x5d9   : >> { %4008 = vadd.xlane.f32.xlu0 %v3820_v16 }
 0x5da   : >> { %5284 = vset.pattern.permute.xlu2 %v5637_v40 }
 0x5db   : >> { %5286 = vset.pattern.permute.xlu1 %v5610_v35 }
 0x5dc   : >> { %v6879_v16 = vpop.permute.xlu2 %2962 }
 0x5dd   : >> { %v6873_v14 = vpop.f32.mrf.mxu2  ;;  %8054 = vst [vmem:[#allocation109_spill] sm:$0xff] %v6879_v16 }
 0x5de   : >> { %8052 = vst [vmem:[#allocation107_spill] sm:$0xff] %v6873_v14  ;;  %v2437_v5 = vpop.f32.mrf.mxu1 }
 0x5e2   : >> { %3053 = vperm.xlu2 %5284, %v8040_v58  }
 0x5e3   : >> { %3065 = vperm.xlu1 %5286, %v8040_v58  }
 0x5e5   : >> { %v6875_v7 = vpop.permute.xlu1 %2956  ;;  %v2467_v30 = vpop.f32.mrf.mxu2 }
 0x5e6   : >> { %8053 = vst [vmem:[#allocation108_spill] sm:$0xff] %v6875_v7 }
 0x5ea   : >> { %5287 = vset.pattern.permute.xlu2 %v5720_v63 }
 0x5eb   : >> { %5288 = vset.pattern.permute.xlu1 %v5649_v42 }
 0x5ec   : >> { %v6887_v22 = vpop.permute.xlu2 %2980 }
 0x5ed   : >> { %8057 = vst [vmem:[#allocation17_spill] sm:$0xff] %v6887_v22  ;;  %v6891_v60 = vpop.f32.mrf.mxu2 }
 0x5ee   : >> { %8058 = vst [vmem:[#allocation111_spill] sm:$0xff] %v6891_v60 }
 0x5f2   : >> { %3071 = vperm.xlu2 %5287, %v8040_v58  }
 0x5f3   : >> { %3077 = vperm.xlu1 %5288, %v8040_v58  }
 0x5f5   : >> { %v6883_v23 = vpop.permute.xlu1 %2974 }
 0x5fa   : >> { %5289 = vset.pattern.permute.xlu2 %v5658_v43 }
 0x5fb   : >> { %5291 = vset.pattern.permute.xlu1 %v5577_v26 }
 0x5fc   : >> { %v6895_v13 = vpop.permute.xlu2 %2993 }
 0x602   : >> { %3083 = vperm.xlu2 %5289, %v8040_v58   ;;  %v6897_v58 = vpop.f32.mrf.mxu2 }
 0x603   : >> { %3096 = vperm.xlu1 %5291, %v8056_v10   ;;  %8059 = vst [vmem:[#allocation112_spill] sm:$0xff] %v6897_v58 }
 0x605   : >> { %v2987_v14 = vpop.permute.xlu1 %2986 }
 0x606   : >> { %vm3439_vm13 = vcmp.eq.s32.totalorder %v5547_v17, %v2987_v14 }
 0x607   : >> { %v4970_v7 = vsel %vm3439_vm13, 1.0, %v7929_v12 }
 0x608   : >> { %v3823_v16 = vmul.f32 %v4970_v7, %v2437_v5 }
 0x60a   : >> { %4014 = vadd.xlane.f32.xlu0 %v3823_v16  ;;  %5292 = vset.pattern.permute.xlu2 %v5581_v28  ;;  %v2475_v16 = vpop.f32.mrf.mxu2 }
 0x60b   : >> { %5293 = vset.pattern.permute.xlu1 %v5676_v48 }
 0x60c   : >> { %v6901_v14 = vpop.permute.xlu2 %3011 }
 0x60d   : >> { %8060 = vst [vmem:[#allocation113_spill] sm:$0xff] %v6901_v14 }
 0x612   : >> { %3102 = vperm.xlu2 %5292, %v8056_v10  }
 0x613   : >> { %3108 = vperm.xlu1 %5293, %v8056_v10  }
 0x615   : >> { %v3006_v22 = vpop.permute.xlu1 %3005 }
 0x616   : >> { %vm3442_vm14 = vcmp.eq.s32.totalorder %v5547_v17, %v3006_v22  ;;  %v6913_v22 = vpop.f32.mrf.mxu2 }
 0x617   : >> { %v4973_v5 = vsel %vm3442_vm14, 1.0, %v7929_v12  ;;  %8061 = vst [vmem:[#allocation114_spill] sm:$0xff] %v6913_v22  ;;  %vm3380_vm14 = vcmp.eq.s32.totalorder %v5547_v17, %v6592_v49 }
 0x618   : >> { %v3826_v7 = vmul.f32 %v4973_v5, %v6313_v9 }
 0x61a   : >> { %4020 = vadd.xlane.f32.xlu0 %v3826_v7  ;;  %5294 = vset.pattern.permute.xlu2 %v5601_v34 }
 0x61b   : >> { %5296 = vset.pattern.permute.xlu1 %v5616_v37 }
 0x61c   : >> { %v3024_v58 = vpop.permute.xlu2 %3023 }
 0x61d   : >> { %vm3445_vm15 = vcmp.eq.s32.totalorder %v5547_v17, %v3024_v58 }
 0x61e   : >> { %v4976_v60 = vsel %vm3445_vm15, 1.0, %v7929_v12  ;;  %v6919_v7 = vpop.f32.mrf.mxu2  ;;  %vm3377_vm15 = vcmp.eq.s32.totalorder %v5547_v17, %v6584_v54 }
 0x61f   : >> { %v3829_v14 = vmul.f32 %v4976_v60, %v6364_v53  ;;  %8062 = vst [vmem:[#allocation115_spill] sm:$0xff] %v6919_v7  ;;  %v8063_v53 = vld [vmem:[#allocation35_spill] sm:$0xff] }
 0x620   : >> { %vm3451_vm1 = vcmp.eq.s32.totalorder %v5547_v17, %v8063_v53 }
 0x621   : >> { %v4982_v60 = vsel %vm3451_vm1, 1.0, %v7929_v12 }
 0x622   : >> { %4026 = vadd.xlane.f32.xlu0 %v3829_v14  ;;  %3114 = vperm.xlu2 %5294, %v8056_v10   ;;  %v3835_v14 = vmul.f32 %v4982_v60, %v2467_v30 }
 0x623   : >> { %3126 = vperm.xlu1 %5296, %v8056_v10  }
 0x626   : >> { %v2482_v22 = vpop.f32.mrf.mxu2 }
 0x62a   : >> { %5297 = vset.pattern.permute.xlu2 %v5598_v33 }
 0x62b   : >> { %5298 = vset.pattern.permute.xlu1 %v5696_v59 }
 0x62c   : >> { %v3042_v9 = vpop.permute.xlu2 %3041 }
 0x62d   : >> { %vm3448_vm0 = vcmp.eq.s32.totalorder %v5547_v17, %v3042_v9  ;;  %v6932_v9 = vpop.permute.xlu1 %3017 }
 0x62e   : >> { %v4979_v58 = vsel %vm3448_vm0, 1.0, %v7929_v12  ;;  %8065 = vst [vmem:[#allocation116_spill] sm:$0xff] %v6932_v9  ;;  %vm3383_vm0 = vcmp.eq.s32.totalorder %v5547_v17, %v6607_v46 }
 0x62f   : >> { %v3832_v5 = vmul.f32 %v4979_v58, %v2460_v61  ;;  %v6930_v61 = vpop.f32.mrf.mxu2 }
 0x630   : >> { %8064 = vst [vmem:[#allocation35_spill] sm:$0xff] %v6930_v61 }
 0x631   : >> { %4032 = vadd.xlane.f32.xlu0 %v3832_v5 }
 0x632   : >> { %3132 = vperm.xlu2 %5297, %v8056_v10  }
 0x633   : >> { %3138 = vperm.xlu1 %5298, %v8056_v10  }
 0x635   : >> { %v6936_v58 = vpop.permute.xlu1 %3035 }
 0x636   : >> { %8066 = vst [vmem:[#allocation117_spill] sm:$0xff] %v6936_v58 }
 0x637   : >> { %v6938_v30 = vpop.f32.mrf.mxu2 }
 0x638   : >> { %8067 = vst [vmem:[#allocation118_spill] sm:$0xff] %v6938_v30  ;;  %v8072_v30 = vld [vmem:[#allocation36_spill] sm:$0xff] }
 0x639   : >> { %4038 = vadd.xlane.f32.xlu0 %v3835_v14 }
 0x63a   : >> { %5299 = vset.pattern.permute.xlu2 %v5625_v38 }
 0x63b   : >> { %5301 = vset.pattern.permute.xlu1 %v5640_v41 }
 0x63c   : >> { %v6946_v60 = vpop.permute.xlu2 %3053 }
 0x63d   : >> { %8069 = vst [vmem:[#allocation120_spill] sm:$0xff] %v6946_v60 }
 0x63f   : >> { %v2490_v53 = vpop.f32.mrf.mxu2 }
 0x642   : >> { %3144 = vperm.xlu2 %5299, %v8056_v10  }
 0x643   : >> { %3156 = vperm.xlu1 %5301, %v8056_v10  }
 0x645   : >> { %v6942_v5 = vpop.permute.xlu1 %3047 }
 0x646   : >> { %8068 = vst [vmem:[#allocation119_spill] sm:$0xff] %v6942_v5 }
 0x647   : >> { %v6950_v7 = vpop.f32.mrf.mxu2 }
 0x648   : >> { %8071 = vst [vmem:[#allocation122_spill] sm:$0xff] %v6950_v7 }
 0x64a   : >> { %5302 = vset.pattern.permute.xlu2 %v5610_v35 }
 0x64b   : >> { %5303 = vset.pattern.permute.xlu1 %v5720_v63 }
 0x64c   : >> { %v6954_v61 = vpop.permute.xlu2 %3071 }
 0x64d   : >> { %8073 = vst [vmem:[#allocation36_spill] sm:$0xff] %v6954_v61 }
 0x64f   : >> { %v6960_v60 = vpop.f32.mrf.mxu2 }
 0x650   : >> { %8074 = vst [vmem:[#allocation123_spill] sm:$0xff] %v6960_v60 }
 0x652   : >> { %3162 = vperm.xlu2 %5302, %v8056_v10  }
 0x653   : >> { %3168 = vperm.xlu1 %5303, %v8056_v10  }
 0x655   : >> { %v6948_v14 = vpop.permute.xlu1 %3065 }
 0x656   : >> { %8070 = vst [vmem:[#allocation121_spill] sm:$0xff] %v6948_v14 }
 0x65a   : >> { %5304 = vset.pattern.permute.xlu2 %v5649_v42 }
 0x65b   : >> { %5306 = vset.pattern.permute.xlu1 %v5573_v25 }
 0x65c   : >> { %v6962_v7 = vpop.permute.xlu2 %3083 }
 0x65d   : >> { %8075 = vst [vmem:[#allocation124_spill] sm:$0xff] %v6962_v7 }
 0x662   : >> { %3174 = vperm.xlu2 %5304, %v8056_v10  }
 0x663   : >> { %3187 = vperm.xlu1 %5306, %v8072_v30  }
 0x665   : >> { %v3078_v58 = vpop.permute.xlu1 %3077 }
 0x666   : >> { %vm3454_vm3 = vcmp.eq.s32.totalorder %v5547_v17, %v3078_v58  ;;  %v2497_v58 = vpop.f32.mrf.mxu2 }
 0x667   : >> { %v4985_v9 = vsel %vm3454_vm3, 1.0, %v7929_v12  ;;  %vm3379_vm3 = vcmp.eq.s32.totalorder %v5547_v17, %v6594_v21 }
 0x668   : >> { %v3838_v5 = vmul.f32 %v4985_v9, %v2475_v16 }
 0x66a   : >> { %4044 = vadd.xlane.f32.xlu0 %v3838_v5  ;;  %5307 = vset.pattern.permute.xlu2 %v5577_v26 }
 0x66b   : >> { %5308 = vset.pattern.permute.xlu1 %v5581_v28 }
 0x66c   : >> { %v6966_v10 = vpop.permute.xlu2 %3102 }
 0x66e   : >> { %v6974_v14 = vpop.f32.mrf.mxu2 }
 0x672   : >> { %3193 = vperm.xlu2 %5307, %v8072_v30  }
 0x673   : >> { %3199 = vperm.xlu1 %5308, %v8072_v30  }
 0x675   : >> { %v3097_v61 = vpop.permute.xlu1 %3096 }
 0x676   : >> { %vm3457_vm4 = vcmp.eq.s32.totalorder %v5547_v17, %v3097_v61  ;;  %v6978_v61 = vpop.f32.mrf.mxu2 }
 0x677   : >> { %v4988_v16 = vsel %vm3457_vm4, 1.0, %v7929_v12  ;;  %8076 = vst [vmem:[#allocation125_spill] sm:$0xff] %v6978_v61 }
 0x678   : >> { %v3841_v9 = vmul.f32 %v4988_v16, %v2482_v22 }
 0x67a   : >> { %4050 = vadd.xlane.f32.xlu0 %v3841_v9  ;;  %5309 = vset.pattern.permute.xlu2 %v5676_v48 }
 0x67b   : >> { %5311 = vset.pattern.permute.xlu1 %v5613_v36 }
 0x67c   : >> { %v3115_v5 = vpop.permute.xlu2 %3114 }
 0x67d   : >> { %vm3460_vm5 = vcmp.eq.s32.totalorder %v5547_v17, %v3115_v5 }
 0x67e   : >> { %v4991_v60 = vsel %vm3460_vm5, 1.0, %v7929_v12 }
 0x67f   : >> { %v3844_v7 = vmul.f32 %v4991_v60, %v2490_v53  ;;  %v2505_v53 = vpop.f32.mrf.mxu2 }
 0x682   : >> { %4056 = vadd.xlane.f32.xlu0 %v3844_v7  ;;  %3205 = vperm.xlu2 %5309, %v8072_v30   ;;  %v8077_v7 = vld [vmem:[#allocation42_spill] sm:$0xff] }
 0x683   : >> { %3217 = vperm.xlu1 %5311, %v8072_v30   ;;  %vm3466_vm7 = vcmp.eq.s32.totalorder %v5547_v17, %v8077_v7 }
 0x684   : >> { %v4997_v60 = vsel %vm3466_vm7, 1.0, %v7929_v12 }
 0x685   : >> { %v3850_v9 = vmul.f32 %v4997_v60, %v2505_v53 }
 0x68a   : >> { %5312 = vset.pattern.permute.xlu2 %v5616_v37 }
 0x68b   : >> { %5313 = vset.pattern.permute.xlu1 %v5598_v33 }
 0x68c   : >> { %v3133_v48 = vpop.permute.xlu2 %3132 }
 0x68d   : >> { %vm3463_vm6 = vcmp.eq.s32.totalorder %v5547_v17, %v3133_v48  ;;  %v7000_v48 = vpop.f32.mrf.mxu2 }
 0x68e   : >> { %v4994_v22 = vsel %vm3463_vm6, 1.0, %v7929_v12 }
 0x68f   : >> { %v3847_v16 = vmul.f32 %v4994_v22, %v2497_v58  ;;  %v6993_v58 = vpop.permute.xlu1 %3108 }
 0x691   : >> { %4062 = vadd.xlane.f32.xlu0 %v3847_v16 }
 0x692   : >> { %3223 = vperm.xlu2 %5312, %v8072_v30  }
 0x693   : >> { %3229 = vperm.xlu1 %5313, %v8072_v30  }
 0x695   : >> { %v7009_v16 = vpop.f32.mrf.mxu2 }
 0x696   : >> { %8078 = vst [vmem:[#allocation42_spill] sm:$0xff] %v7009_v16 }
 0x697   : >> { %v6997_v5 = vpop.permute.xlu1 %3126 }
 0x699   : >> { %4068 = vadd.xlane.f32.xlu0 %v3850_v9 }
 0x69a   : >> { %5314 = vset.pattern.permute.xlu2 %v5696_v59 }
 0x69b   : >> { %5316 = vset.pattern.permute.xlu1 %v5637_v40 }
 0x69c   : >> { %v7007_v22 = vpop.permute.xlu2 %3144 }
 0x69d   : >> { %v2512_v9 = vpop.f32.mrf.mxu2 }
 0x6a2   : >> { %3235 = vperm.xlu2 %5314, %v8072_v30  }
 0x6a3   : >> { %3247 = vperm.xlu1 %5316, %v8072_v30  }
 0x6a5   : >> { %v7003_v59 = vpop.permute.xlu1 %3138 }
 0x6aa   : >> { %5317 = vset.pattern.permute.xlu2 %v5640_v41 }
 0x6ab   : >> { %5318 = vset.pattern.permute.xlu1 %v5610_v35 }
 0x6ac   : >> { %v7015_v53 = vpop.permute.xlu2 %3162 }
 0x6ad   : >> { %8079 = vst [vmem:[#allocation126_spill] sm:$0xff] %v7015_v53 }
 0x6b2   : >> { %3253 = vperm.xlu2 %5317, %v8072_v30  }
 0x6b3   : >> { %3259 = vperm.xlu1 %5318, %v8072_v30  }
 0x6b5   : >> { %v7011_v7 = vpop.permute.xlu1 %3156 }
 0x6ba   : >> { %5319 = vset.pattern.permute.xlu2 %v5720_v63 }
 0x6bb   : >> { %5321 = vset.pattern.permute.xlu1 %v5658_v43 }
 0x6bc   : >> { %v7021_v16 = vpop.permute.xlu2 %3174 }
 0x6c2   : >> { %3265 = vperm.xlu2 %5319, %v8072_v30  }
 0x6c3   : >> { %3277 = vperm.xlu1 %5321, %v8072_v30  }
 0x6c5   : >> { %v3169_v60 = vpop.permute.xlu1 %3168 }
 0x6c6   : >> { %vm3469_vm8 = vcmp.eq.s32.totalorder %v5547_v17, %v3169_v60 }
 0x6c7   : >> { %v5000_v63 = vsel %vm3469_vm8, 1.0, %v7929_v12  ;;  %vm3389_vm8 = vcmp.eq.s32.totalorder %v5547_v17, %v6667_v15 }
 0x6c8   : >> { %v3853_v61 = vmul.f32 %v5000_v63, %v2512_v9 }
 0x6ca   : >> { %4074 = vadd.xlane.f32.xlu0 %v3853_v61  ;;  %5322 = vset.pattern.permute.xlu2 %v5573_v25 }
 0x6cb   : >> { %5323 = vset.pattern.permute.xlu1 %v5577_v26 }
 0x6cc   : >> { %v7025_v30 = vpop.permute.xlu2 %3193 }
 0x6d2   : >> { %3284 = vperm.xlu2 %5322, %v6028_v29  }
 0x6d3   : >> { %3290 = vperm.xlu1 %5323, %v6028_v29  }
 0x6d5   : >> { %v3188_v53 = vpop.permute.xlu1 %3187 }
 0x6d6   : >> { %vm3472_vm9 = vcmp.eq.s32.totalorder %v5547_v17, %v3188_v53  ;;  %v8082_v53 = vld [vmem:[#allocation37_spill] sm:$0xff] }
 0x6d7   : >> { %v5003_v60 = vsel %vm3472_vm9, 1.0, %v7929_v12  ;;  %vm3376_vm12 = vcmp.eq.s32.totalorder %v5547_v17, %v8082_v53  ;;  %v8084_v53 = vld [vmem:[#allocation39_spill] sm:$0xff]  ;;  %vm3384_vm9 = vcmp.eq.s32.totalorder %v5547_v17, %v6653_v51 }
 0x6d8   : >> { %v3856_v9 = vmul.f32 %v5003_v60, %v6493_v1  ;;  %vm3381_vm7 = vcmp.eq.s32.totalorder %v5547_v17, %v8084_v53  ;;  %v4915_v15 = vsel %vm3384_vm9, 1.0, %v7929_v12  ;;  %v8095_v53 = vld [vmem:[#allocation31_spill] sm:$0xff] }
 0x6da   : >> { %4080 = vadd.xlane.f32.xlu0 %v3856_v9  ;;  %5324 = vset.pattern.permute.xlu2 %v5581_v28 }
 0x6db   : >> { %5326 = vset.pattern.permute.xlu1 %v5601_v34 }
 0x6dc   : >> { %v3206_v25 = vpop.permute.xlu2 %3205 }
 0x6dd   : >> { %vm3475_vm10 = vcmp.eq.s32.totalorder %v5547_v17, %v3206_v25  ;;  %v4911_v25 = vsel %vm3380_vm14, 1.0, %v7929_v12 }
 0x6de   : >> { %v5006_v26 = vsel %vm3475_vm10, 1.0, %v7929_v12  ;;  %vm3392_vm10 = vcmp.eq.s32.totalorder %v5547_v17, %v6675_v0 }
 0x6df   : >> { %v3859_v61 = vmul.f32 %v5006_v26, %v6515_v47  ;;  %v5012_v47 = vsel %vm3481_vm2, 1.0, %v7929_v12  ;;  %v3764_v26 = vmul.f32 %v4911_v25, %v6426_v6 }
 0x6e2   : >> { %4086 = vadd.xlane.f32.xlu0 %v3859_v61  ;;  %3296 = vperm.xlu2 %5324, %v6028_v29  }
 0x6e3   : >> { %3308 = vperm.xlu1 %5326, %v6028_v29  }
 0x6ea   : >> { %5327 = vset.pattern.permute.xlu2 %v5613_v36  ;;  %v3865_v36 = vmul.f32 %v5012_v47, %v6569_v52 }
 0x6eb   : >> { %5328 = vset.pattern.permute.xlu1 %v5616_v37  ;;  %v7056_v37 = vpop.permute.xlu1 %3199 }
 0x6ec   : >> { %v3224_v1 = vpop.permute.xlu2 %3223 }
 0x6ed   : >> { %vm3478_vm11 = vcmp.eq.s32.totalorder %v5547_v17, %v3224_v1  ;;  %v4914_v1 = vsel %vm3383_vm0, 1.0, %v7929_v12 }
 0x6ee   : >> { %v5009_v28 = vsel %vm3478_vm11, 1.0, %v7929_v12  ;;  %v3767_v6 = vmul.f32 %v4914_v1, %v6457_v27  ;;  %vm3387_vm11 = vcmp.eq.s32.totalorder %v5547_v17, %v6659_v24  ;;  %v8089_v24 = vld [vmem:[#allocation62_spill] sm:$0xff] }
 0x6ef   : >> { %v3862_v34 = vmul.f32 %v5009_v28, %v6543_v4  ;;  %v4918_v0 = vsel %vm3387_vm11, 1.0, %v7929_v12 }
 0x6f1   : >> { %4092 = vadd.xlane.f32.xlu0 %v3862_v34  ;;  %v4910_v34 = vsel %vm3379_vm3, 1.0, %v7929_v12 }
 0x6f2   : >> { %3314 = vperm.xlu2 %5327, %v6028_v29  }
 0x6f3   : >> { %3320 = vperm.xlu1 %5328, %v6028_v29  }
 0x6f9   : >> { %4098 = vadd.xlane.f32.xlu0 %v3865_v36  ;;  %v8083_v36 = vld [vmem:[#allocation41_spill] sm:$0xff] }
 0x6fa   : >> { %5329 = vset.pattern.permute.xlu2 %v5598_v33  ;;  %v7060_v33 = vpop.permute.xlu1 %3217  ;;  %vm3386_vm5 = vcmp.eq.s32.totalorder %v5547_v17, %v8083_v36 }
 0x6fb   : >> { %5331 = vset.pattern.permute.xlu1 %v5625_v38  ;;  %v4917_v21 = vsel %vm3386_vm5, 1.0, %v7929_v12 }
 0x6fc   : >> { %v3770_v27 = vmul.f32 %v4917_v21, %v6519_v55 }
 0x702   : >> { %3326 = vperm.xlu2 %5329, %v6028_v29  }
 0x703   : >> { %3338 = vperm.xlu1 %5331, %v6028_v29  }
 0x705   : >> { %v7064_v38 = vpop.permute.xlu1 %3229 }
 0x70a   : >> { %5332 = vset.pattern.permute.xlu2 %v5637_v40  ;;  %v7067_v40 = vpop.permute.xlu2 %3235 }
 0x70b   : >> { %5333 = vset.pattern.permute.xlu1 %v5640_v41 }
 0x712   : >> { %3344 = vperm.xlu2 %5332, %v6028_v29   ;;  %v3254_v50 = vpop.permute.xlu2 %3253 }
 0x713   : >> { %3350 = vperm.xlu1 %5333, %v6028_v29   ;;  %vm3483_vm6 = vcmp.eq.s32.totalorder %v5547_v17, %v3254_v50 }
 0x715   : >> { %v7069_v41 = vpop.permute.xlu1 %3247 }
 0x71a   : >> { %5334 = vset.pattern.permute.xlu2 %v5610_v35 }
 0x71b   : >> { %5335 = vset.pattern.permute.xlu1 %v5649_v42 }
 0x71c   : >> { %v7075_v42 = vpop.permute.xlu2 %3265 }
 0x722   : >> { %3356 = vperm.xlu2 %5334, %v6028_v29  }
 0x723   : >> { %3368 = vperm.xlu1 %5335, %v6028_v29  }
 0x725   : >> { %v7072_v35 = vpop.permute.xlu1 %3259 }
 0x726   : >> { %8080 = vst [vmem:[#allocation127_spill] sm:$0xff] %v7072_v35 }
 0x72a   : >> { %5336 = vset.pattern.permute.xlu2 %v5658_v43 }
 0x72c   : >> { %v7079_v52 = vpop.permute.xlu2 %3284 }
 0x732   : >> { %3374 = vperm.xlu2 %5336, %v6028_v29   ;;  %v4907_v29 = vsel %vm3376_vm12, 1.0, %v7929_v12 }
 0x735   : >> { %v7077_v4 = vpop.permute.xlu1 %3277 }
 0x736   : >> { %8081 = vst [vmem:[#allocation128_spill] sm:$0xff] %v7077_v4  ;;  %v7328_v4 = vadd.s32 4294967224, %v5547_v17 }
 0x73a   : >> { %5337 = vset.pattern.permute.xlu2 %v7959_v57  ;;  %v3760_v57 = vmul.f32 %v4907_v29, %v6362_v8 }
 0x73c   : >> { %v7088_v9 = vpop.permute.xlu2 %3296 }
 0x745   : >> { %v3291_v43 = vpop.permute.xlu1 %3290 }
 0x746   : >> { %vm3489_vm13 = vcmp.eq.s32.totalorder %v5547_v17, %v3291_v43  ;;  %v7123_v43 = vpop.f32.mrf.mxu3 }
 0x747   : >> { %v5020_v63 = vsel %vm3489_vm13, 1.0, %v7929_v12  ;;  %8085 = vst [vmem:[#allocation37_spill] sm:$0xff] %v7123_v43  ;;  %vm3398_vm13 = vcmp.eq.s32.totalorder %v5547_v17, %v6702_v18  ;;  %v8155_v43 = vld [vmem:[#allocation32_spill] sm:$0xff] }
 0x748   : >> { %v3873_v60 = vmul.f32 %v5020_v63, %v6643_v3  ;;  %v4908_v3 = vsel %vm3377_vm15, 1.0, %v7929_v12  ;;  %v4920_v63 = vsel %vm3389_vm8, 1.0, %v7929_v12 }
 0x749   : >> { %v3761_v54 = vmul.f32 %v4908_v3, %v6384_v39  ;;  %v3773_v29 = vmul.f32 %v4920_v63, %v6550_v62  ;;  %v8086_v62 = vld [vmem:[#allocation75_spill] sm:$0xff]  ;;  %v8096_v63 = vld [vmem:[#allocation72_spill] sm:$0xff] }
 0x74a   : >> { %4114 = vadd.xlane.f32.xlu0 %v3873_v60  ;;  %vm3395_vm2 = vcmp.eq.s32.totalorder %v5547_v17, %v8086_v62 }
 0x74b   : >> { %v4926_v25 = vsel %vm3395_vm2, 1.0, %v7929_v12 }
 0x74c   : >> { %v7096_v61 = vpop.permute.xlu2 %3314 }
 0x74d   : >> { %3888 = vadd.xlane.f32.xlu1 %v3760_v57  ;;  %v4923_v57 = vsel %vm3392_vm10, 1.0, %v7929_v12 }
 0x74e   : >> { %v7136_v60 = vpop.f32.mrf.mxu3 }
 0x755   : >> { %3896 = vadd.xlane.f32.xlu1 %v3764_v26  ;;  %v3309_v8 = vpop.permute.xlu1 %3308  ;;  %v8087_v26 = vld [vmem:[#allocation27_spill] sm:$0xff] }
 0x756   : >> { %vm3492_vm1 = vcmp.eq.s32.totalorder %v5547_v17, %v3309_v8  ;;  %v3771_v8 = vmul.f32 %v4918_v0, %v8087_v26  ;;  %v2587_v3 = vpop.f32.mrf.mxu3 }
 0x757   : >> { %v5023_v49 = vsel %vm3492_vm1, 1.0, %v7929_v12 }
 0x758   : >> { %v3876_v28 = vmul.f32 %v5023_v49, %v6663_v45  ;;  %v3763_v45 = vmul.f32 %v4910_v34, %v6415_v44  ;;  %v4912_v44 = vsel %vm3381_vm7, 1.0, %v7929_v12  ;;  %v3779_v49 = vmul.f32 %v4926_v25, %v8089_v24  ;;  %v8092_v34 = vld [vmem:[#allocation66_spill] sm:$0xff]  ;;  %v8101_v25 = vld [vmem:[#allocation64_spill] sm:$0xff]  ;;  %v8104_v24 = vld [vmem:[#allocation85_spill] sm:$0xff] }
 0x759   : >> { %v3765_v55 = vmul.f32 %v4912_v44, %v6435_v20  ;;  %v3776_v20 = vmul.f32 %v4923_v57, %v6586_v11 }
 0x75a   : >> { %4120 = vadd.xlane.f32.xlu0 %v3876_v28  ;;  %v4929_v28 = vsel %vm3398_vm13, 1.0, %v7929_v12 }
 0x75b   : >> { %3890 = vadd.xlane.f32.xlu2 %v3761_v54  ;;  %v8090_v54 = vld [vmem:[#allocation18_spill] sm:$0xff] }
 0x75c   : >> { %v3327_v46 = vpop.permute.xlu2 %3326 }
 0x75d   : >> { %vm3495_vm4 = vcmp.eq.s32.totalorder %v5547_v17, %v3327_v46  ;;  %3902 = vadd.xlane.f32.xlu1 %v3767_v6  ;;  %v8091_v46 = vld [vmem:[#allocation73_spill] sm:$0xff] }
 0x75e   : >> { %v5026_v47 = vsel %vm3495_vm4, 1.0, %v7929_v12  ;;  %vm3393_vm14 = vcmp.eq.s32.totalorder %v5547_v17, %v8091_v46  ;;  %v7163_v36 = vpop.f32.mrf.mxu3  ;;  %vm3404_vm4 = vcmp.eq.s32.totalorder %v5547_v17, %v6745_v31  ;;  %v8105_v46 = vld [vmem:[#allocation68_spill] sm:$0xff] }
 0x75f   : >> { %v3879_v39 = vmul.f32 %v5026_v47, %v6687_v19  ;;  %v5014_v19 = vsel %vm3483_vm6, 1.0, %v7929_v12  ;;  %v3782_v47 = vmul.f32 %v4929_v28, %v8092_v34  ;;  %8093 = vst [vmem:[#allocation41_spill] sm:$0xff] %v7163_v36  ;;  %v4924_v18 = vsel %vm3393_vm14, 1.0, %v7929_v12 }
 0x760   : >> { %v3867_v50 = vmul.f32 %v5014_v19, %v6588_v32  ;;  %v3768_v32 = vmul.f32 %v4915_v15, %v6498_v56  ;;  %v8088_v56 = vld [vmem:[#allocation70_spill] sm:$0xff]  ;;  %v3777_v19 = vmul.f32 %v4924_v18, %v8095_v53  ;;  %v4935_v0 = vsel %vm3404_vm4, 1.0, %v7929_v12 }
 0x761   : >> { %vm3390_vm12 = vcmp.eq.s32.totalorder %v5547_v17, %v8088_v56  ;;  %vm3407_vm6 = vcmp.eq.s32.totalorder %v5547_v17, %v8104_v24  ;;  %v8108_v53 = vld [vmem:[#allocation74_spill] sm:$0xff]  ;;  %vm3419_vm14 = vcmp.eq.s32.totalorder %v5547_v17, %v6810_v2  ;;  %v7354_v36 = vadd.s32 4294967200, %v5547_v17 }
 0x762   : >> { %4126 = vadd.xlane.f32.xlu0 %v3879_v39  ;;  %v4921_v1 = vsel %vm3390_vm12, 1.0, %v7929_v12 }
 0x763   : >> { %3894 = vadd.xlane.f32.xlu2 %v3763_v45  ;;  %v3774_v6 = vmul.f32 %v4921_v1, %v8090_v54  ;;  %v8094_v45 = vld [vmem:[#allocation51_spill] sm:$0xff]  ;;  %v4938_v54 = vsel %vm3407_vm6, 1.0, %v7929_v12  ;;  %vm7901_vm6 = vcmask 130112  }
 0x764   : >> { %vm3401_vm0 = vcmp.eq.s32.totalorder %v5547_v17, %v8094_v45  ;;  %v8107_v45 = vld [vmem:[#allocation46_spill] sm:$0xff] }
 0x765   : >> { %3908 = vadd.xlane.f32.xlu1 %v3770_v27  ;;  %v7145_v51 = vpop.permute.xlu1 %3320  ;;  %v4932_v44 = vsel %vm3401_vm0, 1.0, %v7929_v12  ;;  %vm3410_vm9 = vcmp.eq.s32.totalorder %v5547_v17, %v8107_v45  ;;  %v8121_v45 = vld [vmem:[#allocation93_spill] sm:$0xff] }
 0x766   : >> { %v7177_v15 = vpop.f32.mrf.mxu3 }
 0x767   : >> { %8099 = vst [vmem:[#allocation39_spill] sm:$0xff] %v7177_v15 }
 0x76a   : >> { %4102 = vadd.xlane.f32.xlu0 %v3867_v50  ;;  %v3785_v50 = vmul.f32 %v4932_v44, %v8096_v63  ;;  %v8109_v44 = vld [vmem:[#allocation84_spill] sm:$0xff] }
 0x76b   : >> { %3898 = vadd.xlane.f32.xlu2 %v3765_v55  ;;  %v8097_v55 = vld [vmem:[#allocation54_spill] sm:$0xff]  ;;  %vm3405_vm10 = vcmp.eq.s32.totalorder %v5547_v17, %v8109_v44  ;;  %v8110_v63 = vld [vmem:[#allocation48_spill] sm:$0xff] }
 0x76c   : >> { %vm3486_vm1 = vcmp.eq.s32.totalorder %v5547_v17, %v8097_v55  ;;  %v8111_v55 = vld [vmem:[#allocation89_spill] sm:$0xff] }
 0x76d   : >> { %3914 = vadd.xlane.f32.xlu1 %v3773_v29  ;;  %v8098_v29 = vld [vmem:[#allocation47_spill] sm:$0xff]  ;;  %v5017_v57 = vsel %vm3486_vm1, 1.0, %v7929_v12  ;;  %vm3413_vm11 = vcmp.eq.s32.totalorder %v5547_v17, %v8111_v55  ;;  %v8125_v55 = vld [vmem:[#allocation53_spill] sm:$0xff] }
 0x76e   : >> { %vm3396_vm3 = vcmp.eq.s32.totalorder %v5547_v17, %v8098_v29  ;;  %v2595_v1 = vpop.f32.mrf.mxu3  ;;  %v7208_v29 = vpop.permute.xlu0 %3362 }
 0x76f   : >> { %8112 = vst [vmem:[#allocation75_spill] sm:$0xff] %v7208_v29 }
 0x773   : >> { %3904 = vadd.xlane.f32.xlu2 %v3768_v32  ;;  %v4927_v32 = vsel %vm3396_vm3, 1.0, %v7929_v12 }
 0x774   : >> { %v3780_v26 = vmul.f32 %v4927_v32, %v8101_v25  ;;  %v4944_v32 = vsel %vm3413_vm11, 1.0, %v7929_v12  ;;  %v8115_v25 = vld [vmem:[#allocation52_spill] sm:$0xff]  ;;  %vm4292_vm11 = vcmask 326912  }
 0x775   : >> { %3920 = vadd.xlane.f32.xlu1 %v3776_v20  ;;  %v7155_v11 = vpop.permute.xlu1 %3338  ;;  %v8100_v20 = vld [vmem:[#allocation33_spill] sm:$0xff] }
 0x776   : >> { %v3870_v62 = vmul.f32 %v5017_v57, %v8100_v20  ;;  %v4936_v57 = vsel %vm3405_vm10, 1.0, %v7929_v12  ;;  %v8113_v20 = vld [vmem:[#allocation78_spill] sm:$0xff] }
 0x77b   : >> { %3910 = vadd.xlane.f32.xlu2 %v3771_v8  ;;  %v8102_v8 = vld [vmem:[#allocation81_spill] sm:$0xff] }
 0x77c   : >> { %vm3399_vm5 = vcmp.eq.s32.totalorder %v5547_v17, %v8102_v8  ;;  %v8116_v8 = vld [vmem:[#allocation57_spill] sm:$0xff] }
 0x77d   : >> { %3926 = vadd.xlane.f32.xlu1 %v3779_v49  ;;  %v4930_v49 = vsel %vm3399_vm5, 1.0, %v7929_v12  ;;  %vm3416_vm12 = vcmp.eq.s32.totalorder %v5547_v17, %v8116_v8 }
 0x77e   : >> { %v3783_v34 = vmul.f32 %v4930_v49, %v8105_v46  ;;  %v4947_v24 = vsel %vm3416_vm12, 1.0, %v7929_v12 }
 0x783   : >> { %3916 = vadd.xlane.f32.xlu2 %v3774_v6 }
 0x785   : >> { %3932 = vadd.xlane.f32.xlu1 %v3782_v47  ;;  %v3351_v39 = vpop.permute.xlu1 %3350  ;;  %v2357_v47 = vpop.f32.mrf.mxu0 }
 0x786   : >> { %vm3499_vm15 = vcmp.eq.s32.totalorder %v5547_v17, %v3351_v39  ;;  %v8106_v39 = vld [vmem:[#allocation83_spill] sm:$0xff]  ;;  %v3791_v18 = vmul.f32 %v4938_v54, %v2357_v47  ;;  %v4950_v47 = vsel %vm3419_vm14, 1.0, %v7929_v12  ;;  %vm4300_vm14 = vcmask 458112  }
 0x787   : >> { %v5030_v21 = vsel %vm3499_vm15, 1.0, %v7929_v12  ;;  %vm3402_vm8 = vcmp.eq.s32.totalorder %v5547_v17, %v8106_v39  ;;  %v8120_v39 = vld [vmem:[#allocation50_spill] sm:$0xff]  ;;  %vm3414_vm15 = vcmp.eq.s32.totalorder %v5547_v17, %v8121_v45 }
 0x788   : >> { %v3883_v27 = vmul.f32 %v5030_v21, %v2587_v3  ;;  %v8103_v3 = vld [vmem:[#allocation77_spill] sm:$0xff]  ;;  %v4933_v21 = vsel %vm3402_vm8, 1.0, %v7929_v12  ;;  %v4945_v2 = vsel %vm3414_vm15, 1.0, %v7929_v12  ;;  %vm4304_vm15 = vcmask 523712  }
 0x789   : >> { %v3788_v56 = vmul.f32 %v4935_v0, %v8103_v3  ;;  %v8114_v0 = vld [vmem:[#allocation86_spill] sm:$0xff]  ;;  %v3893_v3 = vpop.xlane.xlu0 %3892 }
 0x78a   : >> { %4134 = vadd.xlane.f32.xlu0 %v3883_v27  ;;  %v4941_v27 = vsel %vm3410_vm9, 1.0, %v7929_v12  ;;  %vm3408_vm2 = vcmp.eq.s32.totalorder %v5547_v17, %v8114_v0  ;;  %v8128_v0 = vld [vmem:[#allocation100_spill] sm:$0xff]  ;;  %vm4288_vm9 = vcmask 261312  }
 0x78b   : >> { %3922 = vadd.xlane.f32.xlu2 %v3777_v19  ;;  %v3786_v19 = vmul.f32 %v4933_v21, %v8108_v53  ;;  %v8122_v21 = vld [vmem:[#allocation82_spill] sm:$0xff]  ;;  %v8123_v53 = vld [vmem:[#allocation97_spill] sm:$0xff]  ;;  %vm3425_vm3 = vcmp.eq.s32.totalorder %v5547_v17, %v8128_v0 }
 0x78c   : >> { %vm3422_vm0 = vcmp.eq.s32.totalorder %v5547_v17, %v8123_v53  ;;  %v8135_v0 = vld [vmem:[#allocation13_spill] sm:$0xff] }
 0x78d   : >> { %3938 = vadd.xlane.f32.xlu1 %v3785_v50  ;;  %v3794_v50 = vmul.f32 %v4941_v27, %v8110_v63  ;;  %v3803_v27 = vmul.f32 %v4950_v47, %v8122_v21  ;;  %v4953_v63 = vsel %vm3422_vm0, 1.0, %v7929_v12  ;;  %v8133_v47 = vld [vmem:[#allocation101_spill] sm:$0xff]  ;;  %vm3423_vm8 = vcmp.eq.s32.totalorder %v5547_v17, %v8135_v0  ;;  %v8140_v0 = vld [vmem:[#allocation19_spill] sm:$0xff] }
 0x78e   : >> { %vm3428_vm5 = vcmp.eq.s32.totalorder %v5547_v17, %v8133_v47 }
 0x791   : >> { %v7227_v46 = vpop.xlane.xlu0 %3900 }
 0x792   : >> { %4108 = vadd.xlane.f32.xlu0 %v3870_v62  ;;  %v3789_v62 = vmul.f32 %v4936_v57, %v8113_v20  ;;  %v3798_v57 = vmul.f32 %v4945_v2, %v8125_v55  ;;  %v8127_v20 = vld [vmem:[#allocation87_spill] sm:$0xff]  ;;  %v4959_v2 = vsel %vm3428_vm5, 1.0, %v7929_v12  ;;  %v8134_v55 = vld [vmem:[#allocation12_spill] sm:$0xff]  ;;  %vm4316_vm5 = vcmask 720512  }
 0x793   : >> { %3928 = vadd.xlane.f32.xlu2 %v3780_v26  ;;  %v3797_v26 = vmul.f32 %v4944_v32, %v8115_v25  ;;  %v8126_v32 = vld [vmem:[#allocation94_spill] sm:$0xff] }
 0x794   : >> { %vm3417_vm1 = vcmp.eq.s32.totalorder %v5547_v17, %v8126_v32 }
 0x795   : >> { %3944 = vadd.xlane.f32.xlu1 %v3788_v56  ;;  %v3369_v31 = vpop.permute.xlu1 %3368  ;;  %v4939_v56 = vsel %vm3408_vm2, 1.0, %v7929_v12  ;;  %v4948_v25 = vsel %vm3417_vm1, 1.0, %v7929_v12  ;;  %vm3426_vm2 = vcmp.eq.s32.totalorder %v5547_v17, %v8140_v0  ;;  %v8143_v0 = vld [vmem:[#allocation22_spill] sm:$0xff]  ;;  %vm3437_vm1 = vcmp.eq.s32.totalorder %v5547_v17, %v6883_v23  ;;  %v8145_v23 = vld [vmem:[#allocation95_spill] sm:$0xff] }
 0x796   : >> { %vm3502_vm7 = vcmp.eq.s32.totalorder %v5547_v17, %v3369_v31  ;;  %v8117_v31 = vld [vmem:[#allocation45_spill] sm:$0xff]  ;;  %vm3429_vm0 = vcmp.eq.s32.totalorder %v5547_v17, %v8143_v0 }
 0x797   : >> { %v5033_v28 = vsel %vm3502_vm7, 1.0, %v7929_v12  ;;  %v3792_v49 = vmul.f32 %v4939_v56, %v8117_v31  ;;  %v4956_v56 = vsel %vm3425_vm3, 1.0, %v7929_v12  ;;  %v8130_v31 = vld [vmem:[#allocation80_spill] sm:$0xff]  ;;  %vm4284_vm7 = vcmask 195712  }
 0x798   : >> { %v3886_v6 = vmul.f32 %v5033_v28, %v2595_v1  ;;  %v8118_v1 = vld [vmem:[#allocation55_spill] sm:$0xff]  ;;  %vm4308_vm3 = vcmask 589312  }
 0x799   : >> { %vm3411_vm13 = vcmp.eq.s32.totalorder %v5547_v17, %v8118_v1  ;;  %v8119_v28 = vld [vmem:[#allocation79_spill] sm:$0xff]  ;;  %v7241_v44 = vpop.xlane.xlu0 %3906  ;;  %v8131_v1 = vld [vmem:[#allocation96_spill] sm:$0xff] }
 0x79a   : >> { %4140 = vadd.xlane.f32.xlu0 %v3886_v6  ;;  %v3800_v54 = vmul.f32 %v4947_v24, %v8119_v28  ;;  %v4942_v6 = vsel %vm3411_vm13, 1.0, %v7929_v12  ;;  %vm3420_vm4 = vcmp.eq.s32.totalorder %v5547_v17, %v8131_v1  ;;  %v8132_v28 = vld [vmem:[#allocation90_spill] sm:$0xff]  ;;  %v8137_v1 = vld [vmem:[#allocation20_spill] sm:$0xff]  ;;  %vm4296_vm13 = vcmask 392512  }
 0x79b   : >> { %3934 = vadd.xlane.f32.xlu2 %v3783_v34  ;;  %v7229_v34 = vpop.permute.xlu2 %3344  ;;  %vm3431_vm10 = vcmp.eq.s32.totalorder %v5547_v17, %v8137_v1 }
 0x79d   : >> { %3950 = vadd.xlane.f32.xlu1 %v3791_v18  ;;  %v3795_v18 = vmul.f32 %v4942_v6, %v8120_v39  ;;  %v7261_v6 = vadd.s32 4294967280, %v5547_v17  ;;  %v7266_v39 = vadd.s32 4294967288, %v5547_v17 }
 0x79f   : >> { %v4283_v53 = vperm.slane %v3893_v3, %v7261_v6  ;;  %v4954_v3 = vsel %vm3423_vm8, 1.0, %v7929_v12 }
 0x7a1   : >> { %v7253_v8 = vpop.xlane.xlu0 %3912 }
 0x7a3   : >> { %3940 = vadd.xlane.f32.xlu2 %v3786_v19  ;;  %v7239_v19 = vpop.permute.xlu2 %3356 }
 0x7a4   : >> { %8124 = vst [vmem:[#allocation27_spill] sm:$0xff] %v7239_v19 }
 0x7a5   : >> { %3956 = vadd.xlane.f32.xlu1 %v3794_v50 }
 0x7ab   : >> { %3946 = vadd.xlane.f32.xlu2 %v3789_v62  ;;  %v3806_v62 = vmul.f32 %v4953_v63, %v8127_v20  ;;  %v7275_v20 = vpop.xlane.xlu0 %3918 }
 0x7ad   : >> { %3962 = vadd.xlane.f32.xlu1 %v3797_v26  ;;  %v7251_v26 = vpop.permute.xlu2 %3374 }
 0x7ae   : >> { %8129 = vst [vmem:[#allocation70_spill] sm:$0xff] %v7251_v26  ;;  %v7380_v26 = vadd.s32 4294967176, %v5547_v17 }
 0x7b3   : >> { %3952 = vadd.xlane.f32.xlu2 %v3792_v49  ;;  %v3801_v49 = vmul.f32 %v4948_v25, %v8130_v31  ;;  %v7286_v31 = vadd.s32 4294967264, %v5547_v17 }
 0x7b5   : >> { %3968 = vadd.xlane.f32.xlu1 %v3800_v54  ;;  %v3809_v54 = vmul.f32 %v4956_v56, %v8132_v28  ;;  %v7282_v56 = vadd.s32 4294967272, %v5547_v17 }
 0x7bb   : >> { %3958 = vadd.xlane.f32.xlu2 %v3795_v18  ;;  %v4951_v18 = vsel %vm3420_vm4, 1.0, %v7929_v12  ;;  %vm4312_vm4 = vcmask 654912  }
 0x7bd   : >> { %3974 = vadd.xlane.f32.xlu1 %v3803_v27 }
 0x7c0   : >> { %v3889_v50 = vpop.xlane.xlu1 %3888 }
 0x7c1   : >> { %v4277_v21 = vperm.slane %v3889_v50, %v5547_v17  ;;  %v8136_v50 = vld [vmem:[#allocation92_spill] sm:$0xff] }
 0x7c2   : >> { %v3812_v25 = vmul.f32 %v4959_v2, %v8136_v50  ;;  %v8141_v50 = vld [vmem:[#allocation108_spill] sm:$0xff] }
 0x7c3   : >> { %3964 = vadd.xlane.f32.xlu2 %v3798_v57  ;;  %v3804_v57 = vmul.f32 %v4951_v18, %v8134_v55  ;;  %v8138_v18 = vld [vmem:[#allocation88_spill] sm:$0xff]  ;;  %v8139_v55 = vld [vmem:[#allocation98_spill] sm:$0xff]  ;;  %vm3434_vm12 = vcmp.eq.s32.totalorder %v5547_v17, %v8141_v50 }
 0x7c4   : >> { %v8144_v50 = vld [vmem:[#allocation102_spill] sm:$0xff] }
 0x7c5   : >> { %3980 = vadd.xlane.f32.xlu1 %v3806_v62 }
 0x7c8   : >> { %v3897_v24 = vpop.xlane.xlu1 %3896 }
 0x7cb   : >> { %3970 = vadd.xlane.f32.xlu2 %v3801_v49 }
 0x7cd   : >> { %3986 = vadd.xlane.f32.xlu1 %v3809_v54  ;;  %v4291_v54 = vperm.slane %v3897_v24, %v7286_v31  ;;  %v7305_v24 = vadd.s32 4294967256, %v5547_v17 }
 0x7ce   : >> { %v3891_v45 = vpop.xlane.xlu2 %3890 }
 0x7cf   : >> { %v4279_v27 = vperm.slane %v3891_v45, %v7266_v39  ;;  %v3807_v45 = vmul.f32 %v4954_v3, %v8138_v18  ;;  %v8142_v18 = vld [vmem:[#allocation91_spill] sm:$0xff] }
 0x7d0   : >> { %v3903_v63 = vpop.xlane.xlu1 %3902 }
 0x7d1   : >> { %v4281_v32 = vsel %vm7901_vm6, %v4279_v27, %v4277_v21  ;;  %v4962_v27 = vsel %vm3431_vm10, 1.0, %v7929_v12  ;;  %vm3440_vm10 = vcmp.eq.s32.totalorder %v5547_v17, %v6895_v13 }
 0x7d2   : >> { %v4285_v62 = vsel %vm4284_vm7, %v4283_v53, %v4281_v32  ;;  %v7295_v53 = vpop.xlane.xlu0 %3924  ;;  %v7300_v32 = vadd.s32 4294967248, %v5547_v17 }
 0x7d3   : >> { %3976 = vadd.xlane.f32.xlu2 %v3804_v57  ;;  %v3815_v57 = vmul.f32 %v4962_v27, %v8139_v55 }
 0x7d4   : >> { %v4299_v1 = vperm.slane %v7227_v46, %v7300_v32 }
 0x7d5   : >> { %3992 = vadd.xlane.f32.xlu1 %v3812_v25  ;;  %v7310_v25 = vadd.s32 4294967240, %v5547_v17 }
 0x7d6   : >> { %v3895_v49 = vpop.xlane.xlu2 %3894 }
 0x7d7   : >> { %v4287_v28 = vperm.slane %v3895_v49, %v7282_v56  ;;  %v4957_v49 = vsel %vm3426_vm2, 1.0, %v7929_v12  ;;  %vm7900_vm2 = vcmask 786112  }
 0x7d8   : >> { %v3909_v47 = vpop.xlane.xlu1 %3908 }
 0x7d9   : >> { %v4289_v21 = vsel %vm4288_vm9, %v4287_v28, %v4285_v62  ;;  %v4965_v28 = vsel %vm3434_vm12, 1.0, %v7929_v12  ;;  %vm7898_vm12 = vcmask 851712  }
 0x7da   : >> { %v4293_v2 = vsel %vm4292_vm11, %v4291_v54, %v4289_v21  ;;  %v4303_v21 = vperm.slane %v3903_v63, %v7310_v25  ;;  %v7320_v55 = vpop.xlane.xlu0 %3930  ;;  %v4960_v63 = vsel %vm3429_vm0, 1.0, %v7929_v12  ;;  %vm4328_vm0 = vcmask 917312  }
 0x7db   : >> { %3982 = vadd.xlane.f32.xlu2 %v3807_v45  ;;  %v3810_v45 = vmul.f32 %v4957_v49, %v8142_v18  ;;  %v7331_v49 = vadd.s32 4294967232, %v5547_v17  ;;  %v4968_v18 = vsel %vm3437_vm1, 1.0, %v7929_v12 }
 0x7dd   : >> { %3998 = vadd.xlane.f32.xlu1 %v3815_v57 }
 0x7de   : >> { %v3899_v62 = vpop.xlane.xlu2 %3898 }
 0x7df   : >> { %v4295_v3 = vperm.slane %v3899_v62, %v7305_v24  ;;  %v3818_v62 = vmul.f32 %v4965_v28, %v8144_v50  ;;  %v4311_v28 = vperm.slane %v7241_v44, %v7328_v4  ;;  %v8146_v50 = vld [vmem:[#allocation105_spill] sm:$0xff] }
 0x7e0   : >> { %v3915_v54 = vpop.xlane.xlu1 %3914  ;;  %vm3432_vm8 = vcmp.eq.s32.totalorder %v5547_v17, %v8146_v50 }
 0x7e1   : >> { %v4297_v27 = vsel %vm4296_vm13, %v4295_v3, %v4293_v2  ;;  %v7337_v3 = vadd.s32 4294967216, %v5547_v17 }
 0x7e2   : >> { %v4301_v57 = vsel %vm4300_vm14, %v4299_v1, %v4297_v27  ;;  %v7356_v19 = vpop.xlane.xlu0 %3936 }
 0x7e3   : >> { %3988 = vadd.xlane.f32.xlu2 %v3810_v45  ;;  %v4305_v46 = vsel %vm4304_vm15, %v4303_v21, %v4301_v57  ;;  %v3813_v21 = vmul.f32 %v4960_v63, %v8145_v23  ;;  %v4315_v27 = vperm.slane %v3909_v47, %v7337_v3  ;;  %v7359_v63 = vadd.s32 4294967208, %v5547_v17 }
 0x7e4   : >> { %v4963_v47 = vsel %vm3432_vm8, 1.0, %v7929_v12  ;;  %v4971_v23 = vsel %vm3440_vm10, 1.0, %v7929_v12  ;;  %vm4332_vm10 = vcmask 982912  }
 0x7e5   : >> { %4004 = vadd.xlane.f32.xlu1 %v3818_v62  ;;  %v8147_v62 = vld [vmem:[#allocation106_spill] sm:$0xff] }
 0x7e6   : >> { %v3905_v2 = vpop.xlane.xlu2 %3904 }
 0x7e7   : >> { %v4307_v1 = vperm.slane %v3905_v2, %v7331_v49  ;;  %v3821_v2 = vmul.f32 %v4968_v18, %v8147_v62  ;;  %v4323_v18 = vperm.slane %v7253_v8, %v7354_v36  ;;  %v8149_v62 = vld [vmem:[#allocation109_spill] sm:$0xff] }
 0x7e8   : >> { %v7343_v45 = vpop.xlane.xlu1 %3920  ;;  %vm3435_vm1 = vcmp.eq.s32.totalorder %v5547_v17, %v8149_v62 }
 0x7e9   : >> { %v4309_v57 = vsel %vm4308_vm3, %v4307_v1, %v4305_v46  ;;  %v7365_v1 = vadd.s32 4294967192, %v5547_v17 }
 0x7ea   : >> { %v4313_v0 = vsel %vm4312_vm4, %v4311_v28, %v4309_v57  ;;  %v7382_v35 = vpop.xlane.xlu0 %3942 }
 0x7eb   : >> { %3994 = vadd.xlane.f32.xlu2 %v3813_v21  ;;  %v4317_v44 = vsel %vm4316_vm5, %v4315_v27, %v4313_v0  ;;  %v8148_v27 = vld [vmem:[#allocation99_spill] sm:$0xff]  ;;  %v4327_v57 = vperm.slane %v3915_v54, %v7365_v1  ;;  %v8151_v54 = vld [vmem:[#allocation113_spill] sm:$0xff] }
 0x7ec   : >> { %v3816_v13 = vmul.f32 %v4963_v47, %v8148_v27  ;;  %v7385_v47 = vadd.s32 4294967184, %v5547_v17  ;;  %vm3443_vm8 = vcmp.eq.s32.totalorder %v5547_v17, %v8151_v54 }
 0x7ed   : >> { %4010 = vadd.xlane.f32.xlu1 %v3821_v2  ;;  %v8150_v2 = vld [vmem:[#allocation58_spill] sm:$0xff]  ;;  %v4974_v27 = vsel %vm3443_vm8, 1.0, %v7929_v12  ;;  %vm3446_vm8 = vcmp.eq.s32.totalorder %v5547_v17, %v8155_v43  ;;  %v8157_v43 = vld [vmem:[#allocation25_spill] sm:$0xff] }
 0x7ee   : >> { %v3911_v46 = vpop.xlane.xlu2 %3910 }
 0x7ef   : >> { %v4319_v28 = vperm.slane %v3911_v46, %v7359_v63  ;;  %v3824_v46 = vmul.f32 %v4971_v23, %v8150_v2  ;;  %v4335_v23 = vperm.slane %v7275_v20, %v7380_v26  ;;  %v8153_v2 = vld [vmem:[#allocation17_spill] sm:$0xff] }
 0x7f0   : >> { %v3927_v21 = vpop.xlane.xlu1 %3926 }
 0x7f1   : >> { %v4321_v0 = vsel %vm7900_vm2, %v4319_v28, %v4317_v44  ;;  %v4966_v44 = vsel %vm3435_vm1, 1.0, %v7929_v12  ;;  %vm3438_vm1 = vcmp.eq.s32.totalorder %v5547_v17, %v8153_v2  ;;  %v4977_v2 = vsel %vm3446_vm8, 1.0, %v7929_v12 }
 0x7f2   : >> { %v4325_v50 = vsel %vm7898_vm12, %v4323_v18, %v4321_v0  ;;  %vm7899_vm12 = vcmask 1048512   ;;  %v4969_v20 = vsel %vm3438_vm1, 1.0, %v7929_v12 }
 0x7f3   : >> { %4000 = vadd.xlane.f32.xlu2 %v3816_v13  ;;  %v4329_v8 = vsel %vm4328_vm0, %v4327_v57, %v4325_v50  ;;  %v8152_v57 = vld [vmem:[#allocation103_spill] sm:$0xff] }
 0x7f4   : >> { %v3819_v0 = vmul.f32 %v4966_v44, %v8152_v57 }
 0x7f5   : >> { %4016 = vadd.xlane.f32.xlu1 %v3824_v46  ;;  %v8154_v46 = vld [vmem:[#allocation60_spill] sm:$0xff] }
 0x7f6   : >> { %v3917_v28 = vpop.xlane.xlu2 %3916  ;;  %v3827_v54 = vmul.f32 %v4974_v27, %v8154_v46  ;;  %v8156_v27 = vld [vmem:[#allocation110_spill] sm:$0xff] }
 0x7f7   : >> { %v4331_v18 = vperm.slane %v3917_v28, %v7385_v47  ;;  %v7402_v28 = vpop.xlane.xlu0 %3948  ;;  %v3822_v57 = vmul.f32 %v4969_v20, %v8156_v27 }
 0x7f8   : >> { %v3933_v13 = vpop.xlane.xlu1 %3932 }
 0x7f9   : >> { %v4333_v50 = vsel %vm4332_vm10, %v4331_v18, %v4329_v8  ;;  %v4338_v8 = vperm.slane %v7343_v45, %v5547_v17  ;;  %v4341_v18 = vperm.slane %v7295_v53, %v7261_v6  ;;  %v8159_v53 = vld [vmem:[#allocation119_spill] sm:$0xff] }
 0x7fa   : >> { %v7397_v62 = vsel %vm7899_vm12, %v4335_v23, %v4333_v50  ;;  %vm3449_vm12 = vcmp.eq.s32.totalorder %v5547_v17, %v8159_v53 }
 0x7fb   : >> { %4006 = vadd.xlane.f32.xlu2 %v3819_v0  ;;  %v4343_v0 = vperm.slane %v3927_v21, %v7282_v56  ;;  %v4980_v27 = vsel %vm3449_vm12, 1.0, %v7929_v12 }
 0x7fd   : >> { %4022 = vadd.xlane.f32.xlu1 %v3827_v54  ;;  %v3830_v54 = vmul.f32 %v4977_v2, %v8157_v43  ;;  %v4349_v2 = vperm.slane %v3933_v13, %v7300_v32 }
 0x7fe   : >> { %v3923_v15 = vpop.xlane.xlu2 %3922 }
 0x7ff   : >> { %v4339_v44 = vperm.slane %v3923_v15, %v7266_v39  ;;  %v8158_v15 = vld [vmem:[#allocation30_spill] sm:$0xff]  ;;  %v7423_v20 = vpop.xlane.xlu0 %3954 }
 0x800   : >> { %v3939_v23 = vpop.xlane.xlu1 %3938  ;;  %vm3441_vm1 = vcmp.eq.s32.totalorder %v5547_v17, %v8158_v15  ;;  %v8162_v15 = vld [vmem:[#allocation104_spill] sm:$0xff] }
 0x801   : >> { %v4340_v50 = vsel %vm7901_vm6, %v4339_v44, %v4338_v8  ;;  %v4972_v44 = vsel %vm3441_vm1, 1.0, %v7929_v12  ;;  %v3833_v53 = vmul.f32 %v4980_v27, %v8162_v15  ;;  %v8166_v15 = vld [vmem:[#allocation111_spill] sm:$0xff] }
 0x802   : >> { %v4342_v46 = vsel %vm4284_vm7, %v4341_v18, %v4340_v50  ;;  %v4347_v18 = vperm.slane %v7320_v55, %v7305_v24  ;;  %v8163_v55 = vld [vmem:[#allocation121_spill] sm:$0xff] }
 0x803   : >> { %4012 = vadd.xlane.f32.xlu2 %v3822_v57  ;;  %v4344_v45 = vsel %vm4288_vm9, %v4343_v0, %v4342_v46  ;;  %v8160_v0 = vld [vmem:[#allocation59_spill] sm:$0xff]  ;;  %vm3452_vm12 = vcmp.eq.s32.totalorder %v5547_v17, %v8163_v55 }
 0x804   : >> { %v3825_v50 = vmul.f32 %v4972_v44, %v8160_v0  ;;  %v8164_v0 = vld [vmem:[#allocation61_spill] sm:$0xff] }
 0x805   : >> { %4028 = vadd.xlane.f32.xlu1 %v3830_v54  ;;  %v8161_v54 = vld [vmem:[#allocation116_spill] sm:$0xff] }
 0x806   : >> { %v3929_v21 = vpop.xlane.xlu2 %3928  ;;  %vm3444_vm8 = vcmp.eq.s32.totalorder %v5547_v17, %v8161_v54  ;;  %v8165_v54 = vld [vmem:[#allocation117_spill] sm:$0xff] }
 0x807   : >> { %v4345_v8 = vperm.slane %v3929_v21, %v7286_v31  ;;  %v7440_v29 = vpop.xlane.xlu0 %3960  ;;  %v4975_v13 = vsel %vm3444_vm8, 1.0, %v7929_v12  ;;  %vm3447_vm1 = vcmp.eq.s32.totalorder %v5547_v17, %v8165_v54  ;;  %v8169_v54 = vld [vmem:[#allocation120_spill] sm:$0xff] }
 0x808   : >> { %v3945_v57 = vpop.xlane.xlu1 %3944 }
 0x809   : >> { %v4346_v46 = vsel %vm4292_vm11, %v4345_v8, %v4344_v45  ;;  %v4353_v8 = vperm.slane %v7356_v19, %v7331_v49  ;;  %v8167_v19 = vld [vmem:[#allocation124_spill] sm:$0xff] }
 0x80a   : >> { %v4348_v43 = vsel %vm4296_vm13, %v4347_v18, %v4346_v46  ;;  %v4983_v18 = vsel %vm3452_vm12, 1.0, %v7929_v12  ;;  %vm3455_vm8 = vcmp.eq.s32.totalorder %v5547_v17, %v8167_v19  ;;  %vm3450_vm12 = vcmp.eq.s32.totalorder %v5547_v17, %v8169_v54 }
 0x80b   : >> { %4018 = vadd.xlane.f32.xlu2 %v3825_v50  ;;  %v4350_v21 = vsel %vm4300_vm14, %v4349_v2, %v4348_v43  ;;  %v3828_v50 = vmul.f32 %v4975_v13, %v8164_v0  ;;  %v4355_v2 = vperm.slane %v3939_v23, %v7328_v4  ;;  %v4978_v13 = vsel %vm3447_vm1, 1.0, %v7929_v12  ;;  %v8168_v0 = vld [vmem:[#allocation21_spill] sm:$0xff] }
 0x80c   : >> { %vm8171_vm1 = vcmask 851712   ;;  %v4981_v19 = vsel %vm3450_vm12, 1.0, %v7929_v12 }
 0x80d   : >> { %4034 = vadd.xlane.f32.xlu1 %v3833_v53  ;;  %v3836_v53 = vmul.f32 %v4983_v18, %v8166_v15  ;;  %v8170_v15 = vld [vmem:[#allocation114_spill] sm:$0xff] }
 0x80e   : >> { %v3935_v44 = vpop.xlane.xlu2 %3934 }
 0x80f   : >> { %v4351_v45 = vperm.slane %v3935_v44, %v7310_v25 }
 0x810   : >> { %v3951_v27 = vpop.xlane.xlu1 %3950 }
 0x811   : >> { %v4352_v46 = vsel %vm4304_vm15, %v4351_v45, %v4350_v21  ;;  %v4359_v21 = vperm.slane %v7382_v35, %v7359_v63  ;;  %v7461_v45 = vpop.xlane.xlu0 %3966 }
 0x812   : >> { %v4354_v43 = vsel %vm4308_vm3, %v4353_v8, %v4352_v46  ;;  %v4986_v8 = vsel %vm3455_vm8, 1.0, %v7929_v12  ;;  %vm3458_vm8 = vcmp.eq.s32.totalorder %v5547_v17, %v6966_v10 }
 0x813   : >> { %4024 = vadd.xlane.f32.xlu2 %v3828_v50  ;;  %v4356_v55 = vsel %vm4312_vm4, %v4355_v2, %v4354_v43  ;;  %v3831_v50 = vmul.f32 %v4978_v13, %v8168_v0  ;;  %v4361_v2 = vperm.slane %v3945_v57, %v7354_v36 }
 0x815   : >> { %4040 = vadd.xlane.f32.xlu1 %v3836_v53  ;;  %v3839_v53 = vmul.f32 %v4986_v8, %v8170_v15  ;;  %v8172_v8 = vld [vmem:[#allocation107_spill] sm:$0xff] }
 0x816   : >> { %v3941_v44 = vpop.xlane.xlu2 %3940  ;;  %v3834_v0 = vmul.f32 %v4981_v19, %v8172_v8  ;;  %v8176_v19 = vld [vmem:[#allocation40_spill] sm:$0xff] }
 0x817   : >> { %v4357_v23 = vperm.slane %v3941_v44, %v7337_v3 }
 0x818   : >> { %v3957_v18 = vpop.xlane.xlu1 %3956 }
 0x819   : >> { %v4358_v46 = vsel %vm4316_vm5, %v4357_v23, %v4356_v55  ;;  %v4365_v55 = vperm.slane %v7402_v28, %v7385_v47  ;;  %v7478_v44 = vpop.xlane.xlu0 %3972  ;;  %v4989_v23 = vsel %vm3458_vm8, 1.0, %v7929_v12  ;;  %vm3461_vm8 = vcmp.eq.s32.totalorder %v5547_v17, %v8176_v19  ;;  %v8180_v19 = vld [vmem:[#allocation115_spill] sm:$0xff] }
 0x81a   : >> { %v4360_v43 = vsel %vm7900_vm2, %v4359_v21, %v4358_v46  ;;  %v8173_v46 = vld [vmem:[#allocation36_spill] sm:$0xff]  ;;  %vm8175_vm2 = vcmask 1048512  }
 0x81b   : >> { %4030 = vadd.xlane.f32.xlu2 %v3831_v50  ;;  %v4362_v35 = vsel %vm8171_vm1, %v4361_v2, %v4360_v43  ;;  %v4367_v50 = vperm.slane %v3951_v27, %v7380_v26  ;;  %vm4555_vm1 = vcmask 1041409   ;;  %vm3453_vm12 = vcmp.eq.s32.totalorder %v5547_v17, %v8173_v46  ;;  %v8174_v43 = vld [vmem:[#allocation35_spill] sm:$0xff] }
 0x81c   : >> { %v3842_v54 = vmul.f32 %v4989_v23, %v8174_v43  ;;  %v8177_v23 = vld [vmem:[#allocation112_spill] sm:$0xff]  ;;  %v8179_v43 = vld [vmem:[#allocation38_spill] sm:$0xff] }
 0x81d   : >> { %4046 = vadd.xlane.f32.xlu1 %v3839_v53  ;;  %v4984_v53 = vsel %vm3453_vm12, 1.0, %v7929_v12  ;;  %vm3459_vm12 = vcmp.eq.s32.totalorder %v5547_v17, %v6993_v58 }
 0x81e   : >> { %v3947_v13 = vpop.xlane.xlu2 %3946  ;;  %v3837_v8 = vmul.f32 %v4984_v53, %v8177_v23 }
 0x81f   : >> { %v4363_v57 = vperm.slane %v3947_v13, %v7365_v1 }
 0x820   : >> { %v3963_v21 = vpop.xlane.xlu1 %3962 }
 0x821   : >> { %v4364_v10 = vsel %vm4328_vm0, %v4363_v57, %v4362_v35  ;;  %v4370_v35 = vperm.slane %v7423_v20, %v7266_v39  ;;  %v4372_v57 = vperm.slane %v3957_v18, %v7261_v6 }
 0x822   : >> { %v4366_v2 = vsel %vm4332_vm10, %v4365_v55, %v4364_v10 }
 0x823   : >> { %v4368_v28 = vsel %vm8175_vm2, %v4367_v50, %v4366_v2  ;;  %4036 = vadd.xlane.f32.xlu2 %v3834_v0  ;;  %v4992_v0 = vsel %vm3461_vm8, 1.0, %v7929_v12  ;;  %v7502_v50 = vpop.xlane.xlu0 %3978  ;;  %v8178_v2 = vld [vmem:[#allocation122_spill] sm:$0xff]  ;;  %vm3456_vm2 = vcmp.eq.s32.totalorder %v5547_v17, %v8179_v43  ;;  %vm3467_vm8 = vcmp.eq.s32.totalorder %v5547_v17, %v7011_v7 }
 0x824   : >> { %v7490_v15 = vsel %vm4555_vm1, %v4368_v28, %v7397_v62  ;;  %v3845_v46 = vmul.f32 %v4992_v0, %v8178_v2  ;;  %vm3464_vm1 = vcmp.eq.s32.totalorder %v5547_v17, %v7003_v59  ;;  %v4376_v28 = vperm.slane %v7440_v29, %v7286_v31 }
 0x825   : >> { %4052 = vadd.xlane.f32.xlu1 %v3842_v54  ;;  %v4987_v54 = vsel %vm3456_vm2, 1.0, %v7929_v12  ;;  %v4995_v53 = vsel %vm3464_vm1, 1.0, %v7929_v12  ;;  %v4998_v2 = vsel %vm3467_vm8, 1.0, %v7929_v12  ;;  %vm3462_vm2 = vcmp.eq.s32.totalorder %v5547_v17, %v6997_v5 }
 0x826   : >> { %v3953_v27 = vpop.xlane.xlu2 %3952  ;;  %vm3470_vm1 = vcmp.eq.s32.totalorder %v5547_v17, %v7021_v16  ;;  %vm8183_vm8 = vcmask 786112  }
 0x827   : >> { %v4369_v13 = vperm.slane %v3953_v27, %v5547_v17  ;;  %v5001_v5 = vsel %vm3470_vm1, 1.0, %v7929_v12  ;;  %vm8185_vm1 = vcmask 851712  }
 0x828   : >> { %v3969_v55 = vpop.xlane.xlu1 %3968 }
 0x829   : >> { %v4371_v62 = vsel %vm7901_vm6, %v4370_v35, %v4369_v13  ;;  %v3840_v35 = vmul.f32 %v4987_v54, %v8180_v19  ;;  %v4378_v13 = vperm.slane %v3963_v21, %v7305_v24  ;;  %v4384_v43 = vperm.slane %v3969_v55, %v7331_v49 }
 0x82a   : >> { %v4373_v10 = vsel %vm4284_vm7, %v4372_v57, %v4371_v62  ;;  %v4990_v62 = vsel %vm3459_vm12, 1.0, %v7929_v12  ;;  %v3851_v54 = vmul.f32 %v4998_v2, %v7000_v48  ;;  %v4993_v55 = vsel %vm3462_vm2, 1.0, %v7929_v12 }
 0x82b   : >> { %4042 = vadd.xlane.f32.xlu2 %v3837_v8  ;;  %v3985_v23 = vpop.xlane.xlu0 %3984  ;;  %v3848_v8 = vmul.f32 %v4995_v53, %v6974_v14  ;;  %v4388_v19 = vperm.slane %v7478_v44, %v7337_v3  ;;  %vm3465_vm12 = vcmp.eq.s32.totalorder %v5547_v17, %v7007_v22  ;;  %vm3473_vm2 = vcmp.eq.s32.totalorder %v5547_v17, %v7025_v30 }
 0x82c   : >> { %v4394_v22 = vperm.slane %v7502_v50, %v7365_v1 }
 0x82d   : >> { %4058 = vadd.xlane.f32.xlu1 %v3845_v46  ;;  %v8181_v46 = vld [vmem:[#allocation118_spill] sm:$0xff] }
 0x82e   : >> { %v3959_v20 = vpop.xlane.xlu2 %3958  ;;  %v3843_v14 = vmul.f32 %v4990_v62, %v8181_v46  ;;  %v5004_v46 = vsel %vm3473_vm2, 1.0, %v7929_v12  ;;  %vm4557_vm2 = vcmask 1042434  }
 0x82f   : >> { %v4374_v18 = vperm.slane %v3959_v20, %v7282_v56 }
 0x830   : >> { %v3975_v27 = vpop.xlane.xlu1 %3974 }
 0x831   : >> { %v4375_v57 = vsel %vm4288_vm9, %v4374_v18, %v4373_v10  ;;  %v4382_v10 = vperm.slane %v7461_v45, %v7310_v25 }
 0x832   : >> { %v4377_v59 = vsel %vm4292_vm11, %v4376_v28, %v4375_v57 }
 0x833   : >> { %4048 = vadd.xlane.f32.xlu2 %v3840_v35  ;;  %v4379_v29 = vsel %vm4296_vm13, %v4378_v13, %v4377_v59  ;;  %v7533_v18 = vpop.xlane.xlu0 %3990  ;;  %v4400_v35 = vperm.slane %v3985_v23, %v5547_v17  ;;  %v8182_v13 = vld [vmem:[#allocation123_spill] sm:$0xff]  ;;  %v4390_v59 = vperm.slane %v3975_v27, %v7359_v63  ;;  %v4996_v27 = vsel %vm3465_vm12, 1.0, %v7929_v12 }
 0x834   : >> { %v3846_v57 = vmul.f32 %v4993_v55, %v8182_v13  ;;  %v8187_v55 = vld [vmem:[#allocation26_spill] sm:$0xff] }
 0x835   : >> { %4064 = vadd.xlane.f32.xlu1 %v3848_v8  ;;  %v8189_v13 = vld [vmem:[#allocation42_spill] sm:$0xff] }
 0x836   : >> { %v3965_v21 = vpop.xlane.xlu2 %3964 }
 0x837   : >> { %v4380_v0 = vperm.slane %v3965_v21, %v7300_v32 }
 0x838   : >> { %v3981_v58 = vpop.xlane.xlu1 %3980 }
 0x839   : >> { %v4381_v20 = vsel %vm4300_vm14, %v4380_v0, %v4379_v29  ;;  %v2515_v29 = vpop.f32.mrf.mxu2 }
 0x83a   : >> { %v4383_v7 = vsel %vm4304_vm15, %v4382_v10, %v4381_v20  ;;  %v3854_v44 = vmul.f32 %v5001_v5, %v2515_v29  ;;  %v8188_v5 = vld [vmem:[#allocation49_spill] sm:$0xff]  ;;  %v8191_v29 = vld [vmem:[#allocation16_spill] sm:$0xff] }
 0x83b   : >> { %4054 = vadd.xlane.f32.xlu2 %v3843_v14  ;;  %v4385_v45 = vsel %vm4308_vm3, %v4384_v43, %v4383_v7  ;;  %v7557_v0 = vpop.xlane.xlu0 %3996  ;;  %v8184_v43 = vld [vmem:[#allocation125_spill] sm:$0xff]  ;;  %v4396_v7 = vperm.slane %v3981_v58, %v7385_v47 }
 0x83c   : >> { %v3849_v20 = vmul.f32 %v4996_v27, %v8184_v43 }
 0x83d   : >> { %4070 = vadd.xlane.f32.xlu1 %v3851_v54 }
 0x83e   : >> { %v3971_v28 = vpop.xlane.xlu2 %3970 }
 0x83f   : >> { %v4386_v53 = vperm.slane %v3971_v28, %v7328_v4  ;;  %v3857_v28 = vmul.f32 %v5004_v46, %v8187_v55 }
 0x840   : >> { %v3987_v48 = vpop.xlane.xlu1 %3986 }
 0x841   : >> { %v4387_v16 = vsel %vm4312_vm4, %v4386_v53, %v4385_v45  ;;  %v4401_v8 = vperm.slane %v3987_v48, %v7266_v39  ;;  %v8186_v45 = vld [vmem:[#allocation126_spill] sm:$0xff] }
 0x842   : >> { %v4389_v62 = vsel %vm4316_vm5, %v4388_v19, %v4387_v16  ;;  %vm3468_vm12 = vcmp.eq.s32.totalorder %v5547_v17, %v8186_v45 }
 0x843   : >> { %v4402_v23 = vsel %vm7901_vm6, %v4401_v8, %v4400_v35  ;;  %4060 = vadd.xlane.f32.xlu2 %v3846_v57  ;;  %v4391_v21 = vsel %vm8183_vm8, %v4390_v59, %v4389_v62  ;;  %v7574_v50 = vpop.xlane.xlu0 %4002  ;;  %v4999_v19 = vsel %vm3468_vm12, 1.0, %v7929_v12  ;;  %vm3476_vm8 = vcmp.eq.s32.totalorder %v5547_v17, %v8188_v5 }
 0x844   : >> { %v3852_v57 = vmul.f32 %v4999_v19, %v8189_v13  ;;  %v5007_v16 = vsel %vm3476_vm8, 1.0, %v7929_v12  ;;  %vm3479_vm6 = vcmp.eq.s32.totalorder %v5547_v17, %v7064_v38  ;;  %vm3474_vm8 = vcmp.eq.s32.totalorder %v5547_v17, %v7056_v37 }
 0x845   : >> { %4076 = vadd.xlane.f32.xlu1 %v3854_v44  ;;  %v3860_v62 = vmul.f32 %v5007_v16, %v8191_v29  ;;  %v8192_v44 = vld [vmem:[#allocation44_spill] sm:$0xff]  ;;  %v5010_v46 = vsel %vm3479_vm6, 1.0, %v7929_v12  ;;  %vm3477_vm6 = vcmp.eq.s32.totalorder %v5547_v17, %v7060_v33 }
 0x846   : >> { %v3977_v10 = vpop.xlane.xlu2 %3976  ;;  %vm3471_vm12 = vcmp.eq.s32.totalorder %v5547_v17, %v8192_v44  ;;  %v5008_v29 = vsel %vm3477_vm6, 1.0, %v7929_v12  ;;  %v4417_v44 = vperm.slane %v7574_v50, %v7328_v4  ;;  %vm8200_vm6 = vcmask 851712  }
 0x847   : >> { %v4392_v2 = vperm.slane %v3977_v10, %v7354_v36 }
 0x848   : >> { %v3993_v14 = vpop.xlane.xlu1 %3992 }
 0x849   : >> { %v4393_v54 = vsel %vm8185_vm1, %v4392_v2, %v4391_v21  ;;  %vm8190_vm1 = vcmask 1048512   ;;  %v2517_v21 = vpop.f32.mrf.mxu2 }
 0x84a   : >> { %v4395_v30 = vsel %vm4328_vm0, %v4394_v22, %v4393_v54  ;;  %v5002_v22 = vsel %vm3471_vm12, 1.0, %v7929_v12  ;;  %vm3480_vm12 = vcmp.eq.s32.totalorder %v5547_v17, %v7067_v40 }
 0x84b   : >> { %4066 = vadd.xlane.f32.xlu2 %v3849_v20  ;;  %v4397_v53 = vsel %vm4332_vm10, %v4396_v7, %v4395_v30  ;;  %v7591_v27 = vpop.xlane.xlu0 %4008  ;;  %v3855_v20 = vmul.f32 %v5002_v22, %v2517_v21  ;;  %v4407_v7 = vperm.slane %v3993_v14, %v7286_v31  ;;  %v8193_v30 = vld [vmem:[#allocation29_spill] sm:$0xff]  ;;  %v5011_v50 = vsel %vm3480_vm12, 1.0, %v7929_v12 }
 0x84c   : >> { %v3863_v45 = vmul.f32 %v5010_v46, %v8193_v30  ;;  %v8197_v46 = vld [vmem:[#allocation43_spill] sm:$0xff]  ;;  %vm4559_vm12 = vcmask 1043459  }
 0x84d   : >> { %4082 = vadd.xlane.f32.xlu1 %v3857_v28  ;;  %v5005_v28 = vsel %vm3474_vm8, 1.0, %v7929_v12  ;;  %vm3493_vm8 = vcmp.eq.s32.totalorder %v5547_v17, %v7096_v61 }
 0x84e   : >> { %v3983_v35 = vpop.xlane.xlu2 %3982  ;;  %v5024_v40 = vsel %vm3493_vm8, 1.0, %v7929_v12  ;;  %vm8203_vm8 = vcmask 1048512  }
 0x84f   : >> { %v4398_v58 = vperm.slane %v3983_v35, %v7380_v26  ;;  %v8194_v35 = vld [vmem:[#allocation23_spill] sm:$0xff] }
 0x850   : >> { %v3999_v48 = vpop.xlane.xlu1 %3998  ;;  %v3858_v5 = vmul.f32 %v5005_v28, %v8194_v35 }
 0x851   : >> { %v4399_v59 = vsel %vm8190_vm1, %v4398_v58, %v4397_v53  ;;  %v4411_v53 = vperm.slane %v7557_v0, %v7300_v32  ;;  %v4413_v58 = vperm.slane %v3999_v48, %v7310_v25  ;;  %vm3490_vm1 = vcmp.eq.s32.totalorder %v5547_v17, %v7088_v9 }
 0x852   : >> { %v7584_v8 = vsel %vm4557_vm2, %v4399_v59, %v7490_v15  ;;  %v4405_v15 = vperm.slane %v7533_v18, %v7282_v56  ;;  %vm3482_vm2 = vcmp.eq.s32.totalorder %v5547_v17, %v7069_v41  ;;  %v5021_v33 = vsel %vm3490_vm1, 1.0, %v7929_v12 }
 0x853   : >> { %4072 = vadd.xlane.f32.xlu2 %v3852_v57  ;;  %v4015_v18 = vpop.xlane.xlu0 %4014  ;;  %v5013_v37 = vsel %vm3482_vm2, 1.0, %v7929_v12  ;;  %v8195_v57 = vld [vmem:[#allocation15_spill] sm:$0xff]  ;;  %vm8199_vm2 = vcmask 786112   ;;  %vm3488_vm1 = vcmp.eq.s32.totalorder %v5547_v17, %v7079_v52 }
 0x854   : >> { %v3866_v59 = vmul.f32 %v5013_v37, %v8195_v57  ;;  %v5019_v35 = vsel %vm3488_vm1, 1.0, %v7929_v12  ;;  %v8202_v57 = vld [vmem:[#allocation65_spill] sm:$0xff]  ;;  %vm8207_vm1 = vcmask 130112  }
 0x855   : >> { %4088 = vadd.xlane.f32.xlu1 %v3860_v62 }
 0x856   : >> { %v3989_v10 = vpop.xlane.xlu2 %3988 }
 0x857   : >> { %v4403_v2 = vperm.slane %v3989_v10, %v7261_v6  ;;  %v8196_v10 = vld [vmem:[#allocation14_spill] sm:$0xff] }
 0x858   : >> { %v4005_v43 = vpop.xlane.xlu1 %4004 }
 0x859   : >> { %v4404_v54 = vsel %vm4284_vm7, %v4403_v2, %v4402_v23  ;;  %v3861_v2 = vmul.f32 %v5008_v29, %v8196_v10  ;;  %v4419_v22 = vperm.slane %v4005_v43, %v7337_v3 }
 0x85a   : >> { %v4406_v38 = vsel %vm4288_vm9, %v4405_v15, %v4404_v54 }
 0x85b   : >> { %4078 = vadd.xlane.f32.xlu2 %v3855_v20  ;;  %v4408_v55 = vsel %vm4292_vm11, %v4407_v7, %v4406_v38  ;;  %v4021_v0 = vpop.xlane.xlu0 %4020  ;;  %v3874_v20 = vmul.f32 %v5021_v33, %v8197_v46  ;;  %v4423_v38 = vperm.slane %v7591_v27, %v7354_v36 }
 0x85d   : >> { %4094 = vadd.xlane.f32.xlu1 %v3863_v45 }
 0x85e   : >> { %v3995_v14 = vpop.xlane.xlu2 %3994 }
 0x85f   : >> { %v4409_v23 = vperm.slane %v3995_v14, %v7305_v24 }
 0x860   : >> { %v4011_v19 = vpop.xlane.xlu1 %4010 }
 0x861   : >> { %v4410_v13 = vsel %vm4296_vm13, %v4409_v23, %v4408_v55  ;;  %v8198_v55 = vld [vmem:[#allocation24_spill] sm:$0xff]  ;;  %v4425_v14 = vperm.slane %v4011_v19, %v7365_v1  ;;  %v4429_v19 = vperm.slane %v4015_v18, %v7380_v26 }
 0x862   : >> { %v4412_v41 = vsel %vm4300_vm14, %v4411_v53, %v4410_v13  ;;  %v3864_v28 = vmul.f32 %v5011_v50, %v8198_v55  ;;  %v8201_v53 = vld [vmem:[#allocation69_spill] sm:$0xff]  ;;  %v8205_v18 = vld [vmem:[#allocation76_spill] sm:$0xff] }
 0x863   : >> { %4084 = vadd.xlane.f32.xlu2 %v3858_v5  ;;  %v4414_v16 = vsel %vm4304_vm15, %v4413_v58, %v4412_v41  ;;  %v4027_v30 = vpop.xlane.xlu0 %4026  ;;  %v3877_v37 = vmul.f32 %v5024_v40, %v8201_v53 }
 0x865   : >> { %4100 = vadd.xlane.f32.xlu1 %v3866_v59  ;;  %v3872_v59 = vmul.f32 %v5019_v35, %v8202_v57 }
 0x866   : >> { %v4001_v48 = vpop.xlane.xlu2 %4000 }
 0x867   : >> { %v4415_v62 = vperm.slane %v4001_v48, %v7331_v49  ;;  %v8204_v48 = vld [vmem:[#allocation56_spill] sm:$0xff] }
 0x868   : >> { %v4017_v21 = vpop.xlane.xlu1 %4016 }
 0x869   : >> { %v4416_v15 = vsel %vm4308_vm3, %v4415_v62, %v4414_v16 }
 0x86a   : >> { %v4418_v9 = vsel %vm4312_vm4, %v4417_v44, %v4416_v15  ;;  %v4431_v44 = vperm.slane %v4017_v21, %v5547_v17  ;;  %v8206_v15 = vld [vmem:[#allocation67_spill] sm:$0xff] }
 0x86b   : >> { %4090 = vadd.xlane.f32.xlu2 %v3861_v2  ;;  %v4420_v7 = vsel %vm4316_vm5, %v4419_v22, %v4418_v9  ;;  %v4033_v13 = vpop.xlane.xlu0 %4032  ;;  %v4434_v2 = vperm.slane %v4021_v0, %v7261_v6 }
 0x86d   : >> { %4116 = vadd.xlane.f32.xlu1 %v3874_v20 }
 0x86e   : >> { %v4007_v54 = vpop.xlane.xlu2 %4006 }
 0x86f   : >> { %v4421_v43 = vperm.slane %v4007_v54, %v7359_v63 }
 0x870   : >> { %v4023_v45 = vpop.xlane.xlu1 %4022 }
 0x871   : >> { %v4422_v23 = vsel %vm8199_vm2, %v4421_v43, %v4420_v7  ;;  %vm3491_vm2 = vcmp.eq.s32.totalorder %v5547_v17, %v8204_v48  ;;  %v4436_v46 = vperm.slane %v4023_v45, %v7282_v56  ;;  %v8212_v48 = vld [vmem:[#allocation39_spill] sm:$0xff] }
 0x872   : >> { %v4424_v61 = vsel %vm8200_vm6, %v4423_v38, %v4422_v23  ;;  %vm3498_vm6 = vcmp.eq.s32.totalorder %v5547_v17, %v7229_v34  ;;  %v5022_v10 = vsel %vm3491_vm2, 1.0, %v7929_v12  ;;  %v4440_v38 = vperm.slane %v4027_v30, %v7305_v24  ;;  %v8209_v23 = vld [vmem:[#allocation34_spill] sm:$0xff] }
 0x873   : >> { %4096 = vadd.xlane.f32.xlu2 %v3864_v28  ;;  %v4426_v27 = vsel %vm4328_vm0, %v4425_v14, %v4424_v61  ;;  %v3875_v9 = vmul.f32 %v5022_v10, %v8206_v15  ;;  %v4039_v20 = vpop.xlane.xlu0 %4038  ;;  %vm3497_vm2 = vcmp.eq.s32.totalorder %v5547_v17, %v7155_v11 }
 0x874   : >> { %v5028_v53 = vsel %vm3497_vm2, 1.0, %v7929_v12 }
 0x875   : >> { %4122 = vadd.xlane.f32.xlu1 %v3877_v37 }
 0x876   : >> { %v4013_v5 = vpop.xlane.xlu2 %4012 }
 0x877   : >> { %v4427_v58 = vperm.slane %v4013_v5, %v7385_v47  ;;  %v4446_v5 = vperm.slane %v4033_v13, %v7331_v49 }
 0x878   : >> { %v4029_v41 = vpop.xlane.xlu1 %4028 }
 0x879   : >> { %v4428_v52 = vsel %vm4332_vm10, %v4427_v58, %v4426_v27  ;;  %v8210_v27 = vld [vmem:[#allocation75_spill] sm:$0xff] }
 0x87a   : >> { %v4430_v16 = vsel %vm8203_vm8, %v4429_v19, %v4428_v52  ;;  %vm3485_vm8 = vcmp.eq.s32.totalorder %v5547_v17, %v7075_v42  ;;  %v8211_v19 = vld [vmem:[#allocation37_spill] sm:$0xff] }
 0x87b   : >> { %v7657_v29 = vsel %vm4559_vm12, %v4430_v16, %v7584_v8  ;;  %4112 = vadd.xlane.f32.xlu2 %v3872_v59  ;;  %v5029_v8 = vsel %vm3498_vm6, 1.0, %v7929_v12  ;;  %vm3494_vm12 = vcmp.eq.s32.totalorder %v5547_v17, %v7145_v51  ;;  %v5016_v40 = vsel %vm3485_vm8, 1.0, %v7929_v12  ;;  %v8208_v51 = vld [vmem:[#allocation71_spill] sm:$0xff]  ;;  %v4045_v14 = vpop.xlane.xlu0 %4044 }
 0x87c   : >> { %v3882_v21 = vmul.f32 %v5029_v8, %v7136_v60  ;;  %v5025_v50 = vsel %vm3494_vm12, 1.0, %v7929_v12  ;;  %v4442_v60 = vperm.slane %v4029_v41, %v7300_v32  ;;  %v3869_v61 = vmul.f32 %v5016_v40, %v8209_v23 }
 0x87d   : >> { %4128 = vadd.xlane.f32.xlu1 %v8205_v18  ;;  %v3878_v55 = vmul.f32 %v5025_v50, %v8208_v51  ;;  %vm3501_vm6 = vcmp.eq.s32.totalorder %v5547_v17, %v8210_v27  ;;  %v3881_v41 = vmul.f32 %v5028_v53, %v8211_v19  ;;  %v4452_v8 = vperm.slane %v4039_v20, %v7359_v63  ;;  %v8217_v50 = vld [vmem:[#allocation27_spill] sm:$0xff] }
 0x87e   : >> { %v4019_v62 = vpop.xlane.xlu2 %4018  ;;  %v5032_v59 = vsel %vm3501_vm6, 1.0, %v7929_v12  ;;  %vm8216_vm8 = vcmask 786112   ;;  %vm3500_vm2 = vcmp.eq.s32.totalorder %v5547_v17, %v8217_v50  ;;  %vm8218_vm6 = vcmask 851712  }
 0x87f   : >> { %v4432_v33 = vperm.slane %v4019_v62, %v7266_v39  ;;  %v3885_v18 = vmul.f32 %v5032_v59, %v8212_v48  ;;  %v8213_v62 = vld [vmem:[#allocation127_spill] sm:$0xff] }
 0x880   : >> { %v4035_v22 = vpop.xlane.xlu1 %4034 }
 0x881   : >> { %v4433_v34 = vsel %vm8207_vm1, %v4432_v33, %v4431_v44  ;;  %v4448_v57 = vperm.slane %v4035_v22, %v7328_v4  ;;  %vm3484_vm1 = vcmp.eq.s32.totalorder %v5547_v17, %v8213_v62  ;;  %v8214_v44 = vld [vmem:[#allocation70_spill] sm:$0xff] }
 0x882   : >> { %v4435_v7 = vsel %vm4284_vm7, %v4434_v2, %v4433_v34  ;;  %vm3503_vm12 = vcmp.eq.s32.totalorder %v5547_v17, %v8214_v44  ;;  %v5015_v33 = vsel %vm3484_vm1, 1.0, %v7929_v12  ;;  %vm4561_vm1 = vcmask 1044484  }
 0x883   : >> { %4118 = vadd.xlane.f32.xlu2 %v3875_v9  ;;  %v4437_v0 = vsel %vm4288_vm9, %v4436_v46, %v4435_v7  ;;  %v4051_v52 = vpop.xlane.xlu0 %4050  ;;  %v5034_v22 = vsel %vm3503_vm12, 1.0, %v7929_v12  ;;  %v8215_v9 = vld [vmem:[#allocation28_spill] sm:$0xff] }
 0x884   : >> { %v3868_v46 = vmul.f32 %v5015_v33, %v8215_v9 }
 0x885   : >> { %4132 = vadd.xlane.f32.xlu1 %v3882_v21  ;;  %v2597_v21 = vpop.f32.mrf.mxu3 }
 0x886   : >> { %v4025_v54 = vpop.xlane.xlu2 %4024 }
 0x887   : >> { %v4438_v43 = vperm.slane %v4025_v54, %v7286_v31  ;;  %v3887_v54 = vmul.f32 %v5034_v22, %v2597_v21 }
 0x888   : >> { %v4041_v45 = vpop.xlane.xlu1 %4040 }
 0x889   : >> { %v4439_v28 = vsel %vm4292_vm11, %v4438_v43, %v4437_v0  ;;  %v4454_v34 = vperm.slane %v4041_v45, %v7354_v36  ;;  %v4458_v45 = vperm.slane %v4045_v14, %v7385_v47 }
 0x88a   : >> { %v4441_v42 = vsel %vm4296_vm13, %v4440_v38, %v4439_v28  ;;  %v5031_v38 = vsel %vm3500_vm2, 1.0, %v7929_v12  ;;  %vm8223_vm2 = vcmask 130112  }
 0x88b   : >> { %4124 = vadd.xlane.f32.xlu2 %v3878_v55  ;;  %v4443_v30 = vsel %vm4300_vm14, %v4442_v60, %v4441_v42  ;;  %v4057_v20 = vpop.xlane.xlu0 %4056  ;;  %v8219_v60 = vld [vmem:[#allocation41_spill] sm:$0xff] }
 0x88c   : >> { %v3884_v28 = vmul.f32 %v5031_v38, %v8219_v60 }
 0x88d   : >> { %4106 = vadd.xlane.f32.xlu1 %v3869_v61 }
 0x88e   : >> { %v4031_v37 = vpop.xlane.xlu2 %4030 }
 0x88f   : >> { %v4444_v35 = vperm.slane %v4031_v37, %v7310_v25 }
 0x890   : >> { %v4047_v58 = vpop.xlane.xlu1 %4046 }
 0x891   : >> { %v4445_v11 = vsel %vm4304_vm15, %v4444_v35, %v4443_v30  ;;  %v4460_v42 = vperm.slane %v4047_v58, %v7380_v26  ;;  %v8220_v30 = vld [vmem:[#allocation128_spill] sm:$0xff] }
 0x892   : >> { %v4447_v16 = vsel %vm4308_vm3, %v4446_v5, %v4445_v11  ;;  %vm3487_vm12 = vcmp.eq.s32.totalorder %v5547_v17, %v8220_v30  ;;  %v4463_v5 = vperm.slane %v4051_v52, %v7266_v39 }
 0x893   : >> { %4130 = vadd.xlane.f32.xlu2 %v3881_v41  ;;  %v4449_v13 = vsel %vm4312_vm4, %v4448_v57, %v4447_v16  ;;  %v4063_v37 = vpop.xlane.xlu0 %4062  ;;  %v5018_v14 = vsel %vm3487_vm12, 1.0, %v7929_v12  ;;  %v8222_v57 = vld [vmem:[#allocation63_spill] sm:$0xff]  ;;  %vm8226_vm12 = vcmask 851712  }
 0x894   : >> { %v3871_v11 = vmul.f32 %v5018_v14, %v8222_v57  ;;  %v4475_v22 = vperm.slane %v4063_v37, %v7310_v25 }
 0x895   : >> { %4138 = vadd.xlane.f32.xlu1 %v3885_v18 }
 0x896   : >> { %v4037_v10 = vpop.xlane.xlu2 %4036 }
 0x897   : >> { %v4450_v2 = vperm.slane %v4037_v10, %v7337_v3 }
 0x898   : >> { %v4053_v15 = vpop.xlane.xlu1 %4052 }
 0x899   : >> { %v4451_v7 = vsel %vm4316_vm5, %v4450_v2, %v4449_v13  ;;  %v4465_v19 = vperm.slane %v4053_v15, %v7261_v6 }
 0x89a   : >> { %v4453_v0 = vsel %vm8216_vm8, %v4452_v8, %v4451_v7  ;;  %vm8221_vm8 = vcmask 1048512  }
 0x89b   : >> { %4104 = vadd.xlane.f32.xlu2 %v3868_v46  ;;  %v4455_v43 = vsel %vm8218_vm6, %v4454_v34, %v4453_v0  ;;  %v4069_v48 = vpop.xlane.xlu0 %4068  ;;  %vm8224_vm6 = vmmov %vm8223_vm2 }
 0x89d   : >> { %4142 = vadd.xlane.f32.xlu1 %v3887_v54  ;;  %v4481_v54 = vperm.slane %v4069_v48, %v7337_v3 }
 0x89e   : >> { %v4043_v40 = vpop.xlane.xlu2 %4042 }
 0x89f   : >> { %v4456_v51 = vperm.slane %v4043_v40, %v7365_v1 }
 0x8a0   : >> { %v4059_v55 = vpop.xlane.xlu1 %4058 }
 0x8a1   : >> { %v4457_v23 = vsel %vm4328_vm0, %v4456_v51, %v4455_v43  ;;  %v4471_v62 = vperm.slane %v4059_v55, %v7305_v24 }
 0x8a2   : >> { %v4459_v61 = vsel %vm4332_vm10, %v4458_v45, %v4457_v23 }
 0x8a3   : >> { %v4461_v53 = vsel %vm8221_vm8, %v4460_v42, %v4459_v61  ;;  %4136 = vadd.xlane.f32.xlu2 %v3884_v28  ;;  %v4075_v10 = vpop.xlane.xlu0 %4074  ;;  %vm4563_vm8 = vcmask 1045509  }
 0x8a4   : >> { %v4562_v27 = vsel %vm4561_vm1, %v4461_v53, %v7657_v29  ;;  %v4469_v29 = vperm.slane %v4057_v20, %v7286_v31  ;;  %v388_v20 = vld [vmem:[%s387_s25] sm:$0xff]  ;;  %vm8225_vm1 = vcmask 786112   ;;  %v4487_v61 = vperm.slane %v4075_v10, %v7365_v1 }
 0x8a6   : >> { %v4049_v35 = vpop.xlane.xlu2 %4048 }
 0x8a7   : >> { %v4462_v58 = vperm.slane %v4049_v35, %v5547_v17 }
 0x8a8   : >> { %v4065_v41 = vpop.xlane.xlu1 %4064 }
 0x8a9   : >> { %v4464_v59 = vsel %vm8223_vm2, %v4463_v5, %v4462_v58  ;;  %v4477_v9 = vperm.slane %v4065_v41, %v7331_v49  ;;  %vm8227_vm2 = vcmask 1048512  }
 0x8aa   : >> { %v4466_v16 = vsel %vm4284_vm7, %v4465_v19, %v4464_v59 }
 0x8ab   : >> { %4110 = vadd.xlane.f32.xlu2 %v3871_v11  ;;  %v4081_v21 = vpop.xlane.xlu0 %4080 }
 0x8ac   : >> { %v4493_v38 = vperm.slane %v4081_v21, %v5547_v17 }
 0x8ae   : >> { %v4055_v18 = vpop.xlane.xlu2 %4054 }
 0x8af   : >> { %v4467_v12 = vperm.slane %v4055_v18, %v7282_v56 }
 0x8b0   : >> { %v4071_v52 = vpop.xlane.xlu1 %4070 }
 0x8b1   : >> { %v4468_v13 = vsel %vm4288_vm9, %v4467_v12, %v4466_v16  ;;  %v4483_v40 = vperm.slane %v4071_v52, %v7359_v63 }
 0x8b2   : >> { %v4470_v44 = vsel %vm4292_vm11, %v4469_v29, %v4468_v13 }
 0x8b3   : >> { %v4472_v33 = vsel %vm4296_vm13, %v4471_v62, %v4470_v44  ;;  %v4087_v35 = vpop.xlane.xlu0 %4086 }
 0x8b4   : >> { %v4498_v21 = vperm.slane %v4087_v35, %v7282_v56 }
 0x8b6   : >> { %v4061_v2 = vpop.xlane.xlu2 %4060 }
 0x8b7   : >> { %v4473_v8 = vperm.slane %v4061_v2, %v7300_v32 }
 0x8b8   : >> { %v4077_v15 = vpop.xlane.xlu1 %4076 }
 0x8b9   : >> { %v4474_v46 = vsel %vm4300_vm14, %v4473_v8, %v4472_v33  ;;  %v4489_v53 = vperm.slane %v4077_v15, %v7385_v47 }
 0x8ba   : >> { %v4476_v34 = vsel %vm4304_vm15, %v4475_v22, %v4474_v46 }
 0x8bb   : >> { %v4478_v7 = vsel %vm4308_vm3, %v4477_v9, %v4476_v34  ;;  %v4093_v59 = vpop.xlane.xlu0 %4092 }
 0x8be   : >> { %v4067_v0 = vpop.xlane.xlu2 %4066 }
 0x8bf   : >> { %v4479_v50 = vperm.slane %v4067_v0, %v7328_v4 }
 0x8c0   : >> { %v4083_v43 = vpop.xlane.xlu1 %4082 }
 0x8c1   : >> { %v4480_v51 = vsel %vm4312_vm4, %v4479_v50, %v4478_v7  ;;  %v4494_v45 = vperm.slane %v4083_v43, %v7266_v39 }
 0x8c2   : >> { %v4482_v55 = vsel %vm4316_vm5, %v4481_v54, %v4480_v51 }
 0x8c3   : >> { %v4495_v60 = vsel %vm8224_vm6, %v4494_v45, %v4493_v38  ;;  %v4484_v28 = vsel %vm8225_vm1, %v4483_v40, %v4482_v55  ;;  %4146 = vperm.xlu2 %5337, %v388_v20   ;;  %v4099_v18 = vpop.xlane.xlu0 %4098 }
 0x8c6   : >> { %v4073_v42 = vpop.xlane.xlu2 %4072 }
 0x8c7   : >> { %v4485_v23 = vperm.slane %v4073_v42, %v7354_v36 }
 0x8c8   : >> { %v4089_v30 = vpop.xlane.xlu1 %4088 }
 0x8c9   : >> { %v4486_v37 = vsel %vm8226_vm12, %v4485_v23, %v4484_v28  ;;  %v4500_v38 = vperm.slane %v4089_v30, %v7286_v31 }
 0x8ca   : >> { %v4488_v14 = vsel %vm4328_vm0, %v4487_v61, %v4486_v37 }
 0x8cb   : >> { %v4490_v5 = vsel %vm4332_vm10, %v4489_v53, %v4488_v14  ;;  %v4115_v52 = vpop.xlane.xlu0 %4114 }
 0x8cc   : >> { %v4525_v9 = vperm.slane %v4115_v52, %v7266_v39 }
 0x8ce   : >> { %v4079_v58 = vpop.xlane.xlu2 %4078 }
 0x8cf   : >> { %v4491_v19 = vperm.slane %v4079_v58, %v7380_v26 }
 0x8d0   : >> { %v4095_v41 = vpop.xlane.xlu1 %4094 }
 0x8d1   : >> { %v4492_v57 = vsel %vm8227_vm2, %v4491_v19, %v4490_v5 }
 0x8d2   : >> { %v7769_v11 = vsel %vm4563_vm8, %v4492_v57, %v4562_v27 }
 0x8d3   : >> { %v4121_v13 = vpop.xlane.xlu0 %4120 }
 0x8d4   : >> { %v4531_v45 = vperm.slane %v4121_v13, %v7286_v31  ;;  %v4506_v31 = vperm.slane %v4095_v41, %v7310_v25 }
 0x8d6   : >> { %v4085_v16 = vpop.xlane.xlu2 %4084 }
 0x8d7   : >> { %v4496_v22 = vperm.slane %v4085_v16, %v7261_v6 }
 0x8d8   : >> { %v4101_v48 = vpop.xlane.xlu1 %4100 }
 0x8d9   : >> { %v4497_v34 = vsel %vm4284_vm7, %v4496_v22, %v4495_v60 }
 0x8da   : >> { %v4499_v43 = vsel %vm4288_vm9, %v4498_v21, %v4497_v34 }
 0x8db   : >> { %v4127_v2 = vpop.xlane.xlu0 %4126  ;;  %v4501_v55 = vsel %vm4292_vm11, %v4500_v38, %v4499_v43 }
 0x8dc   : >> { %v4537_v5 = vperm.slane %v4127_v2, %v7310_v25 }
 0x8de   : >> { %v4091_v12 = vpop.xlane.xlu2 %4090 }
 0x8df   : >> { %v4502_v20 = vperm.slane %v4091_v12, %v7305_v24  ;;  %v4512_v12 = vperm.slane %v4101_v48, %v7337_v3 }
 0x8e0   : >> { %v4117_v29 = vpop.xlane.xlu1 %4116 }
 0x8e1   : >> { %v4527_v54 = vperm.slane %v4117_v29, %v7261_v6  ;;  %v4504_v6 = vperm.slane %v4093_v59, %v7300_v32 }
 0x8e3   : >> { %v4103_v46 = vpop.xlane.xlu0 %4102 }
 0x8e6   : >> { %v4097_v62 = vpop.xlane.xlu2 %4096 }
 0x8e7   : >> { %v4508_v30 = vperm.slane %v4097_v62, %v7331_v49 }
 0x8e8   : >> { %v4123_v44 = vpop.xlane.xlu1 %4122 }
 0x8e9   : >> { %v4533_v23 = vperm.slane %v4123_v44, %v7305_v24  ;;  %v4510_v24 = vperm.slane %v4099_v18, %v7328_v4 }
 0x8eb   : >> { %v4135_v60 = vpop.xlane.xlu0 %4134 }
 0x8ec   : >> { %v4545_v48 = vperm.slane %v4135_v60, %v7359_v63 }
 0x8ee   : >> { %v4113_v33 = vpop.xlane.xlu2 %4112 }
 0x8ef   : >> { %v4524_v27 = vperm.slane %v4113_v33, %v5547_v17 }
 0x8f0   : >> { %v4129_v8 = vpop.xlane.xlu1 %4128 }
 0x8f1   : >> { %v4526_v0 = vsel %vm8224_vm6, %v4525_v9, %v4524_v27  ;;  %v4539_v59 = vperm.slane %v4129_v8, %v7331_v49 }
 0x8f2   : >> { %v4528_v39 = vsel %vm4284_vm7, %v4527_v54, %v4526_v0  ;;  %vm8228_vm7 = vmmov %vm8225_vm1 }
 0x8f3   : >> { %v4109_v41 = vpop.xlane.xlu0 %4108 }
 0x8f6   : >> { %v4119_v10 = vpop.xlane.xlu2 %4118 }
 0x8f7   : >> { %v4529_v50 = vperm.slane %v4119_v10, %v7282_v56  ;;  %v4503_v56 = vsel %vm4296_vm13, %v4502_v20, %v4501_v55 }
 0x8f8   : >> { %v4133_v7 = vpop.xlane.xlu1 %4132  ;;  %v4505_v61 = vsel %vm4300_vm14, %v4504_v6, %v4503_v56 }
 0x8f9   : >> { %v4530_v51 = vsel %vm4288_vm9, %v4529_v50, %v4528_v39  ;;  %v4507_v58 = vsel %vm4304_vm15, %v4506_v31, %v4505_v61  ;;  %v4543_v52 = vperm.slane %v4133_v7, %v7337_v3  ;;  %vm8229_vm9 = vmmov %vm8226_vm12 }
 0x8fa   : >> { %v4532_v28 = vsel %vm4292_vm11, %v4531_v45, %v4530_v51  ;;  %vm8230_vm11 = vmmov %vm8225_vm1 }
 0x8fb   : >> { %v4534_v37 = vsel %vm4296_vm13, %v4533_v23, %v4532_v28  ;;  %vm8231_vm13 = vmmov %vm8229_vm9  ;;  %v8234_v23 = vld [vmem:[#allocation11_spill] sm:$0xff] }
 0x8fe   : >> { %v4125_v15 = vpop.xlane.xlu2 %4124 }
 0x8ff   : >> { %v4535_v42 = vperm.slane %v4125_v15, %v7300_v32  ;;  %v4509_v32 = vsel %vm4308_vm3, %v4508_v30, %v4507_v58  ;;  %v4141_v15 = vpop.xlane.xlu0 %4140 }
 0x900   : >> { %v4107_v53 = vpop.xlane.xlu1 %4106  ;;  %v4511_v16 = vsel %vm4312_vm4, %v4510_v24, %v4509_v32  ;;  %v4551_v7 = vperm.slane %v4141_v15, %v7385_v47 }
 0x901   : >> { %v4536_v14 = vsel %vm4300_vm14, %v4535_v42, %v4534_v37  ;;  %v4513_v18 = vsel %vm4316_vm5, %v4512_v12, %v4511_v16  ;;  %v4518_v3 = vperm.slane %v4107_v53, %v7365_v1  ;;  %vm4565_vm14 = vcmask 1046534  }
 0x902   : >> { %v4538_v19 = vsel %vm4304_vm15, %v4537_v5, %v4536_v14  ;;  %vm8232_vm15 = vmmov %vm8227_vm2 }
 0x903   : >> { %v4540_v29 = vsel %vm4308_vm3, %v4539_v59, %v4538_v19  ;;  %vm4567_vm3 = vcmask 1047559  }
 0x906   : >> { %v4131_v40 = vpop.xlane.xlu2 %4130 }
 0x907   : >> { %v4541_v57 = vperm.slane %v4131_v40, %v7328_v4  ;;  %v4514_v4 = vperm.slane %v4103_v46, %v7359_v63  ;;  %v4520_v46 = vperm.slane %v4109_v41, %v7385_v47 }
 0x908   : >> { %v4139_v62 = vpop.xlane.xlu1 %4138 }
 0x909   : >> { %v4542_v25 = vsel %vm4312_vm4, %v4541_v57, %v4540_v29  ;;  %v4515_v10 = vsel %vm8228_vm7, %v4514_v4, %v4513_v18  ;;  %v4549_v27 = vperm.slane %v4139_v62, %v7365_v1  ;;  %vm8233_vm4 = vmmov %vm8227_vm2 }
 0x90a   : >> { %v4544_v49 = vsel %vm4316_vm5, %v4543_v52, %v4542_v25 }
 0x90b   : >> { %v4546_v8 = vsel %vm8230_vm11, %v4545_v48, %v4544_v49 }
 0x90e   : >> { %v4105_v35 = vpop.xlane.xlu2 %4104 }
 0x90f   : >> { %v4516_v13 = vperm.slane %v4105_v35, %v7354_v36 }
 0x910   : >> { %v4143_v21 = vpop.xlane.xlu1 %4142 }
 0x911   : >> { %v4517_v2 = vsel %vm8229_vm9, %v4516_v13, %v4515_v10  ;;  %v4553_v43 = vperm.slane %v4143_v21, %v7380_v26 }
 0x912   : >> { %v4519_v9 = vsel %vm4328_vm0, %v4518_v3, %v4517_v2 }
 0x913   : >> { %v4521_v0 = vsel %vm4332_vm10, %v4520_v46, %v4519_v9 }
 0x916   : >> { %v4137_v44 = vpop.xlane.xlu2 %4136 }
 0x917   : >> { %v4547_v33 = vperm.slane %v4137_v44, %v7354_v36 }
 0x919   : >> { %v4548_v22 = vsel %vm8231_vm13, %v4547_v33, %v4546_v8 }
 0x91a   : >> { %v4550_v63 = vsel %vm4328_vm0, %v4549_v27, %v4548_v22 }
 0x91b   : >> { %v4552_v54 = vsel %vm4332_vm10, %v4551_v7, %v4550_v63 }
 0x91c   : >> { %v4554_v20 = vsel %vm8233_vm4, %v4553_v43, %v4552_v54 }
 0x91e   : >> { %v4111_v36 = vpop.xlane.xlu2 %4110 }
 0x91f   : >> { %v4522_v34 = vperm.slane %v4111_v36, %v7380_v26 }
 0x921   : >> { %v4523_v50 = vsel %vm8232_vm15, %v4522_v34, %v4521_v0 }
 0x922   : >> { %v4566_v1 = vsel %vm4565_vm14, %v4523_v50, %v7769_v11 }
 0x923   : >> { %v4568_v39 = vsel %vm4567_vm3, %v4554_v20, %v4566_v1 }
 0x926   : >> { %v4147_v38 = vpop.permute.xlu2 %4146 }
 0x927   : >> { %v4570_v40 = vsub.f32 %v4147_v38, %v4568_v39 }
 0x929   : >> { %v4571_v51 = vrot.slane %v4570_v40, 4 }
 0x92b   : >> { %v4572_v45 = vmax.f32 %v4570_v40, %v4571_v51 }
 0x92d   : >> { %v4573_v47 = vrot.slane %v4572_v45, 2 }
 0x92f   : >> { %v4574_v55 = vmax.f32 %v4572_v45, %v4573_v47 }
 0x931   : >> { %v4575_v60 = vrot.slane %v4574_v55, 1 }
 0x933   : >> { %v4576_v56 = vmax.f32 %v4574_v55, %v4575_v60 }
 0x935   : >> { %v4577_v6 = vadd.f32 -0.01, %v4576_v56 }
 0x937   : >> { %v4578_v28 = vmax.f32 %v4577_v6, 0.0 }
 0x939   : >> { %v4579_v42 = vmin.f32 %v4578_v28, 0.5  ;;  %371 = sbr.rel (!%p369_p13) target bundleno = 51 (0x33), region = 178 }
 0x93b   : >> { %v4580_v61 = vadd.f32 %v8234_v23, %v4579_v42  }
 0x93d   : >> { %v8235_v18 = vmov %v4580_v61  ;;  %v4581_v26 = vmul.f32 (%p369_p13), 4000.0, %v4580_v61 }
 0x93f   : > { %4582 = vst [vmem:[%s359_s17] sm:$0x1] %v4581_v26 }
 0x940   : > { %5367 = shalt.err (!%p5364_p7)
}
 0x941   : > { %5051 = dma.vmem_to_hbm [thread:$0]  (%p5494_p6), %s4595_s8, 16, %s4597_s9, %s4584_s23  }
 0x942 PF: > { %s4608_s26 = sand.u32 1, %s5398_s18   ;;  %p5054_p10 = pnand %p4693_p9, %p5498_p8 }
 0x943   : > { %s4609_s17 = scalar_lea.sflag [#allocation5], %s4608_s26 }
 0x944   : > { %p5055_p11 = pneg %p5054_p10 }
 0x946   : > { %5393 = dma.done.wait (%p5055_p11), %s4609_s17, 16  }
 0x947   : > { %5395 = vsyncadd (%p5055_p11), %s4609_s17, 4294967280  ;;  %p15_p12 = scmp.ge.s32.totalorder %s5475_s24, 4   ;;  %s8236_s18 = smov %s5402_s19 }
 0x948   : > { %s8237_s19 = smov %s5406_s20  ;;  %s8238_s20 = smov %s5488_s27 }
 0x949   : > { %s8239_s21 = smov %s5475_s24  ;;  %17 = sbr.rel (!%p15_p12) target bundleno = 3 (0x3), region = 189 }
 0x94e   :  { %4614 = vsyncpa [#allocation5], 1 }
 0x94f   :  { %4616 = vsyncpa [#allocation5 + $0x1], 1 }

</bundles_post_ra>
